<compile_context>
chip_gen: v7x
topology: tpu7x:2x2x1
jax: 0.10.0
libtpu: 0.0.40
codegen_flags: <defaults>
</compile_context>

<pallas_src>
import numpy as np
import jax
import jax.numpy as jnp
from jax.experimental import pallas as pl
from jax.experimental.pallas import tpu as pltpu

_BN_EPS = 1e-5


def _nbytes(shape, dtype):
    return int(np.prod(shape)) * jnp.dtype(dtype).itemsize


def _w_to_taps(w_oihw):
    """(Cout, Cin, 3, 3) PyTorch layout -> (9, Cin, Cout) tap-major, bf16 for the MXU."""
    o, i, _, _ = w_oihw.shape
    return jnp.transpose(w_oihw, (2, 3, 1, 0)).reshape(9, i, o).astype(jnp.bfloat16)


def _conv3x3_from_ref(pad_ref, w_ref, row_off, out_rows, out_cols):
    """3x3 'same' conv as 9 shifted (rows, Cin) x (Cin, Cout) MXU matmuls.

    pad_ref : VMEM ref (>= row_off + out_rows + 2, out_cols + 2, Cin), bf16
    w_ref   : VMEM ref (9, Cin, Cout), bf16 (tap k = kh*3 + kw)
    returns : (out_rows * out_cols, Cout) float32
    """
    acc = None
    for kh in range(3):
        for kw in range(3):
            # Row offset slice is cheap; the kw shift is a (small) sublane-offset
            # window load handled by Mosaic.
            patch = pad_ref[row_off + kh:row_off + kh + out_rows,
                            kw:kw + out_cols, :]
            p2d = patch.reshape(out_rows * out_cols, patch.shape[-1])
            d = jnp.dot(p2d, w_ref[kh * 3 + kw],
                        preferred_element_type=jnp.float32)
            acc = d if acc is None else acc + d      # first tap initialises acc
    return acc


# ---------------------------------------------------------------------------
# phase 1: fused row-upsample -> conv1 (+ surplus conv) -> bn1 partial stats
# ---------------------------------------------------------------------------
def _phase1_kernel(tile_h, W, cin, cout, has_surplus):
    r_out = tile_h + 2        # conv1 slab rows: tile rows + 1 halo row above/below
    r_pad = tile_h + 4        # zero-padded upsampled-input rows for that slab

    def kernel(*refs):
        if has_surplus:
            (xa_ref, xc_ref, xb_ref, w1_ref, ws_ref,
             y1_ref, s1_ref, q1_ref, res_ref, xpad_ref) = refs
        else:
            (xa_ref, xc_ref, xb_ref, w1_ref,
             y1_ref, s1_ref, q1_ref, xpad_ref) = refs

        i = pl.program_id(1)
        last = pl.num_programs(1) - 1
        zdt = xpad_ref.dtype

        # halo-only zeroing: left / right padding columns (no full-buffer fill).
        xpad_ref[:, 0:1, :] = jnp.zeros((r_pad, 1, cin), zdt)
        xpad_ref[:, W + 1:W + 2, :] = jnp.zeros((r_pad, 1, cin), zdt)

        # interior: fused 2x nearest-neighbour *row* upsample of the source block
        # (the width direction was pre-expanded in the wrapper).
        xpad_ref[2:tile_h + 2, 1:W + 1, :] = jnp.repeat(xc_ref[0], 2, axis=0)

        # top / bottom halo rows: duplicated neighbour source row, or zero padding
        # at the image boundary.
        zrow = jnp.zeros((2, W, cin), zdt)
        top = jnp.broadcast_to(xa_ref[0], (2, W, cin))
        bot = jnp.broadcast_to(xb_ref[0], (2, W, cin))

        @pl.when(i == 0)
        def _():
            xpad_ref[0:2, 1:W + 1, :] = zrow

        @pl.when(i > 0)
        def _():
            xpad_ref[0:2, 1:W + 1, :] = top

        @pl.when(i == last)
        def _():
            xpad_ref[tile_h + 2:r_pad, 1:W + 1, :] = zrow

        @pl.when(i < last)
        def _():
            xpad_ref[tile_h + 2:r_pad, 1:W + 1, :] = bot

        # conv1 over the slab (bf16 operands, f32 accumulation on the MXU).
        y = _conv3x3_from_ref(xpad_ref, w1_ref, 0, r_out, W)

        # bn1 partial statistics over this tile's own rows only (halo excluded,
        # so nothing is double counted across tiles).
        own = y[W:W + tile_h * W, :]
        s1_ref[...] = jnp.sum(own, axis=0, keepdims=True).reshape(1, 1, cout)
        q1_ref[...] = jnp.sum(own * own, axis=0, keepdims=True).reshape(1, 1, cout)

        y1_ref[...] = y.reshape(1, r_out, W, cout).astype(y1_ref.dtype)

        if has_surplus:
            # residual branch: 3x3 surplus conv for this tile's own rows.
            r = _conv3x3_from_ref(xpad_ref, ws_ref, 1, tile_h, W)
            res_ref[...] = r.reshape(1, tile_h, W, cout).astype(res_ref.dtype)

    return kernel


# ---------------------------------------------------------------------------
# phase 2: bn1 (single FMA) -> relu -> conv2 -> bn2 partial stats
# ---------------------------------------------------------------------------
def _phase2_kernel(tile_h, W, cout):
    r_in = tile_h + 2

    def kernel(y1_ref, sc_ref, sh_ref, w2_ref, y2_ref, s2_ref, q2_ref, zpad_ref):
        i = pl.program_id(1)
        last = pl.num_programs(1) - 1
        zdt = zpad_ref.dtype

        # BatchNorm1 as a single FMA + ReLU over the whole slab.
        z = jnp.maximum(y1_ref[0].astype(jnp.float32) * sc_ref[0] + sh_ref[0], 0.0)
        zpad_ref[:, 1:W + 1, :] = z.astype(zdt)

        # halo-only zeroing: padding columns always; padding rows only where the
        # slab's halo row is the image boundary (not a real activation row).
        zpad_ref[:, 0:1, :] = jnp.zeros((r_in, 1, cout), zdt)
        zpad_ref[:, W + 1:W + 2, :] = jnp.zeros((r_in, 1, cout), zdt)

        @pl.when(i == 0)
        def _():
            zpad_ref[0:1, :, :] = jnp.zeros((1, W + 2, cout), zdt)

        @pl.when(i == last)
        def _():
            zpad_ref[r_in - 1:r_in, :, :] = jnp.zeros((1, W + 2, cout), zdt)

        y2 = _conv3x3_from_ref(zpad_ref, w2_ref, 0, tile_h, W)

        s2_ref[...] = jnp.sum(y2, axis=0, keepdims=True).reshape(1, 1, cout)
        q2_ref[...] = jnp.sum(y2 * y2, axis=0, keepdims=True).reshape(1, 1, cout)
        y2_ref[...] = y2.reshape(1, tile_h, W, cout).astype(y2_ref.dtype)

    return kernel


# ---------------------------------------------------------------------------
# phase 3: bn2 (single FMA) -> + residual -> relu
# ---------------------------------------------------------------------------
def _phase3_kernel(tile_h, W, cout, has_surplus):
    def kernel(y2_ref, sc_ref, sh_ref, res_ref, out_ref):
        out = y2_ref[0].astype(jnp.float32) * sc_ref[0] + sh_ref[0]
        if has_surplus:
            res = res_ref[0].astype(jnp.float32)                   # (tile_h, W, cout)
        else:
            # residual = nearest-neighbour upsampled input; row repeat fused here.
            res = jnp.repeat(res_ref[0].astype(jnp.float32), 2, axis=0)
        out_ref[...] = jnp.maximum(out + res, 0.0).reshape(1, tile_h, W, cout)

    return kernel


def _bn_scale_shift(s, q, count, gamma, beta):
    """Fold batch stats into a per-channel (scale, shift) pair (single FMA apply)."""
    mean = s / count
    var = jnp.maximum(q / count - mean * mean, 0.0)     # biased (training-mode) variance
    scale = gamma * jax.lax.rsqrt(var + _BN_EPS)
    shift = beta - mean * scale
    c = scale.shape[-1]
    return (scale.reshape(1, c).astype(jnp.float32),
            shift.reshape(1, c).astype(jnp.float32))


def _pick_tile_h(H):
    for cand in (32, 16, 8, 4, 2):
        if cand <= H and H % cand == 0:
            return cand
    return H


def _nr_block_forward(x_nchw, params, *, tile_h=None):
    """x_nchw: (N, Cin, hs, ws) float32. Returns (N, Cout, 2*hs, 2*ws) float32."""
    n, cin, hs, ws_ = x_nchw.shape
    cout = params["w1"].shape[0]
    has_surplus = "ws" in params
    if not has_surplus:
        assert cin == cout, "surplus_conv weights required when cin != cout"

    H, W = 2 * hs, 2 * ws_
    if tile_h is None:
        tile_h = _pick_tile_h(H)
    assert H % tile_h == 0 and tile_h % 2 == 0
    tile_hs = tile_h // 2
    nH = H // tile_h
    r_out = tile_h + 2
    r_pad = tile_h + 4

    f32 = jnp.float32
    bf16 = jnp.bfloat16

    # NCHW -> NHWC.  Width half of the 2x nearest upsample happens here (2x data),
    # the row half + residual replication are fused inside the kernels.
    # TODO(synk): fuse the width-direction repeat into the kernel as well (needs a
    # sublane interleave); only the row direction is fused today.
    x_nhwc = jnp.transpose(x_nchw, (0, 2, 3, 1)).astype(bf16)
    x_wide = jnp.repeat(x_nhwc, 2, axis=2)                         # (N, hs, W, Cin)

    w1_t = _w_to_taps(params["w1"])
    w2_t = _w_to_taps(params["w2"])
    ws_t = _w_to_taps(params["ws"]) if has_surplus else None

    # ---- BlockSpecs -------------------------------------------------------
    def full_spec(shape):
        zeros = (0,) * len(shape)
        return pl.BlockSpec(shape, lambda b, i: zeros)

    xc_spec = pl.BlockSpec((1, tile_hs, W, cin), lambda b, i: (b, i, 0, 0))
    xa_spec = pl.BlockSpec(
        (1, 1, W, cin),
        lambda b, i: (b, jnp.maximum(i * tile_hs - 1, 0), 0, 0))
    xb_spec = pl.BlockSpec(
        (1, 1, W, cin),
        lambda b, i: (b, jnp.minimum((i + 1) * tile_hs, hs - 1), 0, 0))
    row_out_spec = pl.BlockSpec((1, tile_h, W, cout), lambda b, i: (b, i, 0, 0))
    slab_spec = pl.BlockSpec((1, r_out, W, cout), lambda b, i: (b * nH + i, 0, 0, 0))
    stat_spec = pl.BlockSpec((1, 1, cout), lambda b, i: (b * nH + i, 0, 0))
    chan_spec = pl.BlockSpec((1, cout), lambda b, i: (0, 0))

    grid = (n, nH)

    # vmem limit sized from the per-step working set (double-buffered blocks +
    # scratch + headroom), clamped to sane bounds.
    blk_bytes = (
        _nbytes((1, tile_hs, W, cin), bf16) + 2 * _nbytes((1, 1, W, cin), bf16)
        + _nbytes((9, cin, cout), bf16) * (2 if has_surplus else 1)
        + _nbytes((9, cout, cout), bf16)
        + _nbytes((1, r_out, W, cout), bf16)
        + _nbytes((1, tile_h, W, cout), f32)
        + (_nbytes((1, tile_h, W, cout), bf16) if has_surplus else 0)
    )
    scratch_bytes = max(_nbytes((r_pad, W + 2, cin), bf16),
                        _nbytes((r_out, W + 2, cout), bf16))
    vmem_limit = int(min(max(2 * blk_bytes + scratch_bytes + (8 << 20), 16 << 20),
                         100 << 20))
    cparams = pltpu.CompilerParams(
        dimension_semantics=("parallel", "parallel"),
        vmem_limit_bytes=vmem_limit)

    # ---- phase 1 ----------------------------------------------------------
    p1_ins = (x_wide, x_wide, x_wide, w1_t)
    p1_in_specs = [xa_spec, xc_spec, xb_spec, full_spec(w1_t.shape)]
    p1_out_shape = (
        jax.ShapeDtypeStruct((n * nH, r_out, W, cout), bf16),    # conv1 slabs (with halo rows)
        jax.ShapeDtypeStruct((n * nH, 1, cout), f32),            # bn1 partial sum
        jax.ShapeDtypeStruct((n * nH, 1, cout), f32),            # bn1 partial sum of squares
    )
    p1_out_specs = (slab_spec, stat_spec, stat_spec)
    if has_surplus:
        p1_ins = p1_ins + (ws_t,)
        p1_in_specs.append(full_spec(ws_t.shape))
        p1_out_shape = p1_out_shape + (jax.ShapeDtypeStruct((n, H, W, cout), bf16),)
        p1_out_specs = p1_out_specs + (row_out_spec,)

    p1 = pl.pallas_call(
        _phase1_kernel(tile_h, W, cin, cout, has_surplus),
        grid=grid,
        in_specs=p1_in_specs,
        out_specs=p1_out_specs,
        out_shape=p1_out_shape,
        scratch_shapes=[pltpu.VMEM((r_pad, W + 2, cin), bf16)],
        compiler_params=cparams,
    )(*p1_ins)
    if has_surplus:
        y1, s1, q1, res = p1
    else:
        y1, s1, q1 = p1
        res = None

    count = float(n * H * W)
    sc1, sh1 = _bn_scale_shift(jnp.sum(s1, axis=(0, 1)), jnp.sum(q1, axis=(0, 1)),
                               count, params["g1"].astype(f32),
                               params["b1"].astype(f32))

    # ---- phase 2 ----------------------------------------------------------
    y2, s2, q2 = pl.pallas_call(
        _phase2_kernel(tile_h, W, cout),
        grid=grid,
        in_specs=[slab_spec, chan_spec, chan_spec, full_spec(w2_t.shape)],
        out_specs=(row_out_spec, stat_spec, stat_spec),
        out_shape=(jax.ShapeDtypeStruct((n, H, W, cout), bf16),
                   jax.ShapeDtypeStruct((n * nH, 1, cout), f32),
                   jax.ShapeDtypeStruct((n * nH, 1, cout), f32)),
        scratch_shapes=[pltpu.VMEM((r_out, W + 2, cout), bf16)],
        compiler_params=cparams,
    )(y1, sc1, sh1, w2_t)

    sc2, sh2 = _bn_scale_shift(jnp.sum(s2, axis=(0, 1)), jnp.sum(q2, axis=(0, 1)),
                               count, params["g2"].astype(f32),
                               params["b2"].astype(f32))

    # ---- phase 3 ----------------------------------------------------------
    res_in = res if has_surplus else x_wide
    res_spec = row_out_spec if has_surplus else xc_spec
    out_nhwc = pl.pallas_call(
        _phase3_kernel(tile_h, W, cout, has_surplus),
        grid=grid,
        in_specs=[row_out_spec, chan_spec, chan_spec, res_spec],
        out_specs=pl.BlockSpec((1, tile_h, W, cout), lambda b, i: (b, i, 0, 0)),
        out_shape=jax.ShapeDtypeStruct((n, H, W, cout), f32),
        compiler_params=cparams,
    )(y2, sc2, sh2, res_in)

    return jnp.transpose(out_nhwc, (0, 3, 1, 2))


nr_block_forward = jax.jit(_nr_block_forward, static_argnames=("tile_h",))


def _reference(x_nchw, params):
    """Pure-JAX reference of the PyTorch forward (training-mode BN, f32)."""
    x = jnp.repeat(jnp.repeat(x_nchw, 2, axis=2), 2, axis=3)

    def conv(inp, w_oihw):
        return jax.lax.conv_general_dilated(
            inp, w_oihw, window_strides=(1, 1), padding=((1, 1), (1, 1)),
            dimension_numbers=("NCHW", "OIHW", "NCHW"))

    def bn(inp, g, b):
        mean = jnp.mean(inp, axis=(0, 2, 3), keepdims=True)
        var = jnp.mean((inp - mean) ** 2, axis=(0, 2, 3), keepdims=True)
        return ((inp - mean) * jax.lax.rsqrt(var + _BN_EPS)
                * g[None, :, None, None] + b[None, :, None, None])

    residual = x
    if "ws" in params:
        residual = conv(x, params["ws"])
    out = conv(x, params["w1"])
    out = bn(out, params["g1"], params["b1"])
    out = jnp.maximum(out, 0.0)
    out = conv(out, params["w2"])
    out = bn(out, params["g2"], params["b2"])
    out = jnp.maximum(out + residual, 0.0)
    return out


if __name__ == "__main__":
    key = jax.random.PRNGKey(0)
    ks = jax.random.split(key, 16)

    def make_params(cin, cout, keys, surplus):
        p = {
            "w1": 0.05 * jax.random.normal(keys[0], (cout, cin, 3, 3), jnp.float32),
            "g1": 1.0 + 0.1 * jax.random.normal(keys[1], (cout,), jnp.float32),
            "b1": 0.1 * jax.random.normal(keys[2], (cout,), jnp.float32),
            "w2": 0.05 * jax.random.normal(keys[3], (cout, cout, 3, 3), jnp.float32),
            "g2": 1.0 + 0.1 * jax.random.normal(keys[4], (cout,), jnp.float32),
            "b2": 0.1 * jax.random.normal(keys[5], (cout,), jnp.float32),
        }
        if surplus:
            p["ws"] = 0.05 * jax.random.normal(keys[6], (cout, cin, 3, 3), jnp.float32)
        return p

    # config 1: in_channels == out_channels (no surplus conv), like nr_block(512, 512)
    # upsampled spatial is 16x16, tiled into 2 row blocks per image.
    n, c, hs = 2, 64, 8
    x = jax.random.normal(ks[0], (n, c, hs, hs), jnp.float32)
    params = make_params(c, c, ks[1:7], surplus=False)
    out = jax.block_until_ready(nr_block_forward(x, params, tile_h=8))
    ref = jax.block_until_ready(_reference(x, params))
    # bf16 MXU operands (per perf feedback) => relaxed tolerance vs the f32 reference.
    np.testing.assert_allclose(np.asarray(out), np.asarray(ref), rtol=5e-2, atol=8e-2)

    # config 2: in_channels != out_channels exercises the surplus_conv residual path.
    cin2, cout2 = 32, 64
    x2 = jax.random.normal(ks[7], (n, cin2, hs, hs), jnp.float32)
    params2 = make_params(cin2, cout2, ks[8:15], surplus=True)
    out2 = jax.block_until_ready(nr_block_forward(x2, params2, tile_h=8))
    ref2 = jax.block_until_ready(_reference(x2, params2))
    np.testing.assert_allclose(np.asarray(out2), np.asarray(ref2), rtol=5e-2, atol=8e-2)

    print("KERNEL_OK")
</pallas_src>

<mosaic_0001>
module attributes {stable_mosaic.version = 11 : i64} {
  func.func @kernel(%arg0: i32, %arg1: i32, %arg2: memref<1x10x16x64xbf16, #tpu.memory_space<vmem>>, %arg3: memref<1x64xf32, #tpu.memory_space<vmem>>, %arg4: memref<1x64xf32, #tpu.memory_space<vmem>>, %arg5: memref<9x64x64xbf16, #tpu.memory_space<vmem>>, %arg6: memref<1x8x16x64xbf16, #tpu.memory_space<vmem>>, %arg7: memref<1x1x64xf32, #tpu.memory_space<vmem>>, %arg8: memref<1x1x64xf32, #tpu.memory_space<vmem>>, %arg9: memref<10x18x64xbf16, #tpu.memory_space<vmem>>) attributes {dimension_semantics = [#tpu.dimension_semantics<parallel>, #tpu.dimension_semantics<parallel>], iteration_bounds = array<i64: 2, 2>, scalar_prefetch = 0 : i64, scratch_operands = 1 : i64, tpu.core_type = #tpu.core_type<tc>, window_params = [{transform_indices = @transform_0, window_bounds = array<i64: 1, 10, 16, 64>}, {pipeline_mode = #tpu.pipeline_mode<synchronous>, transform_indices = @transform_1, window_bounds = array<i64: 1, 64>}, {pipeline_mode = #tpu.pipeline_mode<synchronous>, transform_indices = @transform_2, window_bounds = array<i64: 1, 64>}, {pipeline_mode = #tpu.pipeline_mode<synchronous>, transform_indices = @transform_3, window_bounds = array<i64: 9, 64, 64>}, {transform_indices = @transform_4, window_bounds = array<i64: 1, 8, 16, 64>}, {transform_indices = @transform_5, window_bounds = array<i64: 1, 1, 64>}, {transform_indices = @transform_6, window_bounds = array<i64: 1, 1, 64>}]} {
    %c0 = arith.constant 0 : index
    %c0_0 = arith.constant 0 : index
    %c0_1 = arith.constant 0 : index
    %c0_2 = arith.constant 0 : index
    %0 = vector.load %arg2[%c0, %c0_0, %c0_1, %c0_2] : memref<1x10x16x64xbf16, #tpu.memory_space<vmem>>, vector<1x10x16x64xbf16>
    %1 = vector.shape_cast %0 : vector<1x10x16x64xbf16> to vector<10x16x64xbf16>
    %2 = arith.extf %1 : vector<10x16x64xbf16> to vector<10x16x64xf32>
    %c0_3 = arith.constant 0 : index
    %c0_4 = arith.constant 0 : index
    %3 = vector.load %arg3[%c0_3, %c0_4] : memref<1x64xf32, #tpu.memory_space<vmem>>, vector<1x64xf32>
    %4 = vector.shape_cast %3 : vector<1x64xf32> to vector<64xf32>
    %5 = vector.shape_cast %4 : vector<64xf32> to vector<1x1x64xf32>
    %6 = vector.broadcast %5 : vector<1x1x64xf32> to vector<10x16x64xf32>
    %7 = arith.mulf %2, %6 : vector<10x16x64xf32>
    %c0_5 = arith.constant 0 : index
    %c0_6 = arith.constant 0 : index
    %8 = vector.load %arg4[%c0_5, %c0_6] : memref<1x64xf32, #tpu.memory_space<vmem>>, vector<1x64xf32>
    %9 = vector.shape_cast %8 : vector<1x64xf32> to vector<64xf32>
    %10 = vector.shape_cast %9 : vector<64xf32> to vector<1x1x64xf32>
    %11 = vector.broadcast %10 : vector<1x1x64xf32> to vector<10x16x64xf32>
    %12 = arith.addf %7, %11 : vector<10x16x64xf32>
    %cst = arith.constant 0.000000e+00 : f32
    %13 = vector.broadcast %cst : f32 to vector<10x16x64xf32>
    %14 = arith.maximumf %12, %13 : vector<10x16x64xf32>
    %15 = arith.truncf %14 : vector<10x16x64xf32> to vector<10x16x64xbf16>
    %c0_7 = arith.constant 0 : index
    %c1 = arith.constant 1 : index
    %c0_8 = arith.constant 0 : index
    %16 = vector.load %arg9[%c0_7, %c1, %c0_8] : memref<10x18x64xbf16, #tpu.memory_space<vmem>>, vector<10x16x64xbf16>
    tpu.vector_store %arg9[%c0_7, %c1, %c0_8], %15 {strides = array<i32>} : memref<10x18x64xbf16, #tpu.memory_space<vmem>>, vector<10x16x64xbf16>,
    %cst_9 = arith.constant 0.000000e+00 : bf16
    %17 = vector.broadcast %cst_9 : bf16 to vector<10x1x64xbf16>
    %c0_10 = arith.constant 0 : index
    %c0_11 = arith.constant 0 : index
    %c0_12 = arith.constant 0 : index
    %18 = vector.load %arg9[%c0_10, %c0_11, %c0_12] : memref<10x18x64xbf16, #tpu.memory_space<vmem>>, vector<10x1x64xbf16>
    tpu.vector_store %arg9[%c0_10, %c0_11, %c0_12], %17 {strides = array<i32>} : memref<10x18x64xbf16, #tpu.memory_space<vmem>>, vector<10x1x64xbf16>,
    %cst_13 = arith.constant 0.000000e+00 : bf16
    %19 = vector.broadcast %cst_13 : bf16 to vector<10x1x64xbf16>
    %c0_14 = arith.constant 0 : index
    %c17 = arith.constant 17 : index
    %c0_15 = arith.constant 0 : index
    %20 = vector.load %arg9[%c0_14, %c17, %c0_15] : memref<10x18x64xbf16, #tpu.memory_space<vmem>>, vector<10x1x64xbf16>
    tpu.vector_store %arg9[%c0_14, %c17, %c0_15], %19 {strides = array<i32>} : memref<10x18x64xbf16, #tpu.memory_space<vmem>>, vector<10x1x64xbf16>,
    %c0_i32 = arith.constant 0 : i32
    %21 = arith.cmpi eq, %arg1, %c0_i32 : i32
    %22 = arith.extui %21 : i1 to i32
    %c0_i32_16 = arith.constant 0 : i32
    %23 = arith.cmpi ne, %22, %c0_i32_16 : i32
    scf.if %23 {
      %cst_86 = arith.constant 0.000000e+00 : bf16
      %92 = vector.broadcast %cst_86 : bf16 to vector<1x18x64xbf16>
      %c0_87 = arith.constant 0 : index
      %c0_88 = arith.constant 0 : index
      %c0_89 = arith.constant 0 : index
      %93 = vector.load %arg9[%c0_87, %c0_88, %c0_89] : memref<10x18x64xbf16, #tpu.memory_space<vmem>>, vector<1x18x64xbf16>
      tpu.vector_store %arg9[%c0_87, %c0_88, %c0_89], %92 {strides = array<i32>} : memref<10x18x64xbf16, #tpu.memory_space<vmem>>, vector<1x18x64xbf16>,
    } else {
    }
    %c1_i32 = arith.constant 1 : i32
    %24 = arith.cmpi eq, %arg1, %c1_i32 : i32
    %25 = arith.extui %24 : i1 to i32
    %c0_i32_17 = arith.constant 0 : i32
    %26 = arith.cmpi ne, %25, %c0_i32_17 : i32
    scf.if %26 {
      %cst_86 = arith.constant 0.000000e+00 : bf16
      %92 = vector.broadcast %cst_86 : bf16 to vector<1x18x64xbf16>
      %c9 = arith.constant 9 : index
      %c0_87 = arith.constant 0 : index
      %c0_88 = arith.constant 0 : index
      %93 = vector.load %arg9[%c9, %c0_87, %c0_88] : memref<10x18x64xbf16, #tpu.memory_space<vmem>>, vector<1x18x64xbf16>
      tpu.vector_store %arg9[%c9, %c0_87, %c0_88], %92 {strides = array<i32>} : memref<10x18x64xbf16, #tpu.memory_space<vmem>>, vector<1x18x64xbf16>,
    } else {
    }
    %c0_18 = arith.constant 0 : index
    %c0_19 = arith.constant 0 : index
    %c0_20 = arith.constant 0 : index
    %27 = vector.load %arg9[%c0_18, %c0_19, %c0_20] : memref<10x18x64xbf16, #tpu.memory_space<vmem>>, vector<8x16x64xbf16>
    %28 = vector.shape_cast %27 : vector<8x16x64xbf16> to vector<128x64xbf16>
    %c0_21 = arith.constant 0 : index
    %c0_22 = arith.constant 0 : index
    %c0_23 = arith.constant 0 : index
    %29 = vector.load %arg5[%c0_21, %c0_22, %c0_23] : memref<9x64x64xbf16, #tpu.memory_space<vmem>>, vector<1x64x64xbf16>
    %30 = vector.shape_cast %29 : vector<1x64x64xbf16> to vector<64x64xbf16>
    %cst_24 = arith.constant dense<0.000000e+00> : vector<128x64xf32>
    %31 = tpu.matmul %28, %30, %cst_24 {dimension_numbers = #tpu.dot_dimension_numbers<[1], [0], [0], [1], [0, 0, 1, 1], [], []>} : vector<128x64xbf16>, vector<64x64xbf16>, vector<128x64xf32> -> vector<128x64xf32>
    %c0_25 = arith.constant 0 : index
    %c1_26 = arith.constant 1 : index
    %c0_27 = arith.constant 0 : index
    %32 = vector.load %arg9[%c0_25, %c1_26, %c0_27] : memref<10x18x64xbf16, #tpu.memory_space<vmem>>, vector<8x16x64xbf16>
    %33 = vector.shape_cast %32 : vector<8x16x64xbf16> to vector<128x64xbf16>
    %c1_28 = arith.constant 1 : index
    %c0_29 = arith.constant 0 : index
    %c0_30 = arith.constant 0 : index
    %34 = vector.load %arg5[%c1_28, %c0_29, %c0_30] : memref<9x64x64xbf16, #tpu.memory_space<vmem>>, vector<1x64x64xbf16>
    %35 = vector.shape_cast %34 : vector<1x64x64xbf16> to vector<64x64xbf16>
    %cst_31 = arith.constant dense<0.000000e+00> : vector<128x64xf32>
    %36 = tpu.matmul %33, %35, %cst_31 {dimension_numbers = #tpu.dot_dimension_numbers<[1], [0], [0], [1], [0, 0, 1, 1], [], []>} : vector<128x64xbf16>, vector<64x64xbf16>, vector<128x64xf32> -> vector<128x64xf32>
    %37 = arith.addf %31, %36 : vector<128x64xf32>
    %c0_32 = arith.constant 0 : index
    %c2 = arith.constant 2 : index
    %c0_33 = arith.constant 0 : index
    %38 = vector.load %arg9[%c0_32, %c2, %c0_33] : memref<10x18x64xbf16, #tpu.memory_space<vmem>>, vector<8x16x64xbf16>
    %39 = vector.shape_cast %38 : vector<8x16x64xbf16> to vector<128x64xbf16>
    %c2_34 = arith.constant 2 : index
    %c0_35 = arith.constant 0 : index
    %c0_36 = arith.constant 0 : index
    %40 = vector.load %arg5[%c2_34, %c0_35, %c0_36] : memref<9x64x64xbf16, #tpu.memory_space<vmem>>, vector<1x64x64xbf16>
    %41 = vector.shape_cast %40 : vector<1x64x64xbf16> to vector<64x64xbf16>
    %cst_37 = arith.constant dense<0.000000e+00> : vector<128x64xf32>
    %42 = tpu.matmul %39, %41, %cst_37 {dimension_numbers = #tpu.dot_dimension_numbers<[1], [0], [0], [1], [0, 0, 1, 1], [], []>} : vector<128x64xbf16>, vector<64x64xbf16>, vector<128x64xf32> -> vector<128x64xf32>
    %43 = arith.addf %37, %42 : vector<128x64xf32>
    %c1_38 = arith.constant 1 : index
    %c0_39 = arith.constant 0 : index
    %c0_40 = arith.constant 0 : index
    %44 = vector.load %arg9[%c1_38, %c0_39, %c0_40] : memref<10x18x64xbf16, #tpu.memory_space<vmem>>, vector<8x16x64xbf16>
    %45 = vector.shape_cast %44 : vector<8x16x64xbf16> to vector<128x64xbf16>
    %c3 = arith.constant 3 : index
    %c0_41 = arith.constant 0 : index
    %c0_42 = arith.constant 0 : index
    %46 = vector.load %arg5[%c3, %c0_41, %c0_42] : memref<9x64x64xbf16, #tpu.memory_space<vmem>>, vector<1x64x64xbf16>
    %47 = vector.shape_cast %46 : vector<1x64x64xbf16> to vector<64x64xbf16>
    %cst_43 = arith.constant dense<0.000000e+00> : vector<128x64xf32>
    %48 = tpu.matmul %45, %47, %cst_43 {dimension_numbers = #tpu.dot_dimension_numbers<[1], [0], [0], [1], [0, 0, 1, 1], [], []>} : vector<128x64xbf16>, vector<64x64xbf16>, vector<128x64xf32> -> vector<128x64xf32>
    %49 = arith.addf %43, %48 : vector<128x64xf32>
    %c1_44 = arith.constant 1 : index
    %c1_45 = arith.constant 1 : index
    %c0_46 = arith.constant 0 : index
    %50 = vector.load %arg9[%c1_44, %c1_45, %c0_46] : memref<10x18x64xbf16, #tpu.memory_space<vmem>>, vector<8x16x64xbf16>
    %51 = vector.shape_cast %50 : vector<8x16x64xbf16> to vector<128x64xbf16>
    %c4 = arith.constant 4 : index
    %c0_47 = arith.constant 0 : index
    %c0_48 = arith.constant 0 : index
    %52 = vector.load %arg5[%c4, %c0_47, %c0_48] : memref<9x64x64xbf16, #tpu.memory_space<vmem>>, vector<1x64x64xbf16>
    %53 = vector.shape_cast %52 : vector<1x64x64xbf16> to vector<64x64xbf16>
    %cst_49 = arith.constant dense<0.000000e+00> : vector<128x64xf32>
    %54 = tpu.matmul %51, %53, %cst_49 {dimension_numbers = #tpu.dot_dimension_numbers<[1], [0], [0], [1], [0, 0, 1, 1], [], []>} : vector<128x64xbf16>, vector<64x64xbf16>, vector<128x64xf32> -> vector<128x64xf32>
    %55 = arith.addf %49, %54 : vector<128x64xf32>
    %c1_50 = arith.constant 1 : index
    %c2_51 = arith.constant 2 : index
    %c0_52 = arith.constant 0 : index
    %56 = vector.load %arg9[%c1_50, %c2_51, %c0_52] : memref<10x18x64xbf16, #tpu.memory_space<vmem>>, vector<8x16x64xbf16>
    %57 = vector.shape_cast %56 : vector<8x16x64xbf16> to vector<128x64xbf16>
    %c5 = arith.constant 5 : index
    %c0_53 = arith.constant 0 : index
    %c0_54 = arith.constant 0 : index
    %58 = vector.load %arg5[%c5, %c0_53, %c0_54] : memref<9x64x64xbf16, #tpu.memory_space<vmem>>, vector<1x64x64xbf16>
    %59 = vector.shape_cast %58 : vector<1x64x64xbf16> to vector<64x64xbf16>
    %cst_55 = arith.constant dense<0.000000e+00> : vector<128x64xf32>
    %60 = tpu.matmul %57, %59, %cst_55 {dimension_numbers = #tpu.dot_dimension_numbers<[1], [0], [0], [1], [0, 0, 1, 1], [], []>} : vector<128x64xbf16>, vector<64x64xbf16>, vector<128x64xf32> -> vector<128x64xf32>
    %61 = arith.addf %55, %60 : vector<128x64xf32>
    %c2_56 = arith.constant 2 : index
    %c0_57 = arith.constant 0 : index
    %c0_58 = arith.constant 0 : index
    %62 = vector.load %arg9[%c2_56, %c0_57, %c0_58] : memref<10x18x64xbf16, #tpu.memory_space<vmem>>, vector<8x16x64xbf16>
    %63 = vector.shape_cast %62 : vector<8x16x64xbf16> to vector<128x64xbf16>
    %c6 = arith.constant 6 : index
    %c0_59 = arith.constant 0 : index
    %c0_60 = arith.constant 0 : index
    %64 = vector.load %arg5[%c6, %c0_59, %c0_60] : memref<9x64x64xbf16, #tpu.memory_space<vmem>>, vector<1x64x64xbf16>
    %65 = vector.shape_cast %64 : vector<1x64x64xbf16> to vector<64x64xbf16>
    %cst_61 = arith.constant dense<0.000000e+00> : vector<128x64xf32>
    %66 = tpu.matmul %63, %65, %cst_61 {dimension_numbers = #tpu.dot_dimension_numbers<[1], [0], [0], [1], [0, 0, 1, 1], [], []>} : vector<128x64xbf16>, vector<64x64xbf16>, vector<128x64xf32> -> vector<128x64xf32>
    %67 = arith.addf %61, %66 : vector<128x64xf32>
    %c2_62 = arith.constant 2 : index
    %c1_63 = arith.constant 1 : index
    %c0_64 = arith.constant 0 : index
    %68 = vector.load %arg9[%c2_62, %c1_63, %c0_64] : memref<10x18x64xbf16, #tpu.memory_space<vmem>>, vector<8x16x64xbf16>
    %69 = vector.shape_cast %68 : vector<8x16x64xbf16> to vector<128x64xbf16>
    %c7 = arith.constant 7 : index
    %c0_65 = arith.constant 0 : index
    %c0_66 = arith.constant 0 : index
    %70 = vector.load %arg5[%c7, %c0_65, %c0_66] : memref<9x64x64xbf16, #tpu.memory_space<vmem>>, vector<1x64x64xbf16>
    %71 = vector.shape_cast %70 : vector<1x64x64xbf16> to vector<64x64xbf16>
    %cst_67 = arith.constant dense<0.000000e+00> : vector<128x64xf32>
    %72 = tpu.matmul %69, %71, %cst_67 {dimension_numbers = #tpu.dot_dimension_numbers<[1], [0], [0], [1], [0, 0, 1, 1], [], []>} : vector<128x64xbf16>, vector<64x64xbf16>, vector<128x64xf32> -> vector<128x64xf32>
    %73 = arith.addf %67, %72 : vector<128x64xf32>
    %c2_68 = arith.constant 2 : index
    %c2_69 = arith.constant 2 : index
    %c0_70 = arith.constant 0 : index
    %74 = vector.load %arg9[%c2_68, %c2_69, %c0_70] : memref<10x18x64xbf16, #tpu.memory_space<vmem>>, vector<8x16x64xbf16>
    %75 = vector.shape_cast %74 : vector<8x16x64xbf16> to vector<128x64xbf16>
    %c8 = arith.constant 8 : index
    %c0_71 = arith.constant 0 : index
    %c0_72 = arith.constant 0 : index
    %76 = vector.load %arg5[%c8, %c0_71, %c0_72] : memref<9x64x64xbf16, #tpu.memory_space<vmem>>, vector<1x64x64xbf16>
    %77 = vector.shape_cast %76 : vector<1x64x64xbf16> to vector<64x64xbf16>
    %cst_73 = arith.constant dense<0.000000e+00> : vector<128x64xf32>
    %78 = tpu.matmul %75, %77, %cst_73 {dimension_numbers = #tpu.dot_dimension_numbers<[1], [0], [0], [1], [0, 0, 1, 1], [], []>} : vector<128x64xbf16>, vector<64x64xbf16>, vector<128x64xf32> -> vector<128x64xf32>
    %79 = arith.addf %73, %78 : vector<128x64xf32>
    %cst_74 = arith.constant dense<0.000000e+00> : vector<64xf32>
    %80 = vector.multi_reduction <add>, %79, %cst_74 [0] : vector<128x64xf32> to vector<64xf32>
    %81 = vector.shape_cast %80 : vector<64xf32> to vector<1x64xf32>
    %82 = vector.shape_cast %81 : vector<1x64xf32> to vector<1x1x64xf32>
    %c0_75 = arith.constant 0 : index
    %c0_76 = arith.constant 0 : index
    %c0_77 = arith.constant 0 : index
    %83 = vector.load %arg7[%c0_75, %c0_76, %c0_77] : memref<1x1x64xf32, #tpu.memory_space<vmem>>, vector<1x1x64xf32>
    tpu.vector_store %arg7[%c0_75, %c0_76, %c0_77], %82 {strides = array<i32>} : memref<1x1x64xf32, #tpu.memory_space<vmem>>, vector<1x1x64xf32>,
    %84 = arith.mulf %79, %79 : vector<128x64xf32>
    %cst_78 = arith.constant dense<0.000000e+00> : vector<64xf32>
    %85 = vector.multi_reduction <add>, %84, %cst_78 [0] : vector<128x64xf32> to vector<64xf32>
    %86 = vector.shape_cast %85 : vector<64xf32> to vector<1x64xf32>
    %87 = vector.shape_cast %86 : vector<1x64xf32> to vector<1x1x64xf32>
    %c0_79 = arith.constant 0 : index
    %c0_80 = arith.constant 0 : index
    %c0_81 = arith.constant 0 : index
    %88 = vector.load %arg8[%c0_79, %c0_80, %c0_81] : memref<1x1x64xf32, #tpu.memory_space<vmem>>, vector<1x1x64xf32>
    tpu.vector_store %arg8[%c0_79, %c0_80, %c0_81], %87 {strides = array<i32>} : memref<1x1x64xf32, #tpu.memory_space<vmem>>, vector<1x1x64xf32>,
    %89 = vector.shape_cast %79 : vector<128x64xf32> to vector<1x8x16x64xf32>
    %90 = arith.truncf %89 : vector<1x8x16x64xf32> to vector<1x8x16x64xbf16>
    %c0_82 = arith.constant 0 : index
    %c0_83 = arith.constant 0 : index
    %c0_84 = arith.constant 0 : index
    %c0_85 = arith.constant 0 : index
    %91 = vector.load %arg6[%c0_82, %c0_83, %c0_84, %c0_85] : memref<1x8x16x64xbf16, #tpu.memory_space<vmem>>, vector<1x8x16x64xbf16>
    tpu.vector_store %arg6[%c0_82, %c0_83, %c0_84, %c0_85], %90 {strides = array<i32>} : memref<1x8x16x64xbf16, #tpu.memory_space<vmem>>, vector<1x8x16x64xbf16>,
    return
  }
  func.func @transform_0(%arg0: i32, %arg1: i32) -> (i32, i32, i32, i32) {
    %c2_i32 = arith.constant 2 : i32
    %0 = arith.muli %arg0, %c2_i32 : i32
    %1 = arith.addi %0, %arg1 : i32
    %c0_i32 = arith.constant 0 : i32
    %c0_i32_0 = arith.constant 0 : i32
    %c0_i32_1 = arith.constant 0 : i32
    %c0_i32_2 = arith.constant 0 : i32
    return %1, %c0_i32, %c0_i32_0, %c0_i32_1 : i32, i32, i32, i32
  }
  func.func @transform_1(%arg0: i32, %arg1: i32) -> (i32, i32) {
    %c0_i32 = arith.constant 0 : i32
    %c0_i32_0 = arith.constant 0 : i32
    %c0_i32_1 = arith.constant 0 : i32
    return %c0_i32, %c0_i32_0 : i32, i32
  }
  func.func @transform_2(%arg0: i32, %arg1: i32) -> (i32, i32) {
    %c0_i32 = arith.constant 0 : i32
    %c0_i32_0 = arith.constant 0 : i32
    %c0_i32_1 = arith.constant 0 : i32
    return %c0_i32, %c0_i32_0 : i32, i32
  }
  func.func @transform_3(%arg0: i32, %arg1: i32) -> (i32, i32, i32) {
    %c0_i32 = arith.constant 0 : i32
    %c0_i32_0 = arith.constant 0 : i32
    %c0_i32_1 = arith.constant 0 : i32
    %c0_i32_2 = arith.constant 0 : i32
    return %c0_i32, %c0_i32_0, %c0_i32_1 : i32, i32, i32
  }
  func.func @transform_4(%arg0: i32, %arg1: i32) -> (i32, i32, i32, i32) {
    %c0_i32 = arith.constant 0 : i32
    %c0_i32_0 = arith.constant 0 : i32
    %c0_i32_1 = arith.constant 0 : i32
    return %arg0, %arg1, %c0_i32, %c0_i32_0 : i32, i32, i32, i32
  }
  func.func @transform_5(%arg0: i32, %arg1: i32) -> (i32, i32, i32) {
    %c2_i32 = arith.constant 2 : i32
    %0 = arith.muli %arg0, %c2_i32 : i32
    %1 = arith.addi %0, %arg1 : i32
    %c0_i32 = arith.constant 0 : i32
    %c0_i32_0 = arith.constant 0 : i32
    %c0_i32_1 = arith.constant 0 : i32
    return %1, %c0_i32, %c0_i32_0 : i32, i32, i32
  }
  func.func @transform_6(%arg0: i32, %arg1: i32) -> (i32, i32, i32) {
    %c2_i32 = arith.constant 2 : i32
    %0 = arith.muli %arg0, %c2_i32 : i32
    %1 = arith.addi %0, %arg1 : i32
    %c0_i32 = arith.constant 0 : i32
    %c0_i32_0 = arith.constant 0 : i32
    %c0_i32_1 = arith.constant 0 : i32
    return %1, %c0_i32, %c0_i32_0 : i32, i32, i32
  }
}

module attributes {stable_mosaic.version = 11 : i64} {
  func.func @kernel(%arg0: i32, %arg1: i32, %arg2: memref<1x1x16x64xbf16, #tpu.memory_space<vmem>>, %arg3: memref<1x4x16x64xbf16, #tpu.memory_space<vmem>>, %arg4: memref<1x1x16x64xbf16, #tpu.memory_space<vmem>>, %arg5: memref<9x64x64xbf16, #tpu.memory_space<vmem>>, %arg6: memref<1x10x16x64xbf16, #tpu.memory_space<vmem>>, %arg7: memref<1x1x64xf32, #tpu.memory_space<vmem>>, %arg8: memref<1x1x64xf32, #tpu.memory_space<vmem>>, %arg9: memref<12x18x64xbf16, #tpu.memory_space<vmem>>) attributes {dimension_semantics = [#tpu.dimension_semantics<parallel>, #tpu.dimension_semantics<parallel>], iteration_bounds = array<i64: 2, 2>, scalar_prefetch = 0 : i64, scratch_operands = 1 : i64, tpu.core_type = #tpu.core_type<tc>, window_params = [{transform_indices = @transform_0, window_bounds = array<i64: 1, 1, 16, 64>}, {transform_indices = @transform_1, window_bounds = array<i64: 1, 4, 16, 64>}, {transform_indices = @transform_2, window_bounds = array<i64: 1, 1, 16, 64>}, {pipeline_mode = #tpu.pipeline_mode<synchronous>, transform_indices = @transform_3, window_bounds = array<i64: 9, 64, 64>}, {transform_indices = @transform_4, window_bounds = array<i64: 1, 10, 16, 64>}, {transform_indices = @transform_5, window_bounds = array<i64: 1, 1, 64>}, {transform_indices = @transform_6, window_bounds = array<i64: 1, 1, 64>}]} {
    %cst = arith.constant 0.000000e+00 : bf16
    %0 = vector.broadcast %cst : bf16 to vector<12x1x64xbf16>
    %c0 = arith.constant 0 : index
    %c0_0 = arith.constant 0 : index
    %c0_1 = arith.constant 0 : index
    %1 = vector.load %arg9[%c0, %c0_0, %c0_1] : memref<12x18x64xbf16, #tpu.memory_space<vmem>>, vector<12x1x64xbf16>
    tpu.vector_store %arg9[%c0, %c0_0, %c0_1], %0 {strides = array<i32>} : memref<12x18x64xbf16, #tpu.memory_space<vmem>>, vector<12x1x64xbf16>,
    %cst_2 = arith.constant 0.000000e+00 : bf16
    %2 = vector.broadcast %cst_2 : bf16 to vector<12x1x64xbf16>
    %c0_3 = arith.constant 0 : index
    %c17 = arith.constant 17 : index
    %c0_4 = arith.constant 0 : index
    %3 = vector.load %arg9[%c0_3, %c17, %c0_4] : memref<12x18x64xbf16, #tpu.memory_space<vmem>>, vector<12x1x64xbf16>
    tpu.vector_store %arg9[%c0_3, %c17, %c0_4], %2 {strides = array<i32>} : memref<12x18x64xbf16, #tpu.memory_space<vmem>>, vector<12x1x64xbf16>,
    %c0_5 = arith.constant 0 : index
    %c0_6 = arith.constant 0 : index
    %c0_7 = arith.constant 0 : index
    %c0_8 = arith.constant 0 : index
    %4 = vector.load %arg3[%c0_5, %c0_6, %c0_7, %c0_8] : memref<1x4x16x64xbf16, #tpu.memory_space<vmem>>, vector<1x4x16x64xbf16>
    %5 = vector.shape_cast %4 : vector<1x4x16x64xbf16> to vector<4x16x64xbf16>
    %6 = vector.shape_cast %5 : vector<4x16x64xbf16> to vector<4x1x16x64xbf16>
    %7 = vector.broadcast %6 : vector<4x1x16x64xbf16> to vector<4x2x16x64xbf16>
    %8 = vector.shape_cast %7 : vector<4x2x16x64xbf16> to vector<8x16x64xbf16>
    %c2 = arith.constant 2 : index
    %c1 = arith.constant 1 : index
    %c0_9 = arith.constant 0 : index
    %9 = vector.load %arg9[%c2, %c1, %c0_9] : memref<12x18x64xbf16, #tpu.memory_space<vmem>>, vector<8x16x64xbf16>
    tpu.vector_store %arg9[%c2, %c1, %c0_9], %8 {strides = array<i32>} : memref<12x18x64xbf16, #tpu.memory_space<vmem>>, vector<8x16x64xbf16>,
    %cst_10 = arith.constant 0.000000e+00 : bf16
    %10 = vector.broadcast %cst_10 : bf16 to vector<2x16x64xbf16>
    %c0_11 = arith.constant 0 : index
    %c0_12 = arith.constant 0 : index
    %c0_13 = arith.constant 0 : index
    %c0_14 = arith.constant 0 : index
    %11 = vector.load %arg2[%c0_11, %c0_12, %c0_13, %c0_14] : memref<1x1x16x64xbf16, #tpu.memory_space<vmem>>, vector<1x1x16x64xbf16>
    %12 = vector.shape_cast %11 : vector<1x1x16x64xbf16> to vector<1x16x64xbf16>
    %13 = vector.shape_cast %12 : vector<1x16x64xbf16> to vector<1x16x64xbf16>
    %14 = vector.broadcast %13 : vector<1x16x64xbf16> to vector<2x16x64xbf16>
    %c0_15 = arith.constant 0 : index
    %c0_16 = arith.constant 0 : index
    %c0_17 = arith.constant 0 : index
    %c0_18 = arith.constant 0 : index
    %15 = vector.load %arg4[%c0_15, %c0_16, %c0_17, %c0_18] : memref<1x1x16x64xbf16, #tpu.memory_space<vmem>>, vector<1x1x16x64xbf16>
    %16 = vector.shape_cast %15 : vector<1x1x16x64xbf16> to vector<1x16x64xbf16>
    %17 = vector.shape_cast %16 : vector<1x16x64xbf16> to vector<1x16x64xbf16>
    %18 = vector.broadcast %17 : vector<1x16x64xbf16> to vector<2x16x64xbf16>
    %c0_i32 = arith.constant 0 : i32
    %19 = arith.cmpi eq, %arg1, %c0_i32 : i32
    %20 = arith.extui %19 : i1 to i32
    %c0_i32_19 = arith.constant 0 : i32
    %21 = arith.cmpi ne, %20, %c0_i32_19 : i32
    scf.if %21 {
      %c0_94 = arith.constant 0 : index
      %c1_95 = arith.constant 1 : index
      %c0_96 = arith.constant 0 : index
      %97 = vector.load %arg9[%c0_94, %c1_95, %c0_96] : memref<12x18x64xbf16, #tpu.memory_space<vmem>>, vector<2x16x64xbf16>
      tpu.vector_store %arg9[%c0_94, %c1_95, %c0_96], %10 {strides = array<i32>} : memref<12x18x64xbf16, #tpu.memory_space<vmem>>, vector<2x16x64xbf16>,
    } else {
    }
    %c0_i32_20 = arith.constant 0 : i32
    %22 = arith.cmpi sgt, %arg1, %c0_i32_20 : i32
    %23 = arith.extui %22 : i1 to i32
    %c0_i32_21 = arith.constant 0 : i32
    %24 = arith.cmpi ne, %23, %c0_i32_21 : i32
    scf.if %24 {
      %c0_94 = arith.constant 0 : index
      %c1_95 = arith.constant 1 : index
      %c0_96 = arith.constant 0 : index
      %97 = vector.load %arg9[%c0_94, %c1_95, %c0_96] : memref<12x18x64xbf16, #tpu.memory_space<vmem>>, vector<2x16x64xbf16>
      tpu.vector_store %arg9[%c0_94, %c1_95, %c0_96], %14 {strides = array<i32>} : memref<12x18x64xbf16, #tpu.memory_space<vmem>>, vector<2x16x64xbf16>,
    } else {
    }
    %c1_i32 = arith.constant 1 : i32
    %25 = arith.cmpi eq, %arg1, %c1_i32 : i32
    %26 = arith.extui %25 : i1 to i32
    %c0_i32_22 = arith.constant 0 : i32
    %27 = arith.cmpi ne, %26, %c0_i32_22 : i32
    scf.if %27 {
      %c10 = arith.constant 10 : index
      %c1_94 = arith.constant 1 : index
      %c0_95 = arith.constant 0 : index
      %97 = vector.load %arg9[%c10, %c1_94, %c0_95] : memref<12x18x64xbf16, #tpu.memory_space<vmem>>, vector<2x16x64xbf16>
      tpu.vector_store %arg9[%c10, %c1_94, %c0_95], %10 {strides = array<i32>} : memref<12x18x64xbf16, #tpu.memory_space<vmem>>, vector<2x16x64xbf16>,
    } else {
    }
    %c1_i32_23 = arith.constant 1 : i32
    %28 = arith.cmpi slt, %arg1, %c1_i32_23 : i32
    %29 = arith.extui %28 : i1 to i32
    %c0_i32_24 = arith.constant 0 : i32
    %30 = arith.cmpi ne, %29, %c0_i32_24 : i32
    scf.if %30 {
      %c10 = arith.constant 10 : index
      %c1_94 = arith.constant 1 : index
      %c0_95 = arith.constant 0 : index
      %97 = vector.load %arg9[%c10, %c1_94, %c0_95] : memref<12x18x64xbf16, #tpu.memory_space<vmem>>, vector<2x16x64xbf16>
      tpu.vector_store %arg9[%c10, %c1_94, %c0_95], %18 {strides = array<i32>} : memref<12x18x64xbf16, #tpu.memory_space<vmem>>, vector<2x16x64xbf16>,
    } else {
    }
    %c0_25 = arith.constant 0 : index
    %c0_26 = arith.constant 0 : index
    %c0_27 = arith.constant 0 : index
    %31 = vector.load %arg9[%c0_25, %c0_26, %c0_27] : memref<12x18x64xbf16, #tpu.memory_space<vmem>>, vector<10x16x64xbf16>
    %32 = vector.shape_cast %31 : vector<10x16x64xbf16> to vector<160x64xbf16>
    %c0_28 = arith.constant 0 : index
    %c0_29 = arith.constant 0 : index
    %c0_30 = arith.constant 0 : index
    %33 = vector.load %arg5[%c0_28, %c0_29, %c0_30] : memref<9x64x64xbf16, #tpu.memory_space<vmem>>, vector<1x64x64xbf16>
    %34 = vector.shape_cast %33 : vector<1x64x64xbf16> to vector<64x64xbf16>
    %cst_31 = arith.constant dense<0.000000e+00> : vector<160x64xf32>
    %35 = tpu.matmul %32, %34, %cst_31 {dimension_numbers = #tpu.dot_dimension_numbers<[1], [0], [0], [1], [0, 0, 1, 1], [], []>} : vector<160x64xbf16>, vector<64x64xbf16>, vector<160x64xf32> -> vector<160x64xf32>
    %c0_32 = arith.constant 0 : index
    %c1_33 = arith.constant 1 : index
    %c0_34 = arith.constant 0 : index
    %36 = vector.load %arg9[%c0_32, %c1_33, %c0_34] : memref<12x18x64xbf16, #tpu.memory_space<vmem>>, vector<10x16x64xbf16>
    %37 = vector.shape_cast %36 : vector<10x16x64xbf16> to vector<160x64xbf16>
    %c1_35 = arith.constant 1 : index
    %c0_36 = arith.constant 0 : index
    %c0_37 = arith.constant 0 : index
    %38 = vector.load %arg5[%c1_35, %c0_36, %c0_37] : memref<9x64x64xbf16, #tpu.memory_space<vmem>>, vector<1x64x64xbf16>
    %39 = vector.shape_cast %38 : vector<1x64x64xbf16> to vector<64x64xbf16>
    %cst_38 = arith.constant dense<0.000000e+00> : vector<160x64xf32>
    %40 = tpu.matmul %37, %39, %cst_38 {dimension_numbers = #tpu.dot_dimension_numbers<[1], [0], [0], [1], [0, 0, 1, 1], [], []>} : vector<160x64xbf16>, vector<64x64xbf16>, vector<160x64xf32> -> vector<160x64xf32>
    %41 = arith.addf %35, %40 : vector<160x64xf32>
    %c0_39 = arith.constant 0 : index
    %c2_40 = arith.constant 2 : index
    %c0_41 = arith.constant 0 : index
    %42 = vector.load %arg9[%c0_39, %c2_40, %c0_41] : memref<12x18x64xbf16, #tpu.memory_space<vmem>>, vector<10x16x64xbf16>
    %43 = vector.shape_cast %42 : vector<10x16x64xbf16> to vector<160x64xbf16>
    %c2_42 = arith.constant 2 : index
    %c0_43 = arith.constant 0 : index
    %c0_44 = arith.constant 0 : index
    %44 = vector.load %arg5[%c2_42, %c0_43, %c0_44] : memref<9x64x64xbf16, #tpu.memory_space<vmem>>, vector<1x64x64xbf16>
    %45 = vector.shape_cast %44 : vector<1x64x64xbf16> to vector<64x64xbf16>
    %cst_45 = arith.constant dense<0.000000e+00> : vector<160x64xf32>
    %46 = tpu.matmul %43, %45, %cst_45 {dimension_numbers = #tpu.dot_dimension_numbers<[1], [0], [0], [1], [0, 0, 1, 1], [], []>} : vector<160x64xbf16>, vector<64x64xbf16>, vector<160x64xf32> -> vector<160x64xf32>
    %47 = arith.addf %41, %46 : vector<160x64xf32>
    %c1_46 = arith.constant 1 : index
    %c0_47 = arith.constant 0 : index
    %c0_48 = arith.constant 0 : index
    %48 = vector.load %arg9[%c1_46, %c0_47, %c0_48] : memref<12x18x64xbf16, #tpu.memory_space<vmem>>, vector<10x16x64xbf16>
    %49 = vector.shape_cast %48 : vector<10x16x64xbf16> to vector<160x64xbf16>
    %c3 = arith.constant 3 : index
    %c0_49 = arith.constant 0 : index
    %c0_50 = arith.constant 0 : index
    %50 = vector.load %arg5[%c3, %c0_49, %c0_50] : memref<9x64x64xbf16, #tpu.memory_space<vmem>>, vector<1x64x64xbf16>
    %51 = vector.shape_cast %50 : vector<1x64x64xbf16> to vector<64x64xbf16>
    %cst_51 = arith.constant dense<0.000000e+00> : vector<160x64xf32>
    %52 = tpu.matmul %49, %51, %cst_51 {dimension_numbers = #tpu.dot_dimension_numbers<[1], [0], [0], [1], [0, 0, 1, 1], [], []>} : vector<160x64xbf16>, vector<64x64xbf16>, vector<160x64xf32> -> vector<160x64xf32>
    %53 = arith.addf %47, %52 : vector<160x64xf32>
    %c1_52 = arith.constant 1 : index
    %c1_53 = arith.constant 1 : index
    %c0_54 = arith.constant 0 : index
    %54 = vector.load %arg9[%c1_52, %c1_53, %c0_54] : memref<12x18x64xbf16, #tpu.memory_space<vmem>>, vector<10x16x64xbf16>
    %55 = vector.shape_cast %54 : vector<10x16x64xbf16> to vector<160x64xbf16>
    %c4 = arith.constant 4 : index
    %c0_55 = arith.constant 0 : index
    %c0_56 = arith.constant 0 : index
    %56 = vector.load %arg5[%c4, %c0_55, %c0_56] : memref<9x64x64xbf16, #tpu.memory_space<vmem>>, vector<1x64x64xbf16>
    %57 = vector.shape_cast %56 : vector<1x64x64xbf16> to vector<64x64xbf16>
    %cst_57 = arith.constant dense<0.000000e+00> : vector<160x64xf32>
    %58 = tpu.matmul %55, %57, %cst_57 {dimension_numbers = #tpu.dot_dimension_numbers<[1], [0], [0], [1], [0, 0, 1, 1], [], []>} : vector<160x64xbf16>, vector<64x64xbf16>, vector<160x64xf32> -> vector<160x64xf32>
    %59 = arith.addf %53, %58 : vector<160x64xf32>
    %c1_58 = arith.constant 1 : index
    %c2_59 = arith.constant 2 : index
    %c0_60 = arith.constant 0 : index
    %60 = vector.load %arg9[%c1_58, %c2_59, %c0_60] : memref<12x18x64xbf16, #tpu.memory_space<vmem>>, vector<10x16x64xbf16>
    %61 = vector.shape_cast %60 : vector<10x16x64xbf16> to vector<160x64xbf16>
    %c5 = arith.constant 5 : index
    %c0_61 = arith.constant 0 : index
    %c0_62 = arith.constant 0 : index
    %62 = vector.load %arg5[%c5, %c0_61, %c0_62] : memref<9x64x64xbf16, #tpu.memory_space<vmem>>, vector<1x64x64xbf16>
    %63 = vector.shape_cast %62 : vector<1x64x64xbf16> to vector<64x64xbf16>
    %cst_63 = arith.constant dense<0.000000e+00> : vector<160x64xf32>
    %64 = tpu.matmul %61, %63, %cst_63 {dimension_numbers = #tpu.dot_dimension_numbers<[1], [0], [0], [1], [0, 0, 1, 1], [], []>} : vector<160x64xbf16>, vector<64x64xbf16>, vector<160x64xf32> -> vector<160x64xf32>
    %65 = arith.addf %59, %64 : vector<160x64xf32>
    %c2_64 = arith.constant 2 : index
    %c0_65 = arith.constant 0 : index
    %c0_66 = arith.constant 0 : index
    %66 = vector.load %arg9[%c2_64, %c0_65, %c0_66] : memref<12x18x64xbf16, #tpu.memory_space<vmem>>, vector<10x16x64xbf16>
    %67 = vector.shape_cast %66 : vector<10x16x64xbf16> to vector<160x64xbf16>
    %c6 = arith.constant 6 : index
    %c0_67 = arith.constant 0 : index
    %c0_68 = arith.constant 0 : index
    %68 = vector.load %arg5[%c6, %c0_67, %c0_68] : memref<9x64x64xbf16, #tpu.memory_space<vmem>>, vector<1x64x64xbf16>
    %69 = vector.shape_cast %68 : vector<1x64x64xbf16> to vector<64x64xbf16>
    %cst_69 = arith.constant dense<0.000000e+00> : vector<160x64xf32>
    %70 = tpu.matmul %67, %69, %cst_69 {dimension_numbers = #tpu.dot_dimension_numbers<[1], [0], [0], [1], [0, 0, 1, 1], [], []>} : vector<160x64xbf16>, vector<64x64xbf16>, vector<160x64xf32> -> vector<160x64xf32>
    %71 = arith.addf %65, %70 : vector<160x64xf32>
    %c2_70 = arith.constant 2 : index
    %c1_71 = arith.constant 1 : index
    %c0_72 = arith.constant 0 : index
    %72 = vector.load %arg9[%c2_70, %c1_71, %c0_72] : memref<12x18x64xbf16, #tpu.memory_space<vmem>>, vector<10x16x64xbf16>
    %73 = vector.shape_cast %72 : vector<10x16x64xbf16> to vector<160x64xbf16>
    %c7 = arith.constant 7 : index
    %c0_73 = arith.constant 0 : index
    %c0_74 = arith.constant 0 : index
    %74 = vector.load %arg5[%c7, %c0_73, %c0_74] : memref<9x64x64xbf16, #tpu.memory_space<vmem>>, vector<1x64x64xbf16>
    %75 = vector.shape_cast %74 : vector<1x64x64xbf16> to vector<64x64xbf16>
    %cst_75 = arith.constant dense<0.000000e+00> : vector<160x64xf32>
    %76 = tpu.matmul %73, %75, %cst_75 {dimension_numbers = #tpu.dot_dimension_numbers<[1], [0], [0], [1], [0, 0, 1, 1], [], []>} : vector<160x64xbf16>, vector<64x64xbf16>, vector<160x64xf32> -> vector<160x64xf32>
    %77 = arith.addf %71, %76 : vector<160x64xf32>
    %c2_76 = arith.constant 2 : index
    %c2_77 = arith.constant 2 : index
    %c0_78 = arith.constant 0 : index
    %78 = vector.load %arg9[%c2_76, %c2_77, %c0_78] : memref<12x18x64xbf16, #tpu.memory_space<vmem>>, vector<10x16x64xbf16>
    %79 = vector.shape_cast %78 : vector<10x16x64xbf16> to vector<160x64xbf16>
    %c8 = arith.constant 8 : index
    %c0_79 = arith.constant 0 : index
    %c0_80 = arith.constant 0 : index
    %80 = vector.load %arg5[%c8, %c0_79, %c0_80] : memref<9x64x64xbf16, #tpu.memory_space<vmem>>, vector<1x64x64xbf16>
    %81 = vector.shape_cast %80 : vector<1x64x64xbf16> to vector<64x64xbf16>
    %cst_81 = arith.constant dense<0.000000e+00> : vector<160x64xf32>
    %82 = tpu.matmul %79, %81, %cst_81 {dimension_numbers = #tpu.dot_dimension_numbers<[1], [0], [0], [1], [0, 0, 1, 1], [], []>} : vector<160x64xbf16>, vector<64x64xbf16>, vector<160x64xf32> -> vector<160x64xf32>
    %83 = arith.addf %77, %82 : vector<160x64xf32>
    %84 = vector.extract_strided_slice %83 {offsets = [16, 0], sizes = [128, 64], strides = [1, 1]} : vector<160x64xf32> to vector<128x64xf32>
    %cst_82 = arith.constant dense<0.000000e+00> : vector<64xf32>
    %85 = vector.multi_reduction <add>, %84, %cst_82 [0] : vector<128x64xf32> to vector<64xf32>
    %86 = vector.shape_cast %85 : vector<64xf32> to vector<1x64xf32>
    %87 = vector.shape_cast %86 : vector<1x64xf32> to vector<1x1x64xf32>
    %c0_83 = arith.constant 0 : index
    %c0_84 = arith.constant 0 : index
    %c0_85 = arith.constant 0 : index
    %88 = vector.load %arg7[%c0_83, %c0_84, %c0_85] : memref<1x1x64xf32, #tpu.memory_space<vmem>>, vector<1x1x64xf32>
    tpu.vector_store %arg7[%c0_83, %c0_84, %c0_85], %87 {strides = array<i32>} : memref<1x1x64xf32, #tpu.memory_space<vmem>>, vector<1x1x64xf32>,
    %89 = arith.mulf %84, %84 : vector<128x64xf32>
    %cst_86 = arith.constant dense<0.000000e+00> : vector<64xf32>
    %90 = vector.multi_reduction <add>, %89, %cst_86 [0] : vector<128x64xf32> to vector<64xf32>
    %91 = vector.shape_cast %90 : vector<64xf32> to vector<1x64xf32>
    %92 = vector.shape_cast %91 : vector<1x64xf32> to vector<1x1x64xf32>
    %c0_87 = arith.constant 0 : index
    %c0_88 = arith.constant 0 : index
    %c0_89 = arith.constant 0 : index
    %93 = vector.load %arg8[%c0_87, %c0_88, %c0_89] : memref<1x1x64xf32, #tpu.memory_space<vmem>>, vector<1x1x64xf32>
    tpu.vector_store %arg8[%c0_87, %c0_88, %c0_89], %92 {strides = array<i32>} : memref<1x1x64xf32, #tpu.memory_space<vmem>>, vector<1x1x64xf32>,
    %94 = vector.shape_cast %83 : vector<160x64xf32> to vector<1x10x16x64xf32>
    %95 = arith.truncf %94 : vector<1x10x16x64xf32> to vector<1x10x16x64xbf16>
    %c0_90 = arith.constant 0 : index
    %c0_91 = arith.constant 0 : index
    %c0_92 = arith.constant 0 : index
    %c0_93 = arith.constant 0 : index
    %96 = vector.load %arg6[%c0_90, %c0_91, %c0_92, %c0_93] : memref<1x10x16x64xbf16, #tpu.memory_space<vmem>>, vector<1x10x16x64xbf16>
    tpu.vector_store %arg6[%c0_90, %c0_91, %c0_92, %c0_93], %95 {strides = array<i32>} : memref<1x10x16x64xbf16, #tpu.memory_space<vmem>>, vector<1x10x16x64xbf16>,
    return
  }
  func.func @transform_0(%arg0: i32, %arg1: i32) -> (i32, i32, i32, i32) {
    %c4_i32 = arith.constant 4 : i32
    %0 = arith.muli %arg1, %c4_i32 : i32
    %c1_i32 = arith.constant 1 : i32
    %1 = arith.subi %0, %c1_i32 : i32
    %c0_i32 = arith.constant 0 : i32
    %2 = arith.maxsi %1, %c0_i32 : i32
    %c0_i32_0 = arith.constant 0 : i32
    %c0_i32_1 = arith.constant 0 : i32
    %c0_i32_2 = arith.constant 0 : i32
    return %arg0, %2, %c0_i32_0, %c0_i32_1 : i32, i32, i32, i32
  }
  func.func @transform_1(%arg0: i32, %arg1: i32) -> (i32, i32, i32, i32) {
    %c0_i32 = arith.constant 0 : i32
    %c0_i32_0 = arith.constant 0 : i32
    %c0_i32_1 = arith.constant 0 : i32
    return %arg0, %arg1, %c0_i32, %c0_i32_0 : i32, i32, i32, i32
  }
  func.func @transform_2(%arg0: i32, %arg1: i32) -> (i32, i32, i32, i32) {
    %c1_i32 = arith.constant 1 : i32
    %0 = arith.addi %arg1, %c1_i32 : i32
    %c4_i32 = arith.constant 4 : i32
    %1 = arith.muli %0, %c4_i32 : i32
    %c7_i32 = arith.constant 7 : i32
    %2 = arith.minsi %1, %c7_i32 : i32
    %c0_i32 = arith.constant 0 : i32
    %c0_i32_0 = arith.constant 0 : i32
    %c0_i32_1 = arith.constant 0 : i32
    return %arg0, %2, %c0_i32, %c0_i32_0 : i32, i32, i32, i32
  }
  func.func @transform_3(%arg0: i32, %arg1: i32) -> (i32, i32, i32) {
    %c0_i32 = arith.constant 0 : i32
    %c0_i32_0 = arith.constant 0 : i32
    %c0_i32_1 = arith.constant 0 : i32
    %c0_i32_2 = arith.constant 0 : i32
    return %c0_i32, %c0_i32_0, %c0_i32_1 : i32, i32, i32
  }
  func.func @transform_4(%arg0: i32, %arg1: i32) -> (i32, i32, i32, i32) {
    %c2_i32 = arith.constant 2 : i32
    %0 = arith.muli %arg0, %c2_i32 : i32
    %1 = arith.addi %0, %arg1 : i32
    %c0_i32 = arith.constant 0 : i32
    %c0_i32_0 = arith.constant 0 : i32
    %c0_i32_1 = arith.constant 0 : i32
    %c0_i32_2 = arith.constant 0 : i32
    return %1, %c0_i32, %c0_i32_0, %c0_i32_1 : i32, i32, i32, i32
  }
  func.func @transform_5(%arg0: i32, %arg1: i32) -> (i32, i32, i32) {
    %c2_i32 = arith.constant 2 : i32
    %0 = arith.muli %arg0, %c2_i32 : i32
    %1 = arith.addi %0, %arg1 : i32
    %c0_i32 = arith.constant 0 : i32
    %c0_i32_0 = arith.constant 0 : i32
    %c0_i32_1 = arith.constant 0 : i32
    return %1, %c0_i32, %c0_i32_0 : i32, i32, i32
  }
  func.func @transform_6(%arg0: i32, %arg1: i32) -> (i32, i32, i32) {
    %c2_i32 = arith.constant 2 : i32
    %0 = arith.muli %arg0, %c2_i32 : i32
    %1 = arith.addi %0, %arg1 : i32
    %c0_i32 = arith.constant 0 : i32
    %c0_i32_0 = arith.constant 0 : i32
    %c0_i32_1 = arith.constant 0 : i32
    return %1, %c0_i32, %c0_i32_0 : i32, i32, i32
  }
}

module attributes {stable_mosaic.version = 11 : i64} {
  func.func @kernel(%arg0: i32, %arg1: i32, %arg2: memref<1x8x16x64xbf16, #tpu.memory_space<vmem>>, %arg3: memref<1x64xf32, #tpu.memory_space<vmem>>, %arg4: memref<1x64xf32, #tpu.memory_space<vmem>>, %arg5: memref<1x4x16x64xbf16, #tpu.memory_space<vmem>>, %arg6: memref<1x8x16x64xf32, #tpu.memory_space<vmem>>) attributes {dimension_semantics = [#tpu.dimension_semantics<parallel>, #tpu.dimension_semantics<parallel>], iteration_bounds = array<i64: 2, 2>, scalar_prefetch = 0 : i64, scratch_operands = 0 : i64, tpu.core_type = #tpu.core_type<tc>, window_params = [{transform_indices = @transform_0, window_bounds = array<i64: 1, 8, 16, 64>}, {pipeline_mode = #tpu.pipeline_mode<synchronous>, transform_indices = @transform_1, window_bounds = array<i64: 1, 64>}, {pipeline_mode = #tpu.pipeline_mode<synchronous>, transform_indices = @transform_2, window_bounds = array<i64: 1, 64>}, {transform_indices = @transform_3, window_bounds = array<i64: 1, 4, 16, 64>}, {transform_indices = @transform_4, window_bounds = array<i64: 1, 8, 16, 64>}]} {
    %c0 = arith.constant 0 : index
    %c0_0 = arith.constant 0 : index
    %c0_1 = arith.constant 0 : index
    %c0_2 = arith.constant 0 : index
    %0 = vector.load %arg2[%c0, %c0_0, %c0_1, %c0_2] : memref<1x8x16x64xbf16, #tpu.memory_space<vmem>>, vector<1x8x16x64xbf16>
    %1 = vector.shape_cast %0 : vector<1x8x16x64xbf16> to vector<8x16x64xbf16>
    %2 = arith.extf %1 : vector<8x16x64xbf16> to vector<8x16x64xf32>
    %c0_3 = arith.constant 0 : index
    %c0_4 = arith.constant 0 : index
    %3 = vector.load %arg3[%c0_3, %c0_4] : memref<1x64xf32, #tpu.memory_space<vmem>>, vector<1x64xf32>
    %4 = vector.shape_cast %3 : vector<1x64xf32> to vector<64xf32>
    %5 = vector.shape_cast %4 : vector<64xf32> to vector<1x1x64xf32>
    %6 = vector.broadcast %5 : vector<1x1x64xf32> to vector<8x16x64xf32>
    %7 = arith.mulf %2, %6 : vector<8x16x64xf32>
    %c0_5 = arith.constant 0 : index
    %c0_6 = arith.constant 0 : index
    %8 = vector.load %arg4[%c0_5, %c0_6] : memref<1x64xf32, #tpu.memory_space<vmem>>, vector<1x64xf32>
    %9 = vector.shape_cast %8 : vector<1x64xf32> to vector<64xf32>
    %10 = vector.shape_cast %9 : vector<64xf32> to vector<1x1x64xf32>
    %11 = vector.broadcast %10 : vector<1x1x64xf32> to vector<8x16x64xf32>
    %12 = arith.addf %7, %11 : vector<8x16x64xf32>
    %c0_7 = arith.constant 0 : index
    %c0_8 = arith.constant 0 : index
    %c0_9 = arith.constant 0 : index
    %c0_10 = arith.constant 0 : index
    %13 = vector.load %arg5[%c0_7, %c0_8, %c0_9, %c0_10] : memref<1x4x16x64xbf16, #tpu.memory_space<vmem>>, vector<1x4x16x64xbf16>
    %14 = vector.shape_cast %13 : vector<1x4x16x64xbf16> to vector<4x16x64xbf16>
    %15 = arith.extf %14 : vector<4x16x64xbf16> to vector<4x16x64xf32>
    %16 = vector.shape_cast %15 : vector<4x16x64xf32> to vector<4x1x16x64xf32>
    %17 = vector.broadcast %16 : vector<4x1x16x64xf32> to vector<4x2x16x64xf32>
    %18 = vector.shape_cast %17 : vector<4x2x16x64xf32> to vector<8x16x64xf32>
    %19 = arith.addf %12, %18 : vector<8x16x64xf32>
    %cst = arith.constant 0.000000e+00 : f32
    %20 = vector.broadcast %cst : f32 to vector<8x16x64xf32>
    %21 = arith.maximumf %19, %20 : vector<8x16x64xf32>
    %22 = vector.shape_cast %21 : vector<8x16x64xf32> to vector<1x8x16x64xf32>
    %c0_11 = arith.constant 0 : index
    %c0_12 = arith.constant 0 : index
    %c0_13 = arith.constant 0 : index
    %c0_14 = arith.constant 0 : index
    %23 = vector.load %arg6[%c0_11, %c0_12, %c0_13, %c0_14] : memref<1x8x16x64xf32, #tpu.memory_space<vmem>>, vector<1x8x16x64xf32>
    tpu.vector_store %arg6[%c0_11, %c0_12, %c0_13, %c0_14], %22 {strides = array<i32>} : memref<1x8x16x64xf32, #tpu.memory_space<vmem>>, vector<1x8x16x64xf32>,
    return
  }
  func.func @transform_0(%arg0: i32, %arg1: i32) -> (i32, i32, i32, i32) {
    %c0_i32 = arith.constant 0 : i32
    %c0_i32_0 = arith.constant 0 : i32
    %c0_i32_1 = arith.constant 0 : i32
    return %arg0, %arg1, %c0_i32, %c0_i32_0 : i32, i32, i32, i32
  }
  func.func @transform_1(%arg0: i32, %arg1: i32) -> (i32, i32) {
    %c0_i32 = arith.constant 0 : i32
    %c0_i32_0 = arith.constant 0 : i32
    %c0_i32_1 = arith.constant 0 : i32
    return %c0_i32, %c0_i32_0 : i32, i32
  }
  func.func @transform_2(%arg0: i32, %arg1: i32) -> (i32, i32) {
    %c0_i32 = arith.constant 0 : i32
    %c0_i32_0 = arith.constant 0 : i32
    %c0_i32_1 = arith.constant 0 : i32
    return %c0_i32, %c0_i32_0 : i32, i32
  }
  func.func @transform_3(%arg0: i32, %arg1: i32) -> (i32, i32, i32, i32) {
    %c0_i32 = arith.constant 0 : i32
    %c0_i32_0 = arith.constant 0 : i32
    %c0_i32_1 = arith.constant 0 : i32
    return %arg0, %arg1, %c0_i32, %c0_i32_0 : i32, i32, i32, i32
  }
  func.func @transform_4(%arg0: i32, %arg1: i32) -> (i32, i32, i32, i32) {
    %c0_i32 = arith.constant 0 : i32
    %c0_i32_0 = arith.constant 0 : i32
    %c0_i32_1 = arith.constant 0 : i32
    return %arg0, %arg1, %c0_i32, %c0_i32_0 : i32, i32, i32, i32
  }
}

</mosaic_0001>

<bundles_post_ra>
// kernel: _nr_block_forward.5
= control target key start
LH: loop header
LB: loop body
LE: loop exit
PB: predicated region body
PF: predicated region fallthrough
CT: control target
= control target key end

     0   :  { %9 = vsyncpa [#allocation3], 0  ;;  %s1058_s0 = inlined_call_operand.vmem [shape: bf16[2,16,16,64], index: 0, kind: input, shape index: {}]   ;;  %s1059_s1 = inlined_call_operand.vmem [shape: f32[1,64], index: 1, kind: input, shape index: {}]   ;;  %s1060_s2 = inlined_call_operand.vmem [shape: f32[1,64], index: 2, kind: input, shape index: {}]   ;;  %s1061_s3 = inlined_call_operand.vmem [shape: bf16[2,8,16,64], index: 3, kind: input, shape index: {}]   ;;  %s1062_s4 = inlined_call_operand.hbm [shape: f32[2,16,16,64], index: 4, kind: output, shape index: {}]  }
   0x1   :  { %11 = vsyncpa [#allocation3 + $0x1], 0  ;;  %s814_s15 = smov 0   ;;  %s816_s16 = smov 0  }
   0x2   :  { %s818_s17 = smov 0   ;;  %s820_s18 = smov 0  }
   0x3   :  { %s822_s19 = smov 0   ;;  %s824_s20 = smov 0  }
   0x4   :  { %s826_s21 = smov 0   ;;  %s828_s22 = smov 0  }
   0x5 LB: > { %s535_s23 = sadd.s32 4294967295, %s784_s22   ;;  %s536_s24 = sadd.s32 4294967294, %s784_s22   ;;  %s784_s22 = sphi %s828_s22, %s17_s22   ;;  %s780_s21 = sphi %s826_s21, %s1071_s21   ;;  %s776_s20 = sphi %s824_s20, %s1070_s20   ;;  %s772_s19 = sphi %s822_s19, %s1069_s19   ;;  %s768_s18 = sphi %s820_s18, %s1068_s18   ;;  %s764_s17 = sphi %s818_s17, %s1067_s17   ;;  %s760_s16 = sphi %s816_s16, %s1066_s16   ;;  %s756_s15 = sphi %s814_s15, %s1065_s15  }
   0x6   : > { %s26_s25 = sadd.s32 1, %s776_s20  ;;  %s29_s26 = sadd.s32 1, %s780_s21 }
   0x7   : > { %p27_p0 = scmp.ge.s32.totalorder %s26_s25, 2  ;;  %p146_p1 = scmp.ne.s32.totalorder %s764_s17, %s760_s16 }
   0x8   : > { %p147_p2 = scmp.eq.s32.totalorder %s535_s23, 3  ;;  %p152_p5 = scmp.ne.s32.totalorder %s760_s16, %s756_s15 }
   0x9   : > { %s1073_s25 = smov (%p27_p0, %s26_s25), 0  ;;  %s1075_s26 = smov (!%p27_p0, %s29_s26), %s780_s21 }
   0xa   : > { %s132_s27 = ssub.s32 %s776_s20, %s1073_s25  ;;  %p865_p3 = por %p147_p2, %p146_p1 }
   0xb   : > { %p31_p4 = scmp.ge.s32.totalorder %s1075_s26, 2  ;;  %p153_p6 = scmp.eq.s32.totalorder %s536_s24, 3 }
   0xc   : > { %p539_p7 = scmp.ge.s32.totalorder %s784_s22, 1  ;;  %p205_p9 = scmp.lt.s32.totalorder %s784_s22, 5 }
   0xd   : > { %s1077_s26 = smov (%p31_p4, %s1075_s26), 0  ;;  %p874_p8 = por %p153_p6, %p152_p5 }
   0xe   : > { %s131_s30 = ssub.s32 %s780_s21, %s1077_s26  ;;  %s136_s5 = sadd.s32 1, %s764_s17 }
   0xf   : > { %s133_s6 = sor.u32 %s132_s27, %s131_s30  ;;  %p206_p10 = pnand %p539_p7, %p205_p9 }
  0x10   : > { %p134_p11 = scmp.eq.s32.totalorder %s133_s6, 0  ;;  %s541_s8 = sshll.u32 (!%p206_p10), %s768_s18, 3  ;;  %v897_v0 = vld [vmem:[%s1059_s1] ss:$0 sm:$0xff] (!%p206_p10)  ;;  %vm395_vm0 = vcmask (!%p206_p10), 523264  }
  0x11   : > { %209 = sbr.rel (%p206_p10) target bundleno = 71 (0x47), region = 36  ;;  %p247_p12 = scmp.lt.s32.totalorder (!%p206_p10), %s772_s19, 1  ;;  %v906_v9 = vld [vmem:[%s1060_s2] ss:$0 sm:$0xff] (!%p206_p10) }
  0x12   : > { %s883_s7 = scalar_select %p134_p11, %s764_s17, %s136_s5  }
  0x13   : > { %p249_p13 = scmp.lt.s32.totalorder (!%p206_p10), %s541_s8, 15  ;;  %s545_s11 = sshll.u32 (!%p206_p10), %s768_s18, 2 }
  0x14   : > { %p260_p0 = scmp.lt.s32.totalorder (!%p206_p10), %s545_s11, 7  ;;  %s558_s6 = sshll.u32 (!%p206_p10), %s768_s18, 4 }
  0x15   : > { %s786_s23 = smov (!%p206_p10), [#allocation2]  }
  0x18   : > { %s248_s9 = scalar_select %p247_p12, %s772_s19, 1 }
  0x19   : > { %s1079_s8 = smov (!%p249_p13, %s541_s8), 15  ;;  %s1081_s11 = smov (!%p260_p0, %s545_s11), 7 }
  0x1a   : > { %s543_s10 = sshll.u32 %s248_s9, 5  ;;  %s542_s12 = sshll.u32 %s1079_s8, 1 }
  0x1b   : > { %s253_s13 = sadd.s32 %s543_s10, %s542_s12  ;;  %s547_s30 = sshll.u32 %s248_s9, 4 }
  0x1c   : > { %s544_s14 = sshll.u32 %s253_s13, 2  ;;  %s546_s8 = sshll.u32 %s1081_s11, 1 }
  0x1d   : > { %s892_s27 = scalar_lea.vmem %s1058_s0, %s544_s14  ;;  %s264_s9 = sadd.s32 %s547_s30, %s546_s8 }
  0x1e   : > { %v560_v1 = vld [vmem:[%s892_s27] sm:$0xff]   ;;  %v607_v2 = vld [vmem:[%s892_s27 + $0x8] sm:$0xff]   ;;  %v608_v3 = vld [vmem:[%s892_s27 + $0x10] sm:$0xff]   ;;  %s243_s11 = sand.u32 1, %s760_s16   ;;  %s548_s13 = sshll.u32 %s264_s9, 2 }
  0x1f   : > { %v561_v4 = vunpack.c.l.bf16 %v560_v1  ;;  %v562_v5 = vunpack.c.h.bf16 %v560_v1  ;;  %v565_v6 = vunpack.c.l.bf16 %v607_v2  ;;  %v566_v7 = vunpack.c.h.bf16 %v607_v2  ;;  %v609_v8 = vld [vmem:[%s892_s27 + $0x18] sm:$0xff]   ;;  %s920_s24 = scalar_lea.vmem %s1061_s3, %s548_s13  ;;  %v610_v26 = vld [vmem:[%s892_s27 + $0x20] sm:$0xff]   ;;  %s540_s30 = sshll.u32 %s243_s11, 7  ;;  %v611_v50 = vld [vmem:[%s892_s27 + $0x28] sm:$0xff]  }
  0x20   : > { %v569_v10 = vunpack.c.l.bf16 %v608_v3  ;;  %v570_v11 = vunpack.c.h.bf16 %v608_v3  ;;  %v573_v12 = vunpack.c.l.bf16 %v609_v8  ;;  %v574_v13 = vunpack.c.h.bf16 %v609_v8  ;;  %v592_v27 = vld [vmem:[%s920_s24] sm:$0xff]   ;;  %v614_v29 = vld [vmem:[%s920_s24 + $0x8] sm:$0xff]   ;;  %v934_v33 = vld [vmem:[%s920_s24 + $0x10] sm:$0xff]   ;;  %s943_s5 = scalar_lea.vmem [#allocation2], %s540_s30  ;;  %s554_s8 = sshll.u32 %s772_s19, 5 }
  0x21   : > { %v308_v14 = vmul.f32 %v561_v4, %v897_v0  ;;  %v309_v15 = vmul.f32 %v562_v5, %v897_v0  ;;  %v310_v16 = vmul.f32 %v565_v6, %v897_v0  ;;  %v311_v17 = vmul.f32 %v566_v7, %v897_v0  ;;  %v612_v55 = vld [vmem:[%s892_s27 + $0x30] sm:$0xff]   ;;  %v616_v56 = vld [vmem:[%s920_s24 + $0x18] sm:$0xff]   ;;  %s426_s18 = sadd.s32 %s558_s6, %s554_s8  ;;  %s1006_s13 = scalar_lea.sflag [#allocation3], %s243_s11 }
  0x22   : > { %v312_v18 = vmul.f32 %v569_v10, %v897_v0  ;;  %v313_v19 = vmul.f32 %v570_v11, %v897_v0  ;;  %v314_v20 = vmul.f32 %v573_v12, %v897_v0  ;;  %v315_v21 = vmul.f32 %v574_v13, %v897_v0  ;;  %v613_v2 = vld [vmem:[%s892_s27 + $0x38] sm:$0xff]   ;;  %s555_s19 = sshll.u32 %s426_s18, 7  ;;  %s429_s27 = sshll.u32 %s943_s5, 4  ;;  %s994_s27 = int_to_ptr.vmem [resolvable:$true] %s429_s27 }
  0x23   : > { %v331_v22 = vadd.f32 %v906_v9, %v308_v14  ;;  %v332_v23 = vadd.f32 %v906_v9, %v309_v15  ;;  %v333_v24 = vadd.f32 %v906_v9, %v310_v16  ;;  %v334_v25 = vadd.f32 %v906_v9, %v311_v17  ;;  %s992_s9 = scalar_lea.hbm %s1062_s4, %s555_s19  ;;  %s690_s14 = scalar_lea.vmem %s994_s27, 2048 }
  0x24   : > { %v335_v28 = vadd.f32 %v906_v9, %v312_v18  ;;  %v336_v30 = vadd.f32 %v906_v9, %v313_v19  ;;  %v337_v31 = vadd.f32 %v906_v9, %v314_v20  ;;  %v338_v32 = vadd.f32 %v906_v9, %v315_v21  ;;  %p691_p1 = scmp.ne.s32.totalorder %s994_s27, %s690_s14  ;;  %s694_s24 = sshll.u32 %s786_s23, 4  ;;  %s695_s24 = int_to_ptr.vmem [resolvable:$false] %s694_s24 }
  0x25   : > { %v593_v34 = vunpack.c.l.bf16 %v592_v27  ;;  %v594_v35 = vunpack.c.h.bf16 %v592_v27  ;;  %v597_v36 = vunpack.c.l.bf16 %v614_v29  ;;  %v598_v37 = vunpack.c.h.bf16 %v614_v29  ;;  %s696_s30 = scalar_lea.vmem %s695_s24, 4096  ;;  %p697_p5 = scmp.lt.s32.totalorder %s994_s27, %s695_s24 }
  0x26   : > { %v577_v38 = vunpack.c.l.bf16 %v610_v26  ;;  %v601_v39 = vunpack.c.l.bf16 %v934_v33  ;;  %v578_v40 = vunpack.c.h.bf16 %v610_v26  ;;  %v602_v41 = vunpack.c.h.bf16 %v934_v33  ;;  %p692_p2 = pnand %p691_p1, %p865_p3  ;;  %p698_p6 = scmp.lt.s32.totalorder %s696_s30, %s690_s14 }
  0x27   : > { %v363_v42 = vadd.f32 %v593_v34, %v331_v22  ;;  %v364_v43 = vadd.f32 %v594_v35, %v332_v23  ;;  %v365_v44 = vadd.f32 %v593_v34, %v333_v24  ;;  %v366_v45 = vadd.f32 %v594_v35, %v334_v25 }
  0x28   : > { %v367_v46 = vadd.f32 %v597_v36, %v335_v28  ;;  %v368_v47 = vadd.f32 %v598_v37, %v336_v30  ;;  %v369_v48 = vadd.f32 %v597_v36, %v337_v31  ;;  %v370_v49 = vadd.f32 %v598_v37, %v338_v32  ;;  %p693_p4 = pneg %p692_p2  ;;  %p699_p7 = por %p698_p6, %p697_p5 }
  0x29   : > { %v379_v51 = vmax.f32 %v363_v42, 0.0  ;;  %v380_v52 = vmax.f32 %v364_v43, 0.0  ;;  %v381_v53 = vmax.f32 %v365_v44, 0.0  ;;  %v382_v54 = vmax.f32 %v366_v45, 0.0 }
  0x2a   : > { %v383_v57 = vmax.f32 %v367_v46, 0.0  ;;  %v384_v58 = vmax.f32 %v368_v47, 0.0  ;;  %v385_v59 = vmax.f32 %v369_v48, 0.0  ;;  %v386_v60 = vmax.f32 %v370_v49, 0.0  ;;  %p700_p9 = pnand %p699_p7, %p693_p4 }
  0x2b   : > { %396 = vst.msk [vmem:[%s943_s5] sm:$0xff] %vm395_vm0, %v379_v51  ;;  %397 = vst.msk [vmem:[%s943_s5 + $0x8] sm:$0xff] %vm395_vm0, %v380_v52  ;;  %v316_v61 = vmul.f32 %v577_v38, %v897_v0  ;;  %v317_v62 = vmul.f32 %v578_v40, %v897_v0  ;;  %v581_v63 = vunpack.c.l.bf16 %v611_v50  ;;  %v582_v1 = vunpack.c.h.bf16 %v611_v50 }
  0x2c   : > { %398 = vst.msk [vmem:[%s943_s5 + $0x10] sm:$0xff] %vm395_vm0, %v381_v53  ;;  %399 = vst.msk [vmem:[%s943_s5 + $0x18] sm:$0xff] %vm395_vm0, %v382_v54  ;;  %v585_v3 = vunpack.c.l.bf16 %v612_v55  ;;  %v605_v4 = vunpack.c.l.bf16 %v616_v56  ;;  %v586_v5 = vunpack.c.h.bf16 %v612_v55  ;;  %v606_v6 = vunpack.c.h.bf16 %v616_v56 }
  0x2d   : > { %400 = vst.msk [vmem:[%s943_s5 + $0x20] sm:$0xff] %vm395_vm0, %v383_v57  ;;  %401 = vst.msk [vmem:[%s943_s5 + $0x28] sm:$0xff] %vm395_vm0, %v384_v58  ;;  %v339_v7 = vadd.f32 %v906_v9, %v316_v61  ;;  %v340_v8 = vadd.f32 %v906_v9, %v317_v62  ;;  %v318_v10 = vmul.f32 %v581_v63, %v897_v0  ;;  %v589_v14 = vunpack.c.l.bf16 %v613_v2 }
  0x2e   : > { %402 = vst.msk [vmem:[%s943_s5 + $0x30] sm:$0xff] %vm395_vm0, %v385_v59  ;;  %403 = vst.msk [vmem:[%s943_s5 + $0x38] sm:$0xff] %vm395_vm0, %v386_v60  ;;  %v319_v11 = vmul.f32 %v582_v1, %v897_v0  ;;  %v320_v12 = vmul.f32 %v585_v3, %v897_v0  ;;  %v321_v13 = vmul.f32 %v586_v5, %v897_v0  ;;  %v590_v15 = vunpack.c.h.bf16 %v613_v2 }
  0x2f   : > { %v371_v16 = vadd.f32 %v601_v39, %v339_v7  ;;  %v372_v17 = vadd.f32 %v602_v41, %v340_v8  ;;  %v341_v18 = vadd.f32 %v906_v9, %v318_v10  ;;  %v322_v22 = vmul.f32 %v589_v14, %v897_v0 }
  0x30   : > { %v342_v19 = vadd.f32 %v906_v9, %v319_v11  ;;  %v343_v20 = vadd.f32 %v906_v9, %v320_v12  ;;  %v344_v21 = vadd.f32 %v906_v9, %v321_v13  ;;  %v323_v23 = vmul.f32 %v590_v15, %v897_v0 }
  0x31   : > { %v387_v24 = vmax.f32 %v371_v16, 0.0  ;;  %v388_v25 = vmax.f32 %v372_v17, 0.0  ;;  %v373_v26 = vadd.f32 %v601_v39, %v341_v18  ;;  %v345_v30 = vadd.f32 %v906_v9, %v322_v22 }
  0x32   : > { %v374_v27 = vadd.f32 %v602_v41, %v342_v19  ;;  %v375_v28 = vadd.f32 %v605_v4, %v343_v20  ;;  %v376_v29 = vadd.f32 %v606_v6, %v344_v21  ;;  %v346_v31 = vadd.f32 %v906_v9, %v323_v23 }
  0x33   : > { %404 = vst.msk [vmem:[%s943_s5 + $0x40] sm:$0xff] %vm395_vm0, %v387_v24  ;;  %405 = vst.msk [vmem:[%s943_s5 + $0x48] sm:$0xff] %vm395_vm0, %v388_v25  ;;  %v389_v0 = vmax.f32 %v373_v26, 0.0  ;;  %v377_v35 = vadd.f32 %v605_v4, %v345_v30 }
  0x34   : > { %v390_v32 = vmax.f32 %v374_v27, 0.0  ;;  %v391_v33 = vmax.f32 %v375_v28, 0.0  ;;  %v392_v34 = vmax.f32 %v376_v29, 0.0  ;;  %v378_v36 = vadd.f32 %v606_v6, %v346_v31 }
  0x35   : > { %406 = vst.msk [vmem:[%s943_s5 + $0x50] sm:$0xff] %vm395_vm0, %v389_v0  ;;  %v393_v9 = vmax.f32 %v377_v35, 0.0 }
  0x36   : > { %407 = vst.msk [vmem:[%s943_s5 + $0x58] sm:$0xff] %vm395_vm0, %v390_v32  ;;  %408 = vst.msk [vmem:[%s943_s5 + $0x60] sm:$0xff] %vm395_vm0, %v391_v33  ;;  %v394_v37 = vmax.f32 %v378_v36, 0.0 }
  0x37   : > { %409 = vst.msk [vmem:[%s943_s5 + $0x68] sm:$0xff] %vm395_vm0, %v392_v34  ;;  %410 = vst.msk [vmem:[%s943_s5 + $0x70] sm:$0xff] %vm395_vm0, %v393_v9 }
  0x38   : > { %411 = vst.msk [vmem:[%s943_s5 + $0x78] sm:$0xff] %vm395_vm0, %v394_v37 }
  0x39   : > { %703 = shalt.err (!%p700_p9)
}
  0x3a   : > { %s704_s11 = scalar_lea.hbm %s992_s9, 2048  ;;  %s708_s8 = scalar_lea.hbm %s1062_s4, 8192 }
  0x3b   : > { %p705_p10 = scmp.ne.s32.totalorder %s992_s9, %s704_s11  ;;  %p709_p13 = scmp.lt.u32.totalorder %s992_s9, %s1062_s4 }
  0x3c   : > { %p710_p0 = scmp.lt.u32.totalorder %s708_s8, %s704_s11  ;;  %p712_p2 = scmp.lt.u32.totalorder %s704_s11, %s992_s9 }
  0x3d   : > { %p706_p11 = pnand %p705_p10, %p865_p3 }
  0x3e   : > { %p711_p1 = por %p710_p0, %p709_p13 }
  0x3f   : > { %p707_p12 = pneg %p706_p11 }
  0x40   : > { %p713_p4 = por %p712_p2, %p711_p1 }
  0x42   : > { %p714_p5 = pnand %p713_p4, %p707_p12 }
  0x44   : > { %717 = shalt.err (!%p714_p5)
}
  0x45   : > { %s787_s10 = smov 128   ;;  %s788_s12 = smov 8  }
  0x46   : > { %617 = dma.vmem_to_hbm [thread:$0]  (%p865_p3), %s994_s27, 2048, %s992_s9, %s1006_s13, %s787_s10, %s787_s10, %s788_s12  }
  0x47 PF: > { %p623_p6 = scmp.ge.s32.totalorder %s784_s22, 2  ;;  %s444_s14 = sand.u32 1, %s756_s15  }
  0x48   : > { %s445_s23 = scalar_lea.sflag [#allocation3], %s444_s14 }
  0x49   : > { %p620_p7 = pnand %p623_p6, %p874_p8 }
  0x4b   : > { %751 = dma.done.wait (!%p620_p7), %s445_s23, 2048  }
  0x4c   : > { %753 = vsyncadd (!%p620_p7), %s445_s23, 4294965248  ;;  %s17_s22 = sadd.s32 1, %s784_s22   ;;  %s1065_s15 = smov %s760_s16 }
  0x4d   : > { %p14_p9 = scmp.ge.s32.totalorder %s17_s22, 6   ;;  %s1066_s16 = smov %s764_s17 }
  0x4e   : > { %s1067_s17 = smov %s883_s7  ;;  %s1068_s18 = smov %s776_s20 }
  0x4f   : > { %s1069_s19 = smov %s780_s21  ;;  %s1070_s20 = smov %s1073_s25 }
  0x50   : > { %s1071_s21 = smov %s1077_s26  ;;  %16 = sbr.rel (!%p14_p9) target bundleno = 5 (0x5), region = 74 }
  0x57   :  { %450 = vsyncpa [#allocation3], 1 }
  0x58   :  { %452 = vsyncpa [#allocation3 + $0x1], 1 }

// kernel: _nr_block_forward.4
= control target key start
LH: loop header
LB: loop body
LE: loop exit
PB: predicated region body
PF: predicated region fallthrough
CT: control target
= control target key end

     0   :  { %s4952_s21 = smov 0   ;;  %s4954_s22 = smov 0   ;;  %s6231_s0 = inlined_call_operand.vmem [shape: bf16[4,10,16,64], index: 0, kind: input, shape index: {}]   ;;  %s6232_s1 = inlined_call_operand.vmem [shape: f32[1,64], index: 1, kind: input, shape index: {}]   ;;  %s6233_s2 = inlined_call_operand.vmem [shape: f32[1,64], index: 2, kind: input, shape index: {}]   ;;  %s6234_s3 = inlined_call_operand.vmem [shape: bf16[9,64,64], index: 3, kind: input, shape index: {}]   ;;  %s6235_s4 = inlined_call_operand.vmem [shape: bf16[2,16,16,64], index: 4, kind: output, shape index: {0}]   ;;  %s6236_s5 = inlined_call_operand.vmem [shape: f32[4,1,64], index: 5, kind: output, shape index: {1}]   ;;  %s6237_s6 = inlined_call_operand.vmem [shape: f32[4,1,64], index: 6, kind: output, shape index: {2}]  }
   0x1   :  { %s4956_s23 = smov 0   ;;  %s4958_s24 = smov 0  }
   0x2   :  { %s4960_s25 = smov 0  }
   0x3 LB: > { %s26_s26 = sadd.s32 1, %s4905_s23  ;;  %s29_s27 = sadd.s32 1, %s4909_s24  ;;  %s4913_s25 = sphi %s4960_s25, %s17_s25   ;;  %s4909_s24 = sphi %s4958_s24, %s6265_s24   ;;  %s4905_s23 = sphi %s4956_s23, %s6264_s23   ;;  %s4901_s22 = sphi %s4954_s22, %s6263_s22   ;;  %s4897_s21 = sphi %s4952_s21, %s6262_s21  }
   0x4   : > { %p27_p0 = scmp.ge.s32.totalorder %s26_s26, 2  ;;  %p3901_p1 = scmp.ge.s32.totalorder %s4913_s25, 1 }
   0x5   : > { %p247_p2 = scmp.lt.s32.totalorder %s4913_s25, 5 }
   0x6   : > { %s6267_s26 = smov (%p27_p0, %s26_s26), 0  ;;  %s6269_s27 = smov (!%p27_p0, %s29_s27), %s4909_s24 }
   0x7   : > { %p248_p3 = pnand %p3901_p1, %p247_p2  ;;  %p31_p4 = scmp.ge.s32.totalorder %s6269_s27, 2 }
   0x9   : > { %s6271_s27 = smov (%p31_p4, %s6269_s27), 0  ;;  %251 = sbr.rel (%p248_p3) target bundleno = 528 (0x210), region = 36 }
  0x10   : > { %s3902_s28 = sshll.u32 %s4901_s22, 1  ;;  %s3904_s29 = sshll.u32 %s4897_s21, 3  ;;  %v5001_v0 = vld [vmem:[%s6232_s1] ss:$0 sm:$0xff]  ;;  %vm706_vm0 = vcmask 519168   ;;  %vm714_vm3 = vcmask 516096  }
  0x11   : > { %s295_s30 = sadd.s32 %s4897_s21, %s3902_s28  ;;  %p304_p5 = scmp.lt.s32.totalorder %s4901_s22, 1  ;;  %v5019_v9 = vld [vmem:[%s6233_s2] ss:$0 sm:$0xff]  ;;  %vm707_vm1 = vsmask.f32 7938 }
  0x12   : > { %p296_p6 = scmp.lt.s32.totalorder %s295_s30, 3  ;;  %p306_p7 = scmp.lt.s32.totalorder %s3904_s29, 15  ;;  %vm503_vm2 = vsmask.f32 256  ;;  %v709_v50 = vld [vmem:[#allocation2] sm:$0xf]  ;;  %vm5051_vm4 = vmand %vm706_vm0, %vm707_vm1 }
  0x13   : > { %s6273_s22 = smov (!%p304_p5, %s4901_s22), 1  ;;  %v716_v51 = vld [vmem:[#allocation2 + $0x8] sm:$0x1]  ;;  %v719_v60 = vld [vmem:[#allocation2 + $0xc] sm:$0xf]  ;;  %vm5062_vm5 = vmand %vm714_vm3, %vm503_vm2  ;;  %p3932_p8 = scmp.ne.s32.totalorder %s4897_s21, 0 }
  0x14   : > { %s6275_s30 = smov (!%p296_p6, %s295_s30), 3  ;;  %s6277_s29 = smov (!%p306_p7, %s3904_s29), 15  ;;  %vm504_vm6 = vsmask.f32 4368  ;;  %vm5257_vm8 = vmand %vm714_vm3, %vm707_vm1 }
  0x15   : > { %s4765_s7 = smul.u32 80, %s6275_s30  ;;  %s3906_s8 = sshll.u32 %s6273_s22, 5  ;;  %vm5183_vm7 = vmor %vm503_vm2, %vm504_vm6 }
  0x16   : > { %s3905_s9 = sshll.u32 %s6277_s29, 1  ;;  %s318_s12 = scalar_lea.vmem %s6236_s5, %s6275_s30 }
  0x17   : > { %s4996_s15 = scalar_lea.vmem %s6231_s0, %s4765_s7  ;;  %s310_s16 = sadd.s32 %s3906_s8, %s3905_s9 }
  0x18   : > { %s3907_s19 = sshll.u32 %s310_s16, 2  ;;  %s325_s28 = scalar_lea.vmem %s6237_s6, %s6275_s30  ;;  %v4257_v1 = vld [vmem:[%s4996_s15] sm:$0xff]   ;;  %v4296_v2 = vld [vmem:[%s4996_s15 + $0x8] sm:$0xff]   ;;  %v4297_v3 = vld [vmem:[%s4996_s15 + $0x10] sm:$0xff]  }
  0x19   : > { %s5013_s10 = scalar_lea.vmem %s6235_s4, %s3907_s19  ;;  %v4258_v4 = vunpack.c.l.bf16 %v4257_v1  ;;  %v4259_v5 = vunpack.c.h.bf16 %v4257_v1  ;;  %v4262_v6 = vunpack.c.l.bf16 %v4296_v2  ;;  %v4263_v7 = vunpack.c.h.bf16 %v4296_v2  ;;  %v4298_v8 = vld [vmem:[%s4996_s15 + $0x18] sm:$0xff]   ;;  %v723_v1 = vld [vmem:[#allocation2 + $0x14] sm:$0x1] }
  0x1a   : > { %v4266_v10 = vunpack.c.l.bf16 %v4297_v3  ;;  %v4267_v11 = vunpack.c.h.bf16 %v4297_v3  ;;  %v4270_v12 = vunpack.c.l.bf16 %v4298_v8  ;;  %v4271_v13 = vunpack.c.h.bf16 %v4298_v8  ;;  %v726_v8 = vld [vmem:[#allocation2 + $0x18] sm:$0xf] }
  0x1b   : > { %v376_v14 = vmul.f32 %v4258_v4, %v5001_v0  ;;  %v377_v15 = vmul.f32 %v4259_v5, %v5001_v0  ;;  %v378_v16 = vmul.f32 %v4262_v6, %v5001_v0  ;;  %v379_v17 = vmul.f32 %v4263_v7, %v5001_v0 }
  0x1c   : > { %v380_v18 = vmul.f32 %v4266_v10, %v5001_v0  ;;  %v381_v19 = vmul.f32 %v4267_v11, %v5001_v0  ;;  %v382_v20 = vmul.f32 %v4270_v12, %v5001_v0  ;;  %v383_v21 = vmul.f32 %v4271_v13, %v5001_v0  ;;  %v730_v11 = vld [vmem:[#allocation2 + $0x20] sm:$0x1] }
  0x1d   : > { %v403_v22 = vadd.f32 %v5019_v9, %v376_v14  ;;  %v404_v23 = vadd.f32 %v5019_v9, %v377_v15  ;;  %v405_v24 = vadd.f32 %v5019_v9, %v378_v16  ;;  %v406_v25 = vadd.f32 %v5019_v9, %v379_v17  ;;  %v4299_v16 = vld [vmem:[%s4996_s15 + $0x20] sm:$0xff]   ;;  %v4300_v17 = vld [vmem:[%s4996_s15 + $0x28] sm:$0xff]  }
  0x1e   : > { %v407_v26 = vadd.f32 %v5019_v9, %v380_v18  ;;  %v408_v27 = vadd.f32 %v5019_v9, %v381_v19  ;;  %v409_v28 = vadd.f32 %v5019_v9, %v382_v20  ;;  %v410_v29 = vadd.f32 %v5019_v9, %v383_v21 }
  0x1f   : > { %v423_v30 = vmax.f32 %v403_v22, 0.0  ;;  %v424_v31 = vmax.f32 %v404_v23, 0.0  ;;  %v425_v32 = vmax.f32 %v405_v24, 0.0  ;;  %v426_v33 = vmax.f32 %v406_v25, 0.0  ;;  %v733_v22 = vld [vmem:[#allocation2 + $0x24] sm:$0xf] }
  0x20   : > { %v427_v34 = vmax.f32 %v407_v26, 0.0  ;;  %v428_v35 = vmax.f32 %v408_v27, 0.0  ;;  %v429_v36 = vmax.f32 %v409_v28, 0.0  ;;  %v430_v37 = vmax.f32 %v410_v29, 0.0  ;;  %v4301_v23 = vld [vmem:[%s4996_s15 + $0x30] sm:$0xff]  }
  0x21   : > { %v4220_v38 = vpack.c.bf16 %v423_v30, %v423_v30  ;;  %v5037_v39 = vpack.c.bf16 %v424_v31, %v424_v31  ;;  %v4222_v40 = vpack.c.bf16 %v425_v32, %v425_v32  ;;  %v5039_v41 = vpack.c.bf16 %v426_v33, %v426_v33  ;;  %v737_v29 = vld [vmem:[#allocation2 + $0x2c] sm:$0x1]  ;;  %v4302_v33 = vld [vmem:[%s4996_s15 + $0x38] sm:$0xff]  }
  0x22   : > { %v4224_v42 = vpack.c.bf16 %v427_v34, %v427_v34  ;;  %v5041_v43 = vpack.c.bf16 %v428_v35, %v428_v35  ;;  %v4226_v44 = vpack.c.bf16 %v429_v36, %v429_v36  ;;  %v5043_v45 = vpack.c.bf16 %v430_v37, %v430_v37 }
  0x23   : > { %v507_v46 = vshrl.u32 %v4220_v38, 16  ;;  %v510_v47 = vshll.u32 %v4220_v38, 16  ;;  %v515_v48 = vshrl.u32 %v5037_v39, 16  ;;  %v524_v49 = vshrl.u32 %v4222_v40, 16 }
  0x24   : > { %v527_v52 = vshll.u32 %v4222_v40, 16  ;;  %v532_v53 = vshrl.u32 %v5039_v41, 16  ;;  %v541_v54 = vshrl.u32 %v4224_v42, 16  ;;  %v544_v55 = vshll.u32 %v4224_v42, 16 }
  0x25   : > { %v5047_v56 = vrot.slane %v507_v46, 7  ;;  %v5055_v58 = vrot.slane %v515_v48, 7  ;;  %v5057_v59 = vrot.slane %v524_v49, 7  ;;  %v549_v61 = vshrl.u32 %v5041_v43, 16 }
  0x26   : > { %v5066_v63 = vrot.slane %v532_v53, 7  ;;  %v5068_v2 = vrot.slane %v541_v54, 7  ;;  %v558_v3 = vshrl.u32 %v4226_v44, 16  ;;  %v561_v4 = vshll.u32 %v4226_v44, 16 }
  0x27   : > { %v512_v5 = vor.u32 %v510_v47, %v5047_v56  ;;  %v522_v6 = vrot.slane %v5055_v58, 4  ;;  %v529_v7 = vor.u32 %v527_v52, %v5057_v59  ;;  %v5073_v10 = vrot.slane %v549_v61, 7 }
  0x28   : > { %v539_v12 = vrot.slane %v5066_v63, 4  ;;  %v546_v13 = vor.u32 %v544_v55, %v5068_v2  ;;  %v5077_v14 = vrot.slane %v558_v3, 7  ;;  %v566_v15 = vshrl.u32 %v5043_v45, 16 }
  0x29   : > { %v710_v18 = vsel %vm5051_vm4, %v512_v5, %v709_v50  ;;  %v717_v19 = vsel %vm5062_vm5, %v522_v6, %v716_v51  ;;  %v720_v20 = vsel %vm5051_vm4, %v529_v7, %v719_v60  ;;  %v556_v21 = vrot.slane %v5073_v10, 4 }
  0x2a   : > { %711 = vst [vmem:[#allocation2] sm:$0xf] %v710_v18  ;;  %718 = vst [vmem:[#allocation2 + $0x8] sm:$0x1] %v717_v19  ;;  %v724_v24 = vsel %vm5062_vm5, %v539_v12, %v723_v1  ;;  %v727_v25 = vsel %vm5051_vm4, %v546_v13, %v726_v8  ;;  %v563_v26 = vor.u32 %v561_v4, %v5077_v14  ;;  %v5095_v27 = vrot.slane %v566_v15, 7 }
  0x2b   : > { %721 = vst [vmem:[#allocation2 + $0xc] sm:$0xf] %v720_v20  ;;  %725 = vst [vmem:[#allocation2 + $0x14] sm:$0x1] %v724_v24  ;;  %v731_v28 = vsel %vm5062_vm5, %v556_v21, %v730_v11  ;;  %v4274_v30 = vunpack.c.l.bf16 %v4299_v16  ;;  %v4275_v31 = vunpack.c.h.bf16 %v4299_v16  ;;  %v4278_v32 = vunpack.c.l.bf16 %v4300_v17 }
  0x2c   : > { %728 = vst [vmem:[#allocation2 + $0x18] sm:$0xf] %v727_v25  ;;  %732 = vst [vmem:[#allocation2 + $0x20] sm:$0x1] %v731_v28  ;;  %v734_v34 = vsel %vm5051_vm4, %v563_v26, %v733_v22  ;;  %v573_v35 = vrot.slane %v5095_v27, 4  ;;  %v4279_v36 = vunpack.c.h.bf16 %v4300_v17  ;;  %v4282_v37 = vunpack.c.l.bf16 %v4301_v23 }
  0x2d   : > { %735 = vst [vmem:[#allocation2 + $0x24] sm:$0xf] %v734_v34  ;;  %v384_v38 = vmul.f32 %v4274_v30, %v5001_v0  ;;  %v385_v40 = vmul.f32 %v4275_v31, %v5001_v0  ;;  %v386_v42 = vmul.f32 %v4278_v32, %v5001_v0  ;;  %v4283_v44 = vunpack.c.h.bf16 %v4301_v23  ;;  %v740_v25 = vld [vmem:[#allocation2 + $0x30] sm:$0xf] }
  0x2e   : > { %v738_v46 = vsel %vm5062_vm5, %v573_v35, %v737_v29  ;;  %v387_v47 = vmul.f32 %v4279_v36, %v5001_v0  ;;  %v388_v48 = vmul.f32 %v4282_v37, %v5001_v0  ;;  %v4286_v49 = vunpack.c.l.bf16 %v4302_v33  ;;  %v747_v36 = vld [vmem:[#allocation2 + $0x3c] sm:$0xf] }
  0x2f   : > { %739 = vst [vmem:[#allocation2 + $0x2c] sm:$0x1] %v738_v46  ;;  %v411_v50 = vadd.f32 %v5019_v9, %v384_v38  ;;  %v412_v51 = vadd.f32 %v5019_v9, %v385_v40  ;;  %v413_v52 = vadd.f32 %v5019_v9, %v386_v42  ;;  %v389_v53 = vmul.f32 %v4283_v44, %v5001_v0 }
  0x30   : > { %v414_v54 = vadd.f32 %v5019_v9, %v387_v47  ;;  %v415_v55 = vadd.f32 %v5019_v9, %v388_v48  ;;  %v390_v60 = vmul.f32 %v4286_v49, %v5001_v0  ;;  %v4287_v61 = vunpack.c.h.bf16 %v4302_v33  ;;  %v744_v33 = vld [vmem:[#allocation2 + $0x38] sm:$0x1]  ;;  %v751_v48 = vld [vmem:[#allocation2 + $0x44] sm:$0x1]  ;;  %v754_v49 = vld [vmem:[#allocation2 + $0x48] sm:$0xf] }
  0x31   : > { %v431_v1 = vmax.f32 %v411_v50, 0.0  ;;  %v432_v3 = vmax.f32 %v412_v51, 0.0  ;;  %v433_v4 = vmax.f32 %v413_v52, 0.0  ;;  %v416_v5 = vadd.f32 %v5019_v9, %v389_v53 }
  0x32   : > { %v434_v6 = vmax.f32 %v414_v54, 0.0  ;;  %v435_v7 = vmax.f32 %v415_v55, 0.0  ;;  %v417_v8 = vadd.f32 %v5019_v9, %v390_v60  ;;  %v391_v11 = vmul.f32 %v4287_v61, %v5001_v0  ;;  %v4303_v55 = vld [vmem:[%s4996_s15 + $0x40] sm:$0xff]   ;;  %v4304_v60 = vld [vmem:[%s4996_s15 + $0x48] sm:$0xff]  }
  0x33   : > { %v4228_v12 = vpack.c.bf16 %v431_v1, %v431_v1  ;;  %v5120_v13 = vpack.c.bf16 %v432_v3, %v432_v3  ;;  %v4230_v15 = vpack.c.bf16 %v433_v4, %v433_v4  ;;  %v436_v16 = vmax.f32 %v416_v5, 0.0 }
  0x34   : > { %v5122_v17 = vpack.c.bf16 %v434_v6, %v434_v6  ;;  %v4232_v18 = vpack.c.bf16 %v435_v7, %v435_v7  ;;  %v437_v19 = vmax.f32 %v417_v8, 0.0  ;;  %v418_v20 = vadd.f32 %v5019_v9, %v391_v11  ;;  %v758_v7 = vld [vmem:[#allocation2 + $0x50] sm:$0x1] }
  0x35   : > { %v575_v21 = vshrl.u32 %v4228_v12, 16  ;;  %v578_v22 = vshll.u32 %v4228_v12, 16  ;;  %v583_v23 = vshrl.u32 %v5120_v13, 16  ;;  %v592_v24 = vshrl.u32 %v4230_v15, 16 }
  0x36   : > { %v595_v26 = vshll.u32 %v4230_v15, 16  ;;  %v600_v28 = vshrl.u32 %v5122_v17, 16  ;;  %v609_v29 = vshrl.u32 %v4232_v18, 16  ;;  %v612_v30 = vshll.u32 %v4232_v18, 16  ;;  %v761_v15 = vld [vmem:[#allocation2 + $0x54] sm:$0xf] }
  0x37   : > { %v5127_v31 = vrot.slane %v575_v21, 7  ;;  %v5129_v32 = vrot.slane %v583_v23, 7  ;;  %v5131_v34 = vrot.slane %v592_v24, 7  ;;  %v5133_v35 = vpack.c.bf16 %v436_v16, %v436_v16 }
  0x38   : > { %v5135_v37 = vrot.slane %v600_v28, 7  ;;  %v5137_v38 = vrot.slane %v609_v29, 7  ;;  %v4234_v40 = vpack.c.bf16 %v437_v19, %v437_v19  ;;  %v438_v42 = vmax.f32 %v418_v20, 0.0 }
  0x39   : > { %v580_v44 = vor.u32 %v578_v22, %v5127_v31  ;;  %v590_v46 = vrot.slane %v5129_v32, 4  ;;  %v597_v47 = vor.u32 %v595_v26, %v5131_v34  ;;  %v617_v50 = vshrl.u32 %v5133_v35, 16 }
  0x3a   : > { %v607_v51 = vrot.slane %v5135_v37, 4  ;;  %v614_v52 = vor.u32 %v612_v30, %v5137_v38  ;;  %v626_v53 = vshrl.u32 %v4234_v40, 16  ;;  %v629_v54 = vshll.u32 %v4234_v40, 16 }
  0x3b   : > { %v741_v61 = vsel %vm5051_vm4, %v580_v44, %v740_v25  ;;  %v745_v1 = vsel %vm5062_vm5, %v590_v46, %v744_v33  ;;  %v748_v3 = vsel %vm5051_vm4, %v597_v47, %v747_v36  ;;  %v5153_v4 = vrot.slane %v617_v50, 7 }
  0x3c   : > { %742 = vst [vmem:[#allocation2 + $0x30] sm:$0xf] %v741_v61  ;;  %746 = vst [vmem:[#allocation2 + $0x38] sm:$0x1] %v745_v1  ;;  %v752_v5 = vsel %vm5062_vm5, %v607_v51, %v751_v48  ;;  %v755_v6 = vsel %vm5051_vm4, %v614_v52, %v754_v49  ;;  %v5159_v8 = vrot.slane %v626_v53, 7  ;;  %v5161_v11 = vpack.c.bf16 %v438_v42, %v438_v42 }
  0x3d   : > { %749 = vst [vmem:[#allocation2 + $0x3c] sm:$0xf] %v748_v3  ;;  %753 = vst [vmem:[#allocation2 + $0x44] sm:$0x1] %v752_v5  ;;  %v624_v12 = vrot.slane %v5153_v4, 4  ;;  %v4290_v16 = vunpack.c.l.bf16 %v4303_v55  ;;  %v4291_v18 = vunpack.c.h.bf16 %v4303_v55  ;;  %v4294_v19 = vunpack.c.l.bf16 %v4304_v60 }
  0x3e   : > { %756 = vst [vmem:[#allocation2 + $0x48] sm:$0xf] %v755_v6  ;;  %v631_v20 = vor.u32 %v629_v54, %v5159_v8  ;;  %v634_v21 = vshrl.u32 %v5161_v11, 16  ;;  %v4295_v22 = vunpack.c.h.bf16 %v4304_v60  ;;  %v513_v23 = vrot.slane %v5047_v56, 4  ;;  %v765_v56 = vld [vmem:[#allocation2 + $0x5c] sm:$0x1] }
  0x3f   : > { %v759_v24 = vsel %vm5062_vm5, %v624_v12, %v758_v7  ;;  %v392_v25 = vmul.f32 %v4290_v16, %v5001_v0  ;;  %v393_v26 = vmul.f32 %v4291_v18, %v5001_v0  ;;  %v394_v28 = vmul.f32 %v4294_v19, %v5001_v0 }
  0x40   : > { %760 = vst [vmem:[#allocation2 + $0x50] sm:$0x1] %v759_v24  ;;  %v762_v29 = vsel %vm5051_vm4, %v631_v20, %v761_v15  ;;  %v5174_v30 = vrot.slane %v634_v21, 7  ;;  %v395_v33 = vmul.f32 %v4295_v22, %v5001_v0  ;;  %v518_v36 = vshll.u32 %v5037_v39, 16  ;;  %v768_v20 = vld [vmem:[#allocation2 + $0x60] sm:$0xf] }
  0x41   : > { %763 = vst [vmem:[#allocation2 + $0x54] sm:$0xf] %v762_v29  ;;  %v419_v40 = vadd.f32 %v5019_v9, %v392_v25  ;;  %v420_v42 = vadd.f32 %v5019_v9, %v393_v26  ;;  %v421_v44 = vadd.f32 %v5019_v9, %v394_v28  ;;  %v530_v47 = vrot.slane %v5057_v59, 4  ;;  %v772_v22 = vld [vmem:[#allocation2 + $0x68] sm:$0x1] }
  0x42   : > { %v641_v0 = vrot.slane %v5174_v30, 4  ;;  %v422_v39 = vadd.f32 %v5019_v9, %v395_v33  ;;  %v520_v48 = vor.u32 %v518_v36, %v5055_v58  ;;  %v535_v49 = vshll.u32 %v5039_v41, 16  ;;  %v779_v33 = vld [vmem:[#allocation2 + $0x74] sm:$0x1] }
  0x43   : > { %v439_v50 = vmax.f32 %v419_v40, 0.0  ;;  %v440_v51 = vmax.f32 %v420_v42, 0.0  ;;  %v441_v52 = vmax.f32 %v421_v44, 0.0  ;;  %v547_v53 = vrot.slane %v5068_v2, 4  ;;  %v794_v57 = vld [vmem:[#allocation2 + $0x30] sm:$0x1] }
  0x44   : > { %v766_v54 = vsel %vm5062_vm5, %v641_v0, %v765_v56  ;;  %v442_v55 = vmax.f32 %v422_v39, 0.0  ;;  %v521_v59 = vsel %vm5183_vm7, %v513_v23, %v520_v48  ;;  %v537_v60 = vor.u32 %v535_v49, %v5066_v63  ;;  %v775_v23 = vld [vmem:[#allocation2 + $0x6c] sm:$0xf]  ;;  %v788_v48 = vld [vmem:[#allocation2 + $0x18] sm:$0x1] }
  0x45   : > { %767 = vst [vmem:[#allocation2 + $0x5c] sm:$0x1] %v766_v54  ;;  %v4236_v9 = vpack.c.bf16 %v439_v50, %v439_v50  ;;  %v5198_v61 = vpack.c.bf16 %v440_v51, %v440_v51  ;;  %v4238_v58 = vpack.c.bf16 %v441_v52, %v441_v52  ;;  %713 = vst.msk [vmem:[#allocation2 + $0x4] sm:$0xf] %vm706_vm0, %v521_v59  ;;  %v552_v41 = vshll.u32 %v5041_v43, 16 }
  0x46   : > { %v5202_v1 = vpack.c.bf16 %v442_v55, %v442_v55  ;;  %v538_v2 = vsel %vm5183_vm7, %v530_v47, %v537_v60  ;;  %v564_v3 = vrot.slane %v5077_v14, 4  ;;  %v569_v5 = vshll.u32 %v5043_v45, 16  ;;  %v791_v50 = vld [vmem:[#allocation2 + $0x24] sm:$0x1]  ;;  %v797_v54 = vld [vmem:[#allocation2 + $0x3c] sm:$0x1] }
  0x47   : > { %v643_v6 = vshrl.u32 %v4236_v9, 16  ;;  %v646_v63 = vshll.u32 %v4236_v9, 16  ;;  %v651_v7 = vshrl.u32 %v5198_v61, 16  ;;  %v660_v12 = vshrl.u32 %v4238_v58, 16  ;;  %722 = vst.msk [vmem:[#allocation2 + $0x10] sm:$0xf] %vm706_vm0, %v538_v2 }
  0x48   : > { %v663_v15 = vshll.u32 %v4238_v58, 16  ;;  %v668_v16 = vshrl.u32 %v5202_v1, 16  ;;  %v554_v43 = vor.u32 %v552_v41, %v5073_v10  ;;  %v571_v18 = vor.u32 %v569_v5, %v5095_v27  ;;  %v813_v55 = vld [vmem:[#allocation2 + $0x8] sm:$0x1]  ;;  %v816_v59 = vld [vmem:[#allocation2 + $0x14] sm:$0x1] }
  0x49   : > { %v5213_v19 = vrot.slane %v643_v6, 7  ;;  %v653_v14 = vrot.slane %v651_v7, 7  ;;  %v5215_v21 = vrot.slane %v660_v12, 7  ;;  %v581_v45 = vrot.slane %v5127_v31, 4  ;;  %v819_v58 = vld [vmem:[#allocation2 + $0x20] sm:$0x1] }
  0x4a   : > { %v670_v24 = vrot.slane %v668_v16, 7  ;;  %v555_v25 = vsel %vm5183_vm7, %v547_v53, %v554_v43  ;;  %v572_v26 = vsel %vm5183_vm7, %v564_v3, %v571_v18  ;;  %v586_v10 = vshll.u32 %v5120_v13, 16  ;;  %v782_v13 = vld [vmem:[#allocation2] sm:$0x1]  ;;  %v803_v3 = vld [vmem:[#allocation2 + $0x54] sm:$0x1] }
  0x4b   : > { %v648_v27 = vor.u32 %v646_v63, %v5213_v19  ;;  %v658_v28 = vrot.slane %v653_v14, 4  ;;  %v665_v29 = vor.u32 %v663_v15, %v5215_v21  ;;  %729 = vst.msk [vmem:[#allocation2 + $0x1c] sm:$0xf] %vm706_vm0, %v555_v25  ;;  %736 = vst.msk [vmem:[#allocation2 + $0x28] sm:$0xf] %vm706_vm0, %v572_v26  ;;  %v598_v31 = vrot.slane %v5131_v34, 4 }
  0x4c   : > { %v675_v36 = vrot.slane %v670_v24, 4  ;;  %v588_v56 = vor.u32 %v586_v10, %v5129_v32  ;;  %v603_v40 = vshll.u32 %v5122_v17, 16  ;;  %v615_v42 = vrot.slane %v5137_v38, 4  ;;  %v785_v34 = vld [vmem:[#allocation2 + $0xc] sm:$0x1] }
  0x4d   : > { %v769_v44 = vsel %vm5051_vm4, %v648_v27, %v768_v20  ;;  %v773_v47 = vsel %vm5062_vm5, %v658_v28, %v772_v22  ;;  %v776_v0 = vsel %vm5051_vm4, %v665_v29, %v775_v23  ;;  %v620_v39 = vshll.u32 %v5133_v35, 16  ;;  %v822_v5 = vld [vmem:[#allocation2 + $0x2c] sm:$0x1]  ;;  %v825_v12 = vld [vmem:[#allocation2 + $0x38] sm:$0x1] }
  0x4e   : > { %770 = vst [vmem:[#allocation2 + $0x60] sm:$0xf] %v769_v44  ;;  %774 = vst [vmem:[#allocation2 + $0x68] sm:$0x1] %v773_v47  ;;  %v780_v17 = vsel %vm5062_vm5, %v675_v36, %v779_v33  ;;  %v589_v32 = vsel %vm5183_vm7, %v581_v45, %v588_v56  ;;  %v605_v38 = vor.u32 %v603_v40, %v5135_v37  ;;  %v632_v49 = vrot.slane %v5159_v8, 4 }
  0x4f   : > { %777 = vst [vmem:[#allocation2 + $0x6c] sm:$0xf] %v776_v0  ;;  %781 = vst [vmem:[#allocation2 + $0x74] sm:$0x1] %v780_v17  ;;  %v622_v35 = vor.u32 %v620_v39, %v5153_v4  ;;  %v637_v51 = vshll.u32 %v5161_v11, 16  ;;  %v649_v52 = vrot.slane %v5213_v19, 4 }
  0x50   : > { %743 = vst.msk [vmem:[#allocation2 + $0x34] sm:$0xf] %vm706_vm0, %v589_v32  ;;  %v654_v53 = vshll.u32 %v5198_v61, 16  ;;  %v606_v37 = vsel %vm5183_vm7, %v598_v31, %v605_v38  ;;  %v666_v8 = vrot.slane %v5215_v21, 4  ;;  %v671_v60 = vshll.u32 %v5202_v1, 16 }
  0x51   : > { %v783_v9 = vsel %vm5062_vm5, 0, %v782_v13  ;;  %v800_v4 = vld [vmem:[#allocation2 + $0x48] sm:$0x1]  ;;  %750 = vst.msk [vmem:[#allocation2 + $0x40] sm:$0xf] %vm706_vm0, %v606_v37  ;;  %v623_v61 = vsel %vm5183_vm7, %v615_v42, %v622_v35  ;;  %v639_v41 = vor.u32 %v637_v51, %v5174_v30  ;;  %v786_v1 = vsel %vm5062_vm5, 0, %v785_v34 }
  0x52   : > { %v656_v2 = vor.u32 %v654_v53, %v653_v14  ;;  %784 = vst [vmem:[#allocation2] sm:$0x1] %v783_v9  ;;  %757 = vst.msk [vmem:[#allocation2 + $0x4c] sm:$0xf] %vm706_vm0, %v623_v61  ;;  %v673_v6 = vor.u32 %v671_v60, %v670_v24  ;;  %v789_v63 = vsel %vm5062_vm5, 0, %v788_v48  ;;  %v792_v7 = vsel %vm5062_vm5, 0, %v791_v50 }
  0x53   : > { %787 = vst [vmem:[#allocation2 + $0xc] sm:$0x1] %v786_v1  ;;  %v795_v30 = vsel %vm5062_vm5, 0, %v794_v57  ;;  %v640_v15 = vsel %vm5183_vm7, %v632_v49, %v639_v41  ;;  %790 = vst [vmem:[#allocation2 + $0x18] sm:$0x1] %v789_v63  ;;  %v798_v43 = vsel %vm5062_vm5, 0, %v797_v54 }
  0x54   : > { %v657_v16 = vsel %vm5183_vm7, %v649_v52, %v656_v2  ;;  %793 = vst [vmem:[#allocation2 + $0x24] sm:$0x1] %v792_v7  ;;  %796 = vst [vmem:[#allocation2 + $0x30] sm:$0x1] %v795_v30  ;;  %v801_v18 = vsel %vm5062_vm5, 0, %v800_v4  ;;  %v674_v14 = vsel %vm5183_vm7, %v666_v8, %v673_v6  ;;  %v804_v21 = vsel %vm5062_vm5, 0, %v803_v3 }
  0x55   : > { %v828_v19 = vld [vmem:[#allocation2 + $0x44] sm:$0x1]  ;;  %v831_v20 = vld [vmem:[#allocation2 + $0x50] sm:$0x1]  ;;  %764 = vst.msk [vmem:[#allocation2 + $0x58] sm:$0xf] %vm706_vm0, %v640_v15 }
  0x56   : > { %771 = vst.msk [vmem:[#allocation2 + $0x64] sm:$0xf] %vm706_vm0, %v657_v16  ;;  %799 = vst [vmem:[#allocation2 + $0x3c] sm:$0x1] %v798_v43  ;;  %v814_v45 = vsel %vm5257_vm8, 0, %v813_v55  ;;  %v817_v22 = vsel %vm5257_vm8, 0, %v816_v59 }
  0x57   : > { %802 = vst [vmem:[#allocation2 + $0x48] sm:$0x1] %v801_v18  ;;  %v834_v23 = vld [vmem:[#allocation2 + $0x5c] sm:$0x1]  ;;  %778 = vst.msk [vmem:[#allocation2 + $0x70] sm:$0xf] %vm706_vm0, %v674_v14 }
  0x58   : > { %805 = vst [vmem:[#allocation2 + $0x54] sm:$0x1] %v804_v21  ;;  %v806_v24 = vld [vmem:[#allocation2 + $0x60] sm:$0x1]  ;;  %v809_v25 = vld [vmem:[#allocation2 + $0x6c] sm:$0x1] }
  0x59   : > { %815 = vst [vmem:[#allocation2 + $0x8] sm:$0x1] %v814_v45  ;;  %818 = vst [vmem:[#allocation2 + $0x14] sm:$0x1] %v817_v22  ;;  %v820_v46 = vsel %vm5257_vm8, 0, %v819_v58  ;;  %v823_v26 = vsel %vm5257_vm8, 0, %v822_v5 }
  0x5a   : > { %v807_v10 = vsel %vm5062_vm5, 0, %v806_v24  ;;  %v810_v27 = vsel %vm5062_vm5, 0, %v809_v25  ;;  %821 = vst [vmem:[#allocation2 + $0x20] sm:$0x1] %v820_v46  ;;  %824 = vst [vmem:[#allocation2 + $0x2c] sm:$0x1] %v823_v26 }
  0x5b   : > { %v826_v28 = vsel %vm5257_vm8, 0, %v825_v12  ;;  %v829_v29 = vsel %vm5257_vm8, 0, %v828_v19  ;;  %v837_v33 = vld [vmem:[#allocation2 + $0x68] sm:$0x1]  ;;  %808 = vst [vmem:[#allocation2 + $0x60] sm:$0x1] %v807_v10 }
  0x5c   : > { %811 = vst [vmem:[#allocation2 + $0x6c] sm:$0x1] %v810_v27  ;;  %827 = vst [vmem:[#allocation2 + $0x38] sm:$0x1] %v826_v28  ;;  %v832_v31 = vsel %vm5257_vm8, 0, %v831_v20  ;;  %v835_v62 = vsel %vm5257_vm8, 0, %v834_v23 }
  0x5d   : > { %830 = vst [vmem:[#allocation2 + $0x44] sm:$0x1] %v829_v29  ;;  %v838_v36 = vsel %vm5257_vm8, 0, %v837_v33  ;;  %v840_v56 = vld [vmem:[#allocation2 + $0x74] sm:$0x1]  ;;  %846 = sbr.rel (%p3932_p8) target bundleno = 100 (0x64), region = 40 }
  0x5e   : > { %833 = vst [vmem:[#allocation2 + $0x50] sm:$0x1] %v832_v31  ;;  %836 = vst [vmem:[#allocation2 + $0x5c] sm:$0x1] %v835_v62  ;;  %v841_v40 = vsel %vm5257_vm8, 0, %v840_v56  ;;  %v4915_v42 = vmov (!%p3932_p8), 0  }
  0x5f   : > { %839 = vst [vmem:[#allocation2 + $0x68] sm:$0x1] %v838_v36  ;;  %842 = vst [vmem:[#allocation2 + $0x74] sm:$0x1] %v841_v40 }
  0x60   : > { %847 = vst.msk [vmem:[#allocation2] sm:$0xf] (!%p3932_p8), %vm706_vm0, %v4915_v42  ;;  %848 = vst.msk [vmem:[#allocation2 + $0x4] sm:$0xf] (!%p3932_p8), %vm706_vm0, %v4915_v42 }
  0x61   : > { %850 = vst.msk [vmem:[#allocation2 + $0x8] sm:$0x1] (!%p3932_p8), %vm714_vm3, %v4915_v42 }
  0x64 PF: > { %p3933_p9 = scmp.ne.s32.totalorder %s4897_s21, 1 }
  0x65   : > { %v4916_v13 = vmov (!%p3933_p9), 0  }
  0x66   : > { %854 = sbr.rel (%p3933_p9) target bundleno = 109 (0x6d), region = 44  ;;  %856 = vst.msk [vmem:[#allocation2 + $0x6c] sm:$0xf] (!%p3933_p9), %vm706_vm0, %v4916_v13  ;;  %857 = vst.msk [vmem:[#allocation2 + $0x70] sm:$0xf] (!%p3933_p9), %vm706_vm0, %v4916_v13 }
  0x67   : > { %859 = vst.msk [vmem:[#allocation2 + $0x74] sm:$0x1] (!%p3933_p9), %vm714_vm3, %v4916_v13 }
  0x6d PF: > { %v4808_v44 = vld [vmem:[%s6234_s3 + $0x20] sm:$0xff]   ;;  %v4810_v0 = vld [vmem:[%s6234_s3 + $0x28] sm:$0xff]   ;;  %v4812_v34 = vld [vmem:[%s6234_s3 + $0x30] sm:$0xff]   ;;  %vm892_vm9 = vsmask.f32 3328  ;;  %vm1144_vm11 = vcmask 523264  }
  0x6e   : > { %v4809_v47 = vld [vmem:[%s6234_s3 + $0x80] sm:$0xff]   ;;  %4413 = vmatprep.subr.bf16.mxu1 %v4808_v44  ;;  %v4811_v39 = vld [vmem:[%s6234_s3 + $0x88] sm:$0xff]   ;;  %v4813_v48 = vld [vmem:[%s6234_s3 + $0x90] sm:$0xff]   ;;  %vm893_vm10 = vsmask.f32 7440  ;;  %vm1475_vm13 = vcmask 1042432  }
  0x6f   : > { %4509 = vmatprep.subr.bf16.mxu0 %v4809_v47  ;;  %4414 = vmatpush3.bf16.msra.mxu1 %v4808_v44  ;;  %v4814_v17 = vld [vmem:[%s6234_s3 + $0x38] sm:$0xff]   ;;  %v5345_v38 = vld [vmem:[#allocation2] sm:$0xf]  ;;  %v5347_v49 = vld [vmem:[#allocation2 + $0x4] sm:$0xf]  ;;  %vm1476_vm14 = vcmask 1046532  }
  0x70   : > { %4510 = vmatpush3.bf16.msra.mxu0 %v4809_v47  ;;  %4415 = vmatprep.subr.bf16.mxu1 %v4810_v0  ;;  %v4815_v32 = vld [vmem:[%s6234_s3 + $0x98] sm:$0xff]   ;;  %v884_v50 = vld [vmem:[#allocation2 + $0x8] sm:$0x1]  ;;  %v896_v57 = vshrl.u32 %v5345_v38, 16  ;;  %v899_v35 = vshll.u32 %v5345_v38, 16  ;;  %v905_v51 = vshll.u32 %v5347_v49, 16  ;;  %vm5368_vm12 = vmor %vm892_vm9, %vm893_vm10 }
  0x71   : > { %4511 = vmatprep.subr.bf16.mxu0 %v4811_v39  ;;  %v909_v52 = vshrl.u32 %v5347_v49, 16  ;;  %v915_v53 = vshll.u32 %v884_v50, 16  ;;  %v1955_v54 = vld [vmem:[#allocation2 + $0xc] sm:$0xf]  ;;  %v5353_v37 = vld [vmem:[#allocation2 + $0x10] sm:$0xf]  ;;  %vm5519_vm15 = vmor %vm1475_vm13, %vm1476_vm14 }
  0x72   : > { %v898_v55 = vrot.slane %v896_v57, 4  ;;  %v901_v59 = vrot.slane %v899_v35, 5  ;;  %v5355_v8 = vld [vmem:[#allocation2 + $0x14] sm:$0x1]  ;;  %v907_v60 = vrot.slane %v905_v51, 5  ;;  %v1980_v4 = vshrl.u32 %v1955_v54, 16 }
  0x73   : > { %4416 = vmatpush3.bf16.msra.mxu1 %v4810_v0  ;;  %v911_v9 = vrot.slane %v909_v52, 4  ;;  %v1983_v11 = vshll.u32 %v1955_v54, 16  ;;  %v1989_v61 = vshll.u32 %v5353_v37, 16  ;;  %v1993_v41 = vshrl.u32 %v5353_v37, 16  ;;  %v5359_v2 = vld [vmem:[#allocation2 + $0xc] sm:$0xf] }
  0x74   : > { %4512 = vmatpush3.bf16.msra.mxu0 %v4811_v39  ;;  %4417 = vmatprep.subr.bf16.mxu1 %v4812_v34  ;;  %v902_v58 = vor.u32 %v901_v59, %v898_v55  ;;  %v5364_v1 = vld [vmem:[%s6234_s3] sm:$0xff]   ;;  %v917_v6 = vrot.slane %v915_v53, 5  ;;  %v1982_v63 = vrot.slane %v1980_v4, 4  ;;  %v1999_v7 = vshll.u32 %v5355_v8, 16  ;;  %v5373_v30 = vld [vmem:[#allocation2 + $0x10] sm:$0xf] }
  0x75   : > { %4513 = vmatprep.subr.bf16.mxu0 %v4813_v48  ;;  %v912_v5 = vor.u32 %v911_v9, %v907_v60  ;;  %v5378_v12 = vld [vmem:[%s6234_s3 + $0xa0] sm:$0xff]   ;;  %v1985_v16 = vrot.slane %v1983_v11, 5  ;;  %v1991_v43 = vrot.slane %v1989_v61, 5  ;;  %v1995_v18 = vrot.slane %v1993_v41, 4  ;;  %v5385_v24 = vld [vmem:[#allocation2 + $0x14] sm:$0x1] }
  0x76   : > { %v903_v15 = vrot.slane %v902_v58, 4  ;;  %v2001_v20 = vrot.slane %v1999_v7, 5  ;;  %v2399_v14 = vrot.slane %v5353_v37, 5  ;;  %v920_v21 = vshrl.u32 %v5359_v2, 16  ;;  %v1958_v46 = vld [vmem:[#allocation2 + $0x18] sm:$0xf] }
  0x77   : > { %4418 = vmatpush3.bf16.msra.mxu1 %v4812_v34  ;;  %v913_v19 = vrot.slane %v912_v5, 4  ;;  %v1986_v22 = vor.u32 %v1985_v16, %v1982_v63  ;;  %v1996_v23 = vor.u32 %v1995_v18, %v1991_v43  ;;  %v923_v25 = vshll.u32 %v5359_v2, 16  ;;  %v5393_v29 = vld [vmem:[#allocation2 + $0x1c] sm:$0xf]  ;;  %v5402_v39 = vld [vmem:[#allocation2 + $0x20] sm:$0x1] }
  0x78   : > { %4514 = vmatpush3.bf16.msra.mxu0 %v4813_v48  ;;  %4419 = vmatprep.subr.bf16.mxu1 %v4814_v17  ;;  %v908_v45 = vsel %vm5368_vm12, %v903_v15, %v907_v60  ;;  %v922_v10 = vrot.slane %v920_v21, 4  ;;  %v929_v27 = vshll.u32 %v5373_v30, 16  ;;  %v933_v28 = vshrl.u32 %v5373_v30, 16  ;;  %v5406_v52 = vld [vmem:[#allocation2 + $0x18] sm:$0xf] }
  0x79   : > { %4515 = vmatprep.subr.bf16.mxu0 %v4815_v32  ;;  %v918_v26 = vsel %vm5368_vm12, %v913_v19, %v917_v6  ;;  %v1987_v31 = vrot.slane %v1986_v22, 4  ;;  %v1997_v62 = vrot.slane %v1996_v23, 4  ;;  %v925_v36 = vrot.slane %v923_v25, 5  ;;  %v5411_v60 = vld [vmem:[#allocation2 + $0x1c] sm:$0xf] }
  0x7a   : > { %v3942_v33 = vcombine.low %v908_v45, %v918_v26  ;;  %v2402_v56 = vrot.slane %v5355_v8, 5  ;;  %v931_v40 = vrot.slane %v929_v27, 5  ;;  %v935_v42 = vrot.slane %v933_v28, 4  ;;  %v5415_v61 = vld [vmem:[#allocation2 + $0x20] sm:$0x1] }
  0x7b   : > { %4420 = vmatpush3.bf16.msra.mxu1 %v4814_v17  ;;  %v939_v13 = vshll.u32 %v5385_v24, 16  ;;  %v1992_v44 = vsel %vm5368_vm12, %v1987_v31, %v1991_v43  ;;  %v2002_v47 = vsel %vm5368_vm12, %v1997_v62, %v2001_v20  ;;  %v926_v0 = vor.u32 %v925_v36, %v922_v10  ;;  %v1961_v7 = vld [vmem:[#allocation2 + $0x24] sm:$0xf]  ;;  %v5425_v19 = vld [vmem:[#allocation2 + $0x28] sm:$0xf] }
  0x7c   : > { %4516 = vmatpush3.bf16.msra.mxu0 %v4815_v32  ;;  %4437 = vmatprep.subr.bf16.mxu1 %v5364_v1  ;;  %v4054_v34 = vcombine.low %v1992_v44, %v2002_v47  ;;  %v936_v48 = vor.u32 %v935_v42, %v931_v40  ;;  %v2004_v32 = vshrl.u32 %v1958_v46, 16  ;;  %v2007_v57 = vshll.u32 %v1958_v46, 16  ;;  %v4819_v20 = vld [vmem:[%s6234_s3 + $0x8] sm:$0xff]   ;;  %v5436_v46 = vld [vmem:[#allocation2 + $0x24] sm:$0xf]  ;;  %v4822_v47 = vld [vmem:[%s6234_s3 + $0x10] sm:$0xff]  }
  0x7d   : > { %4533 = vmatprep.subr.bf16.mxu0 %v5378_v12  ;;  %4421 = vmatprep.mubr.msk.bf16.mxu1 %vm1144_vm11, %v3942_v33  ;;  %v941_v17 = vrot.slane %v939_v13, 5  ;;  %v927_v50 = vrot.slane %v926_v0, 4  ;;  %v2013_v35 = vshll.u32 %v5393_v29, 16  ;;  %v2017_v51 = vshrl.u32 %v5393_v29, 16  ;;  %v5434_v25 = vld [vmem:[#allocation2 + $0x2c] sm:$0x1] }
  0x7e   : > { %4517 = vmatprep.mubr.msk.bf16.mxu0 %vm1144_vm11, %v4054_v34  ;;  %v937_v53 = vrot.slane %v936_v48, 4  ;;  %v2006_v54 = vrot.slane %v2004_v32, 4  ;;  %v2023_v55 = vshll.u32 %v5402_v39, 16  ;;  %v2406_v59 = vrot.slane %v5393_v29, 5  ;;  %v5451_v32 = vld [vmem:[#allocation2 + $0x28] sm:$0xf] }
  0x7f   : > { %v932_v9 = vsel %vm5368_vm12, %v927_v50, %v931_v40  ;;  %v2009_v4 = vrot.slane %v2007_v57, 5  ;;  %v2015_v58 = vrot.slane %v2013_v35, 5  ;;  %v2019_v11 = vrot.slane %v2017_v51, 4  ;;  %v5455_v51 = vld [vmem:[#allocation2 + $0x2c] sm:$0x1] }
  0x80   : > { %v942_v41 = vsel %vm5368_vm12, %v937_v53, %v941_v17  ;;  %v2025_v5 = vrot.slane %v2023_v55, 5  ;;  %v5421_v6 = vrot.slane %v2406_v59, 4  ;;  %v2409_v63 = vrot.slane %v5402_v39, 5 }
  0x81   : > { %v3943_v15 = vcombine.low %v932_v9, %v942_v41  ;;  %v2010_v16 = vor.u32 %v2009_v4, %v2006_v54  ;;  %v2020_v43 = vor.u32 %v2019_v11, %v2015_v58  ;;  %v944_v18 = vshrl.u32 %v5406_v52, 16  ;;  %v1964_v54 = vld [vmem:[#allocation2 + $0x30] sm:$0xf] }
  0x82   : > { %v947_v21 = vshll.u32 %v5406_v52, 16  ;;  %v953_v45 = vshll.u32 %v5411_v60, 16  ;;  %v957_v22 = vshrl.u32 %v5411_v60, 16  ;;  %v963_v23 = vshll.u32 %v5415_v61, 16 }
  0x83   : > { %4422 = vmatmul.mubr.msk.bf16.vlgmr.msra.gmra.mrb[0].mxu1 %vm1144_vm11, %v3943_v15  ;;  %v2011_v26 = vrot.slane %v2010_v16, 4  ;;  %v2021_v10 = vrot.slane %v2020_v43, 4  ;;  %v946_v27 = vrot.slane %v944_v18, 4  ;;  %v2028_v28 = vshrl.u32 %v1961_v7, 16 }
  0x84   : > { %4438 = vmatpush3.bf16.msra.mxu1 %v5364_v1  ;;  %v949_v33 = vrot.slane %v947_v21, 5  ;;  %v955_v31 = vrot.slane %v953_v45, 5  ;;  %v959_v62 = vrot.slane %v957_v22, 4  ;;  %v965_v36 = vrot.slane %v963_v23, 5  ;;  %v4818_v1 = vld [vmem:[%s6234_s3 + $0xa8] sm:$0xff]  }
  0x85   : > { %v2016_v40 = vsel %vm5368_vm12, %v2011_v26, %v2015_v58  ;;  %v2026_v42 = vsel %vm5368_vm12, %v2021_v10, %v2025_v5  ;;  %v2030_v13 = vrot.slane %v2028_v28, 4  ;;  %v2031_v44 = vshll.u32 %v1961_v7, 16  ;;  %4439 = vmatprep.subr.bf16.mxu1 %v4819_v20  ;;  %v5473_v26 = vld [vmem:[#allocation2 + $0x34] sm:$0xf] }
  0x86   : > { %v4055_v0 = vcombine.low %v2016_v40, %v2026_v42  ;;  %v950_v34 = vor.u32 %v949_v33, %v946_v27  ;;  %v960_v48 = vor.u32 %v959_v62, %v955_v31  ;;  %v2037_v17 = vshll.u32 %v5425_v19, 16  ;;  %v5476_v33 = vld [vmem:[#allocation2 + $0x38] sm:$0x1] }
  0x87   : > { %v2033_v50 = vrot.slane %v2031_v44, 5  ;;  %v2041_v57 = vshrl.u32 %v5425_v19, 16  ;;  %v2047_v35 = vshll.u32 %v5434_v25, 16  ;;  %v968_v53 = vshrl.u32 %v5436_v46, 16  ;;  %v4821_v62 = vld [vmem:[%s6234_s3 + $0xb8] sm:$0xff]  }
  0x88   : > { %4518 = vmatmul.mubr.msk.bf16.vlgmr.msra.gmra.mrb[0].mxu0 %vm1144_vm11, %v4055_v0  ;;  %v951_v55 = vrot.slane %v950_v34, 4  ;;  %v961_v9 = vrot.slane %v960_v48, 4  ;;  %v2039_v4 = vrot.slane %v2037_v17, 5  ;;  %v971_v58 = vshll.u32 %v5436_v46, 16  ;;  %4440 = vmatpush3.bf16.msra.mxu1 %v4819_v20  ;;  %v4824_v20 = vld [vmem:[%s6234_s3 + $0x18] sm:$0xff]   ;;  %v5489_v0 = vld [vmem:[%s6234_s3 + $0x40] sm:$0xff]  }
  0x89   : > { %4534 = vmatpush3.bf16.msra.mxu0 %v5378_v12  ;;  %v2034_v11 = vor.u32 %v2033_v50, %v2030_v13  ;;  %v2043_v41 = vrot.slane %v2041_v57, 4  ;;  %v2049_v5 = vrot.slane %v2047_v35, 5  ;;  %v970_v7 = vrot.slane %v968_v53, 4  ;;  %4441 = vmatprep.subr.bf16.mxu1 %v4822_v47  ;;  %v4820_v12 = vld [vmem:[%s6234_s3 + $0xb0] sm:$0xff]  }
  0x8a   : > { %4535 = vmatprep.subr.bf16.mxu0 %v4818_v1  ;;  %v956_v15 = vsel %vm5368_vm12, %v951_v55, %v955_v31  ;;  %v966_v16 = vsel %vm5368_vm12, %v961_v9, %v965_v36  ;;  %v973_v43 = vrot.slane %v971_v58, 5  ;;  %v977_v18 = vshll.u32 %v5451_v32, 16  ;;  %v5484_v44 = vld [vmem:[#allocation2 + $0x30] sm:$0xf]  ;;  %v5500_v58 = vld [vmem:[#allocation2 + $0x38] sm:$0x1] }
  0x8b   : > { %v3944_v21 = vcombine.low %v956_v15, %v966_v16  ;;  %v2035_v45 = vrot.slane %v2034_v11, 4  ;;  %v2044_v22 = vor.u32 %v2043_v41, %v2039_v4  ;;  %v981_v23 = vshrl.u32 %v5451_v32, 16  ;;  %v5506_v15 = vld [vmem:[%s6234_s3 + $0xc0] sm:$0xff]  }
  0x8c   : > { %v974_v10 = vor.u32 %v973_v43, %v970_v7  ;;  %v979_v27 = vrot.slane %v977_v18, 5  ;;  %v987_v28 = vshll.u32 %v5455_v51, 16  ;;  %v2052_v31 = vshrl.u32 %v1964_v54, 16  ;;  %4442 = vmatpush3.bf16.msra.mxu1 %v4822_v47 }
  0x8d   : > { %4536 = vmatpush3.bf16.msra.mxu0 %v4818_v1  ;;  %4425 = vmatprep.mubr.msk.bf16.mxu1 %vm1144_vm11, %v3944_v21  ;;  %v2040_v36 = vsel %vm5368_vm12, %v2035_v45, %v2039_v4  ;;  %v2045_v40 = vrot.slane %v2044_v22, 4  ;;  %v983_v42 = vrot.slane %v981_v23, 4  ;;  %v2055_v13 = vshll.u32 %v1964_v54, 16  ;;  %v5492_v1 = vld [vmem:[#allocation2 + $0x34] sm:$0xf] }
  0x8e   : > { %v975_v34 = vrot.slane %v974_v10, 4  ;;  %v989_v48 = vrot.slane %v987_v28, 5  ;;  %v2054_v17 = vrot.slane %v2052_v31, 4  ;;  %v2061_v47 = vshll.u32 %v5473_v26, 16  ;;  %4537 = vmatprep.subr.bf16.mxu0 %v4820_v12  ;;  %4443 = vmatprep.subr.bf16.mxu1 %v4824_v20  ;;  %v5515_v10 = vld [vmem:[#allocation2 + $0x3c] sm:$0xf] }
  0x8f   : > { %v2050_v50 = vsel %vm5368_vm12, %v2045_v40, %v2049_v5  ;;  %v984_v57 = vor.u32 %v983_v42, %v979_v27  ;;  %v2057_v35 = vrot.slane %v2055_v13, 5  ;;  %v2065_v53 = vshrl.u32 %v5473_v26, 16 }
  0x90   : > { %v4056_v54 = vcombine.low %v2040_v36, %v2050_v50  ;;  %v980_v55 = vsel %vm5368_vm12, %v975_v34, %v979_v27  ;;  %v2063_v9 = vrot.slane %v2061_v47, 5  ;;  %v2071_v4 = vshll.u32 %v5476_v33, 16  ;;  %4444 = vmatpush3.bf16.msra.mxu1 %v4824_v20 }
  0x91   : > { %v985_v11 = vrot.slane %v984_v57, 4  ;;  %v2058_v41 = vor.u32 %v2057_v35, %v2054_v17  ;;  %v2067_v7 = vrot.slane %v2065_v53, 4  ;;  %4538 = vmatpush3.bf16.msra.mxu0 %v4820_v12  ;;  %v992_v5 = vshrl.u32 %v5484_v44, 16  ;;  %4461 = vmatprep.subr.bf16.mxu1 %v5489_v0  ;;  %v2365_v12 = vld [vmem:[#allocation2 + $0xc] sm:$0xe] }
  0x92   : > { %4521 = vmatprep.mubr.msk.bf16.mxu0 %vm1144_vm11, %v4056_v54  ;;  %v2073_v16 = vrot.slane %v2071_v4, 5  ;;  %4539 = vmatprep.subr.bf16.mxu0 %v4821_v62  ;;  %v995_v43 = vshll.u32 %v5484_v44, 16  ;;  %v1001_v18 = vshll.u32 %v5492_v1, 16  ;;  %v1005_v20 = vshrl.u32 %v5492_v1, 16  ;;  %v5526_v17 = vld [vmem:[#allocation2 + $0x40] sm:$0xf] }
  0x93   : > { %v990_v21 = vsel %vm5368_vm12, %v985_v11, %v989_v48  ;;  %v2059_v45 = vrot.slane %v2058_v41, 4  ;;  %v2068_v22 = vor.u32 %v2067_v7, %v2063_v9  ;;  %v994_v23 = vrot.slane %v992_v5, 4  ;;  %v5531_v35 = vld [vmem:[#allocation2 + $0x44] sm:$0x1]  ;;  %v2366_v54 = vld [vmem:[#allocation2 + $0x18] sm:$0xe] }
  0x94   : > { %v3945_v27 = vcombine.low %v980_v55, %v990_v21  ;;  %v997_v28 = vrot.slane %v995_v43, 5  ;;  %v1003_v31 = vrot.slane %v1001_v18, 5  ;;  %v1007_v36 = vrot.slane %v1005_v20, 4  ;;  %v5546_v43 = vld [vmem:[#allocation2 + $0x48] sm:$0xf] }
  0x95   : > { %v2064_v42 = vsel %vm5368_vm12, %v2059_v45, %v2063_v9  ;;  %v2069_v13 = vrot.slane %v2068_v22, 4  ;;  %4540 = vmatpush3.bf16.msra.mxu0 %v4821_v62  ;;  %v1011_v34 = vshll.u32 %v5500_v58, 16  ;;  %v4074_v48 = vrot.slane %v2365_v12, 9 }
  0x96   : > { %4426 = vmatmul.mubr.msk.bf16.gmra.mrb[4].mxu1 %vm1144_vm11, %v3945_v27  ;;  %v998_v47 = vor.u32 %v997_v28, %v994_v23  ;;  %v1008_v50 = vor.u32 %v1007_v36, %v1003_v31  ;;  %v2401_v57 = vrot.slane %v2399_v14, 4  ;;  %v1016_v53 = vshrl.u32 %v5515_v10, 16  ;;  %4557 = vmatprep.subr.bf16.mxu0 %v5506_v15  ;;  %v5559_v28 = vld [vmem:[#allocation2 + $0x50] sm:$0x1] }
  0x97   : > { %v2074_v62 = vsel %vm5368_vm12, %v2069_v13, %v2073_v16  ;;  %v1013_v55 = vrot.slane %v1011_v34, 5  ;;  %v2400_v9 = vsel %vm5519_vm15, %v4074_v48, %v2399_v14  ;;  %v1019_v4 = vshll.u32 %v5515_v10, 16 }
  0x98   : > { %v4057_v11 = vcombine.low %v2064_v42, %v2074_v62  ;;  %v999_v41 = vrot.slane %v998_v47, 4  ;;  %v1009_v7 = vrot.slane %v1008_v50, 4  ;;  %v2403_v5 = vsel %vm5519_vm15, %v2401_v57, %v2402_v56  ;;  %v5556_v56 = vld [vmem:[#allocation2 + $0x4c] sm:$0xf]  ;;  %v2367_v57 = vld [vmem:[#allocation2 + $0x24] sm:$0xe] }
  0x99   : > { %v4090_v18 = vcombine.low %v2400_v9, %v2403_v5  ;;  %v1018_v16 = vrot.slane %v1016_v53, 4  ;;  %v1021_v20 = vrot.slane %v1019_v4, 5  ;;  %v1025_v37 = vshll.u32 %v5526_v17, 16 }
  0x9a   : > { %4522 = vmatmul.mubr.msk.bf16.gmra.mrb[4].mxu0 %vm1144_vm11, %v4057_v11  ;;  %v1004_v14 = vsel %vm5368_vm12, %v999_v41, %v1003_v31  ;;  %v1014_v12 = vsel %vm5368_vm12, %v1009_v7, %v1013_v55  ;;  %v1029_v8 = vshrl.u32 %v5526_v17, 16  ;;  %v1035_v21 = vshll.u32 %v5531_v35, 16 }
  0x9b   : > { %v3946_v45 = vcombine.low %v1004_v14, %v1014_v12  ;;  %4541 = vmatprep.mubr.msk.bf16.mxu0 %vm1144_vm11, %v4090_v18  ;;  %v1022_v22 = vor.u32 %v1021_v20, %v1018_v16  ;;  %v1027_v23 = vrot.slane %v1025_v37, 5  ;;  %v4075_v27 = vrot.slane %v2366_v54, 9  ;;  %v5585_v20 = vld [vmem:[#allocation2 + $0x58] sm:$0xf] }
  0x9c   : > { %v1031_v36 = vrot.slane %v1029_v8, 4  ;;  %v1037_v42 = vrot.slane %v1035_v21, 5  ;;  %v2410_v31 = vsel %vm5519_vm15, %v5421_v6, %v2409_v63  ;;  %v1040_v13 = vshrl.u32 %v5546_v43, 16  ;;  %v5575_v63 = vld [vmem:[#allocation2 + $0x54] sm:$0xf] }
  0x9d   : > { %4429 = vmatprep.mubr.msk.bf16.mxu1 %vm1144_vm11, %v3946_v45  ;;  %v1023_v34 = vrot.slane %v1022_v22, 4  ;;  %v2407_v48 = vsel %vm5519_vm15, %v4075_v27, %v2406_v59  ;;  %v1043_v47 = vshll.u32 %v5546_v43, 16  ;;  %v1049_v50 = vshll.u32 %v5556_v56, 16  ;;  %v4825_v59 = vld [vmem:[%s6234_s3 + $0xc8] sm:$0xff]   ;;  %v5593_v45 = vld [vmem:[#allocation2 + $0x5c] sm:$0x1] }
  0x9e   : > { %v1032_v39 = vor.u32 %v1031_v36, %v1027_v23  ;;  %v4091_v53 = vcombine.low %v2407_v48, %v2410_v31  ;;  %v1042_v54 = vrot.slane %v1040_v13, 4  ;;  %v1053_v6 = vshrl.u32 %v5556_v56, 16 }
  0x9f   : > { %v1028_v62 = vsel %vm5368_vm12, %v1023_v34, %v1027_v23  ;;  %v1045_v55 = vrot.slane %v1043_v47, 5  ;;  %v1051_v29 = vrot.slane %v1049_v50, 5  ;;  %v1059_v9 = vshll.u32 %v5559_v28, 16  ;;  %v4829_v34 = vld [vmem:[%s6234_s3 + $0xd0] sm:$0xff]  }
  0xa0   : > { %v1033_v4 = vrot.slane %v1032_v39, 4  ;;  %v1055_v11 = vrot.slane %v1053_v6, 4  ;;  %v4076_v41 = vrot.slane %v2367_v57, 9  ;;  %v2413_v7 = vrot.slane %v5425_v19, 5  ;;  %v2368_v19 = vld [vmem:[#allocation2 + $0x30] sm:$0xe] }
  0xa1   : > { %v1046_v5 = vor.u32 %v1045_v55, %v1042_v54  ;;  %v1061_v18 = vrot.slane %v1059_v9, 5  ;;  %v2416_v16 = vrot.slane %v5434_v25, 5  ;;  %v1064_v37 = vshrl.u32 %v5575_v63, 16  ;;  %v5608_v57 = vld [vmem:[#allocation2 + $0x40] sm:$0xf] }
  0xa2   : > { %v1038_v14 = vsel %vm5368_vm12, %v1033_v4, %v1037_v42  ;;  %4542 = vmatmul.mubr.msk.bf16.vlgmr.msra.gmra.mrb[0].mxu0 %vm1144_vm11, %v4091_v53  ;;  %v1056_v12 = vor.u32 %v1055_v11, %v1051_v29  ;;  %v2414_v8 = vsel %vm5519_vm15, %v4076_v41, %v2413_v7  ;;  %v2415_v21 = vrot.slane %v2413_v7, 4  ;;  %v2369_v39 = vld [vmem:[#allocation2 + $0x3c] sm:$0xe]  ;;  %v5612_v55 = vld [vmem:[#allocation2 + $0x44] sm:$0x1] }
  0xa3   : > { %v3947_v22 = vcombine.low %v1028_v62, %v1038_v14  ;;  %4558 = vmatpush3.bf16.msra.mxu0 %v5506_v15  ;;  %v1047_v25 = vrot.slane %v1046_v5, 4  ;;  %v1066_v23 = vrot.slane %v1064_v37, 4  ;;  %v1067_v27 = vshll.u32 %v5575_v63, 16  ;;  %v4833_v37 = vld [vmem:[%s6234_s3 + $0xd8] sm:$0xff]  }
  0xa4   : > { %v1057_v36 = vrot.slane %v1056_v12, 4  ;;  %v2417_v42 = vsel %vm5519_vm15, %v2415_v21, %v2416_v16  ;;  %v1073_v31 = vshll.u32 %v5585_v20, 16  ;;  %v1077_v13 = vshrl.u32 %v5585_v20, 16  ;;  %4559 = vmatprep.subr.bf16.mxu0 %v4825_v59 }
  0xa5   : > { %4430 = vmatmul.mubr.msk.bf16.gmra.mrb[8].mxu1 %vm1144_vm11, %v3947_v22  ;;  %v1052_v15 = vsel %vm5368_vm12, %v1047_v25, %v1051_v29  ;;  %v4092_v48 = vcombine.low %v2414_v8, %v2417_v42  ;;  %v1069_v47 = vrot.slane %v1067_v27, 5  ;;  %v1083_v50 = vshll.u32 %v5593_v45, 16  ;;  %v1972_v8 = vld [vmem:[#allocation2 + $0x50] sm:$0x1]  ;;  %v2371_v27 = vld [vmem:[#allocation2 + $0x54] sm:$0xe] }
  0xa6   : > { %v1062_v53 = vsel %vm5368_vm12, %v1057_v36, %v1061_v18  ;;  %v1075_v54 = vrot.slane %v1073_v31, 5  ;;  %v1079_v6 = vrot.slane %v1077_v13, 4  ;;  %v4077_v62 = vrot.slane %v2368_v19, 9  ;;  %v1971_v18 = vld [vmem:[#allocation2 + $0x4c] sm:$0xf] }
  0xa7   : > { %v3948_v9 = vcombine.low %v1052_v15, %v1062_v53  ;;  %4545 = vmatprep.mubr.msk.bf16.mxu0 %vm1144_vm11, %v4092_v48  ;;  %v1070_v4 = vor.u32 %v1069_v47, %v1066_v23  ;;  %v1085_v29 = vrot.slane %v1083_v50, 5  ;;  %v2420_v11 = vrot.slane %v5473_v26, 5  ;;  %4560 = vmatpush3.bf16.msra.mxu0 %v4825_v59  ;;  %v5629_v23 = vld [vmem:[#allocation2 + $0x58] sm:$0xf]  ;;  %v1975_v15 = vld [vmem:[#allocation2 + $0x5c] sm:$0x1] }
  0xa8   : > { %v1080_v41 = vor.u32 %v1079_v6, %v1075_v54  ;;  %v2423_v7 = vrot.slane %v5476_v33, 5  ;;  %v4078_v5 = vrot.slane %v2369_v39, 9  ;;  %v2427_v16 = vrot.slane %v5608_v57, 5  ;;  %4561 = vmatprep.subr.bf16.mxu0 %v4829_v34  ;;  %v2370_v33 = vld [vmem:[#allocation2 + $0x48] sm:$0xe]  ;;  %v5642_v39 = vld [vmem:[%s6234_s3 + $0xe0] sm:$0xff]  }
  0xa9   : > { %4433 = vmatprep.mubr.msk.bf16.mxu1 %vm1144_vm11, %v3948_v9  ;;  %v1071_v14 = vrot.slane %v1070_v4, 4  ;;  %v2421_v12 = vsel %vm5519_vm15, %v4077_v62, %v2420_v11  ;;  %v2422_v26 = vrot.slane %v2420_v11, 4  ;;  %v2430_v59 = vrot.slane %v5612_v55, 5  ;;  %v5646_v62 = vld [vmem:[#allocation2 + $0x64] sm:$0xf] }
  0xaa   : > { %v1081_v21 = vrot.slane %v1080_v41, 4  ;;  %v3962_v19 = vcombine.low %v5345_v38, %v5347_v49  ;;  %v2428_v22 = vsel %vm5519_vm15, %v4078_v5, %v2427_v16  ;;  %v2429_v25 = vrot.slane %v2427_v16, 4  ;;  %6252 = vst [vmem:[#allocation3_spill] sm:$0xff] %v5646_v62  ;;  %v1978_v9 = vld [vmem:[#allocation2 + $0x68] sm:$0x1] }
  0xab   : > { %v1076_v36 = vsel %vm5368_vm12, %v1071_v14, %v1075_v54  ;;  %v2424_v42 = vsel %vm5519_vm15, %v2422_v26, %v2423_v7  ;;  %v2109_v31 = vshll.u32 %v1971_v18, 16  ;;  %v2113_v13 = vshrl.u32 %v1971_v18, 16  ;;  %4562 = vmatpush3.bf16.msra.mxu0 %v4829_v34  ;;  %v2372_v4 = vld [vmem:[#allocation2 + $0x60] sm:$0xe] }
  0xac   : > { %v1086_v38 = vsel %vm5368_vm12, %v1081_v21, %v1085_v29  ;;  %v4093_v48 = vcombine.low %v2421_v12, %v2424_v42  ;;  %v2431_v47 = vsel %vm5519_vm15, %v2429_v25, %v2430_v59  ;;  %v2119_v50 = vshll.u32 %v1972_v8, 16  ;;  %4563 = vmatprep.subr.bf16.mxu0 %v4833_v37 }
  0xad   : > { %v3949_v53 = vcombine.low %v1076_v36, %v1086_v38  ;;  %v4094_v54 = vcombine.low %v2428_v22, %v2431_v47  ;;  %v5644_v6 = vrot.slane %v2109_v31, 5  ;;  %v2115_v34 = vrot.slane %v2113_v13, 4  ;;  %v1452_v31 = vld [vmem:[#allocation2 + $0xc] sm:$0xe] }
  0xae   : > { %v1487_v29 = vrot.slane %v5373_v30, 5  ;;  %4546 = vmatmul.mubr.msk.bf16.gmra.mrb[4].mxu0 %vm1144_vm11, %v4093_v48  ;;  %v4079_v11 = vrot.slane %v2370_v33, 9  ;;  %v2434_v41 = vrot.slane %v1971_v18, 5  ;;  %v2437_v7 = vrot.slane %v1972_v8, 5  ;;  %v4832_v47 = vld [vmem:[%s6234_s3 + $0x48] sm:$0xff]  }
  0xaf   : > { %4434 = vmatmul.mubr.msk.bf16.gmra.mrb[12].mxu1 %vm1144_vm11, %v3949_v53  ;;  %4549 = vmatprep.mubr.msk.bf16.mxu0 %vm1144_vm11, %v4094_v54  ;;  %v2116_v5 = vor.u32 %v2115_v34, %v5644_v6  ;;  %v4080_v16 = vrot.slane %v2371_v27, 9  ;;  %v2441_v14 = vrot.slane %v5629_v23, 5  ;;  %v2444_v59 = vrot.slane %v1975_v15, 5  ;;  %v4837_v34 = vld [vmem:[%s6234_s3 + $0x50] sm:$0xff]  }
  0xb0   : > { %4445 = vmatprep.mubr.msk.bf16.mxu1 %vm1144_vm11, %v3962_v19  ;;  %v2435_v12 = vsel %vm5519_vm15, %v4079_v11, %v2434_v41  ;;  %v2436_v26 = vrot.slane %v2434_v41, 4  ;;  %4564 = vmatpush3.bf16.msra.mxu0 %v4833_v37  ;;  %v5659_v18 = vrot.slane %v2119_v50, 5  ;;  %v4081_v19 = vrot.slane %v2372_v4, 9 }
  0xb1   : > { %v5657_v33 = vrot.slane %v2116_v5, 4  ;;  %v2442_v8 = vsel %vm5519_vm15, %v4080_v16, %v2441_v14  ;;  %v2443_v21 = vrot.slane %v2441_v14, 4  ;;  %4581 = vmatprep.subr.bf16.mxu0 %v5642_v39  ;;  %v2448_v25 = vrot.slane %v5646_v62, 5 }
  0xb2   : > { %v2438_v22 = vsel %vm5519_vm15, %v2436_v26, %v2437_v7  ;;  %v2451_v27 = vrot.slane %v1978_v9, 5  ;;  %v3963_v37 = vcombine.low %v5359_v2, %v5373_v30  ;;  %v1490_v13 = vrot.slane %v5385_v24, 5  ;;  %v1453_v2 = vld [vmem:[#allocation2 + $0x18] sm:$0xe]  ;;  %v1454_v7 = vld [vmem:[#allocation2 + $0x24] sm:$0xe] }
  0xb3   : > { %v4095_v36 = vcombine.low %v2435_v12, %v2438_v22  ;;  %v2445_v42 = vsel %vm5519_vm15, %v2443_v21, %v2444_v59  ;;  %v3964_v15 = vcombine.low %v5406_v52, %v5411_v60  ;;  %v2450_v48 = vrot.slane %v2448_v25, 4  ;;  %v2883_v30 = vld [vmem:[#allocation2 + $0x3c] sm:$0xf] }
  0xb4   : > { %v4096_v38 = vcombine.low %v2442_v8, %v2445_v42  ;;  %v3983_v50 = vrot.slane %v1452_v31, 9  ;;  %v1489_v53 = vrot.slane %v1487_v29, 4  ;;  %v2449_v24 = vsel %vm5519_vm15, %v4081_v19, %v2448_v25  ;;  %v1455_v25 = vld [vmem:[#allocation2 + $0x30] sm:$0xe] }
  0xb5   : > { %v2452_v52 = vsel %vm5519_vm15, %v2450_v48, %v2451_v27  ;;  %v3984_v4 = vrot.slane %v1453_v2, 9  ;;  %v1494_v11 = vrot.slane %v5411_v60, 5  ;;  %v1497_v41 = vrot.slane %v5415_v61, 5  ;;  %v2874_v48 = vld [vmem:[#allocation2 + $0x18] sm:$0xf] }
  0xb6   : > { %4550 = vmatmul.mubr.msk.bf16.gmra.mrb[8].mxu0 %vm1144_vm11, %v4095_v36  ;;  %v5690_v54 = vsel %vm5519_vm15, %v3983_v50, %v1487_v29  ;;  %v5699_v9 = vsel %vm5519_vm15, %v1489_v53, %v1490_v13  ;;  %v4835_v29 = vld [vmem:[#allocation2 + $0x18] sm:$0xff]   ;;  %v3985_v5 = vrot.slane %v1454_v7, 9  ;;  %v1501_v16 = vrot.slane %v5451_v32, 5  ;;  %v4868_v53 = vld [vmem:[#allocation2 + $0x8] sm:$0x1] }
  0xb7   : > { %4446 = vmatmul.mubr.msk.bf16.vlgmr.msra.gmra.mrb[0].mxu1 %vm1144_vm11, %v3963_v37  ;;  %4553 = vmatprep.mubr.msk.bf16.mxu0 %vm1144_vm11, %v4096_v38  ;;  %v4097_v14 = vcombine.low %v2449_v24, %v2452_v52  ;;  %v5708_v12 = vsel %vm5519_vm15, %v3984_v4, %v1494_v11  ;;  %v1496_v26 = vrot.slane %v1494_v11, 4  ;;  %v1504_v59 = vrot.slane %v5455_v51, 5  ;;  %v1456_v36 = vld [vmem:[#allocation2 + $0x3c] sm:$0xe]  ;;  %v4838_v24 = vld [vmem:[#allocation2 + $0x24] sm:$0xff]   ;;  %v4841_v52 = vld [vmem:[#allocation2 + $0x30] sm:$0xff]  }
  0xb8   : > { %4462 = vmatpush3.bf16.msra.mxu1 %v5489_v0  ;;  %4449 = vmatprep.mubr.msk.bf16.mxu1 %vm1144_vm11, %v3964_v15  ;;  %v3965_v60 = vcombine.low %v5436_v46, %v5451_v32  ;;  %v5715_v61 = vsel %vm5519_vm15, %v3985_v5, %v1501_v16  ;;  %v1503_v8 = vrot.slane %v1501_v16, 4  ;;  %v1508_v21 = vrot.slane %v5492_v1, 5  ;;  %v4843_v32 = vld [vmem:[%s6234_s3 + $0x58] sm:$0xff]   ;;  %v1451_v15 = vld [vmem:[#allocation2] sm:$0xe] }
  0xb9   : > { %4463 = vmatprep.subr.bf16.mxu1 %v4832_v47  ;;  %v3966_v22 = vcombine.low %v5484_v44, %v5492_v1  ;;  %v5722_v19 = vsel %vm5519_vm15, %v1496_v26, %v1497_v41  ;;  %v1511_v51 = vrot.slane %v5500_v58, 5  ;;  %v1515_v46 = vrot.slane %v5526_v17, 5  ;;  %v5757_v4 = vld [vmem:[#allocation2 + $0x1c] sm:$0xf]  ;;  %v5860_v38 = vld [vmem:[#allocation2 + $0x4c] sm:$0xf] }
  0xba   : > { %v5733_v44 = vsel %vm5519_vm15, %v1503_v8, %v1504_v59  ;;  %v3986_v1 = vrot.slane %v1455_v25, 9  ;;  %v1510_v37 = vrot.slane %v1508_v21, 4  ;;  %v1480_v42 = vrot.slane %v5347_v49, 5  ;;  %v5755_v49 = vld [vmem:[%s6234_s3 + $0x60] sm:$0xff]   ;;  %v1457_v59 = vld [vmem:[#allocation2 + $0x48] sm:$0xe] }
  0xbb   : > { %v1517_v50 = vrot.slane %v1515_v46, 4  ;;  %v1483_v2 = vrot.slane %v4868_v53, 5  ;;  %v3967_v11 = vcombine.low %v5515_v10, %v5526_v17  ;;  %v3982_v41 = vrot.slane %v1451_v15, 9  ;;  %v4845_v10 = vld [vmem:[%s6234_s3 + $0xe8] sm:$0xff]   ;;  %v5781_v8 = vld [vmem:[#allocation2 + $0x20] sm:$0x1] }
  0xbc   : > { %4464 = vmatpush3.bf16.msra.mxu1 %v4832_v47  ;;  %v5743_v31 = vsel %vm5519_vm15, %v3986_v1, %v1508_v21  ;;  %v5747_v13 = vsel %vm5519_vm15, %v1510_v37, %v1511_v51  ;;  %v3987_v47 = vrot.slane %v1456_v36, 9  ;;  %v1482_v7 = vrot.slane %v1480_v42, 4  ;;  %v5783_v21 = vld [vmem:[#allocation2 + $0x28] sm:$0xf]  ;;  %v4849_v51 = vld [vmem:[%s6234_s3 + $0xf0] sm:$0xff]   ;;  %v4844_v37 = vld [vmem:[#allocation2 + $0x3c] sm:$0xff]  }
  0xbd   : > { %4465 = vmatprep.subr.bf16.mxu1 %v4837_v34  ;;  %v3968_v5 = vcombine.low %v5546_v43, %v5556_v56  ;;  %v2899_v16 = vshrl.u32 %v2874_v48, 16  ;;  %v2908_v17 = vshll.u32 %v5757_v4, 16  ;;  %v3969_v25 = vcombine.low %v5575_v63, %v5585_v20  ;;  %v2886_v43 = vld [vmem:[#allocation2 + $0x48] sm:$0xf] }
  0xbe   : > { %4554 = vmatmul.mubr.msk.bf16.gmra.mrb[12].mxu0 %vm1144_vm11, %v4097_v14  ;;  %v2902_v14 = vshll.u32 %v2874_v48, 16  ;;  %v1525_v1 = vrot.slane %v5559_v28, 5  ;;  %v1484_v63 = vsel %vm5519_vm15, %v1482_v7, %v1483_v2  ;;  %v2880_v48 = vld [vmem:[#allocation2 + $0x30] sm:$0xf]  ;;  %v2932_v2 = vshll.u32 %v5783_v21, 16 }
  0xbf   : > { %4450 = vmatmul.mubr.msk.bf16.gmra.mrb[4].mxu1 %vm1144_vm11, %v3965_v60  ;;  %4565 = vmatprep.mubr.msk.bf16.mxu0 %vm1144_vm11, %v4835_v29  ;;  %v5764_v29 = vsel %vm5519_vm15, %v3987_v47, %v1515_v46  ;;  %v2912_v60 = vshrl.u32 %v5757_v4, 16  ;;  %v2901_v36 = vrot.slane %v2899_v16, 4  ;;  %v4846_v47 = vld [vmem:[#allocation2 + $0x48] sm:$0xff]   ;;  %v2947_v16 = vshrl.u32 %v2880_v48, 16 }
  0xc0   : > { %4453 = vmatprep.mubr.msk.bf16.mxu1 %vm1144_vm11, %v3966_v22  ;;  %4466 = vmatpush3.bf16.msra.mxu1 %v4837_v34  ;;  %v1518_v34 = vrot.slane %v5531_v35, 5  ;;  %v2877_v35 = vld [vmem:[#allocation2 + $0x24] sm:$0xf]  ;;  %v3988_v22 = vrot.slane %v1457_v59, 9  ;;  %v2904_v15 = vrot.slane %v2902_v14, 5  ;;  %v2950_v14 = vshll.u32 %v2880_v48, 16 }
  0xc1   : > { %4467 = vmatprep.subr.bf16.mxu1 %v4843_v32  ;;  %v2923_v46 = vshrl.u32 %v2877_v35, 16  ;;  %v5827_v48 = vrot.slane %v2932_v2, 5  ;;  %v2971_v2 = vshrl.u32 %v2883_v30, 16  ;;  %v2995_v0 = vshrl.u32 %v2886_v43, 16 }
  0xc2   : > { %v5770_v26 = vsel %vm5519_vm15, %v1517_v50, %v1518_v34  ;;  %v5800_v50 = vrot.slane %v2908_v17, 5  ;;  %v2936_v34 = vshrl.u32 %v5783_v21, 16  ;;  %v3008_v62 = vshrl.u32 %v5860_v38, 16 }
  0xc3   : > { %v5814_v7 = vrot.slane %v2923_v46, 4 }
  0xc4   : > { %4468 = vmatpush3.bf16.msra.mxu1 %v4843_v32  ;;  %v1522_v32 = vrot.slane %v5556_v56, 5  ;;  %v2914_v56 = vrot.slane %v2912_v60, 4  ;;  %v2905_v60 = vor.u32 %v2904_v15, %v2901_v36  ;;  %v5834_v36 = vld [vmem:[#allocation2 + $0x2c] sm:$0x1]  ;;  %v2952_v15 = vrot.slane %v2950_v14, 5 }
  0xc5   : > { %4485 = vmatprep.subr.bf16.mxu1 %v5755_v49 }
  0xc6   : > { %4566 = vmatmul.mubr.msk.bf16.vlgmr.msra.gmra.mrb[0].mxu0 %vm1144_vm11, %v4838_v24  ;;  %v5804_v28 = vsel %vm5519_vm15, %v3988_v22, %v1522_v32  ;;  %v1524_v53 = vrot.slane %v1522_v32, 4  ;;  %v5806_v24 = vld [vmem:[#allocation2 + $0x34] sm:$0xf]  ;;  %v2915_v22 = vor.u32 %v2914_v56, %v5800_v50  ;;  %v1529_v32 = vrot.slane %v5585_v20, 5  ;;  %v5839_v20 = vld [vmem:[%s6234_s3 + $0x100] sm:$0xff]  }
  0xc7   : > { %4454 = vmatmul.mubr.msk.bf16.gmra.mrb[8].mxu1 %vm1144_vm11, %v3967_v11  ;;  %4582 = vmatpush3.bf16.msra.mxu0 %v5642_v39  ;;  %v1481_v39 = vsel %vm5519_vm15, %v3982_v41, %v1480_v42  ;;  %v2918_v42 = vshll.u32 %v5781_v8, 16  ;;  %v1458_v11 = vld [vmem:[#allocation2 + $0x54] sm:$0xe]  ;;  %v4853_v41 = vld [vmem:[%s6234_s3 + $0xf8] sm:$0xff]   ;;  %v2956_v17 = vshll.u32 %v5806_v24, 16 }
  0xc8   : > { %4457 = vmatprep.mubr.msk.bf16.mxu1 %vm1144_vm11, %v3968_v5  ;;  %4569 = vmatprep.mubr.msk.bf16.mxu0 %vm1144_vm11, %v4841_v52  ;;  %v2926_v52 = vshll.u32 %v2877_v35, 16  ;;  %v5818_v5 = vsel %vm5519_vm15, %v1524_v53, %v1525_v1  ;;  %v3998_v59 = vcombine.low %v1481_v39, %v1484_v63  ;;  %v3989_v46 = vrot.slane %v1458_v11, 9  ;;  %v5830_v53 = vld [vmem:[#allocation2 + $0x40] sm:$0xf] }
  0xc9   : > { %4583 = vmatprep.subr.bf16.mxu0 %v4845_v10  ;;  %v2938_v39 = vrot.slane %v2936_v34, 4  ;;  %v1532_v63 = vrot.slane %v5593_v45, 5  ;;  %v1531_v45 = vrot.slane %v1529_v32, 4  ;;  %v2974_v34 = vshll.u32 %v2883_v30, 16 }
  0xca   : > { %v2928_v1 = vrot.slane %v2926_v52, 5  ;;  %v5843_v56 = vsel %vm5519_vm15, %v3989_v46, %v1529_v32  ;;  %v2984_v14 = vshrl.u32 %v5830_v53, 16  ;;  %v4848_v46 = vld [vmem:[#allocation2 + $0x54] sm:$0xff]   ;;  %v4850_v32 = vld [vmem:[#allocation2 + $0x60] sm:$0xff]   ;;  %v2916_v35 = vrot.slane %v2915_v22, 4 }
  0xcb   : > { %4584 = vmatpush3.bf16.msra.mxu0 %v4845_v10  ;;  %v2960_v10 = vshrl.u32 %v5806_v24, 16  ;;  %v5852_v11 = vsel %vm5519_vm15, %v1531_v45, %v1532_v63  ;;  %v2942_v30 = vshll.u32 %v5834_v36, 16  ;;  %v4851_v63 = vld [vmem:[%s6234_s3 + $0x68] sm:$0xff]   ;;  %v2939_v45 = vor.u32 %v2938_v39, %v5827_v48 }
  0xcc   : > { %4585 = vmatprep.subr.bf16.mxu0 %v4849_v51  ;;  %v2976_v58 = vrot.slane %v2974_v34, 5  ;;  %v2986_v27 = vrot.slane %v2984_v14, 4  ;;  %v3004_v39 = vshll.u32 %v5860_v38, 16 }
  0xcd   : > { %v2962_v52 = vrot.slane %v2960_v10, 4  ;;  %v2929_v10 = vor.u32 %v2928_v1, %v5814_v7  ;;  %v5869_v1 = vld [vmem:[#allocation2 + $0x44] sm:$0x1]  ;;  %v2944_v34 = vrot.slane %v2942_v30, 5 }
  0xce   : > { %4570 = vmatmul.mubr.msk.bf16.gmra.mrb[4].mxu0 %vm1144_vm11, %v4844_v37  ;;  %v2949_v37 = vrot.slane %v2947_v16, 4  ;;  %v2980_v16 = vshll.u32 %v5830_v53, 16  ;;  %v2990_v14 = vshll.u32 %v5869_v1, 16 }
  0xcf   : > { %4458 = vmatmul.mubr.msk.bf16.gmra.mrb[12].mxu1 %vm1144_vm11, %v3969_v25  ;;  %4573 = vmatprep.mubr.msk.bf16.mxu0 %vm1144_vm11, %v4846_v47  ;;  %v5846_v25 = vld [vmem:[#allocation2 + $0x38] sm:$0x1]  ;;  %v5848_v47 = vrot.slane %v2956_v17, 5 }
  0xd0   : > { %4469 = vmatprep.mubr.msk.bf16.mxu1 %vm1144_vm11, %v3998_v59  ;;  %4586 = vmatpush3.bf16.msra.mxu0 %v4849_v51  ;;  %v2906_v59 = vrot.slane %v2905_v60, 4  ;;  %v2920_v51 = vrot.slane %v2918_v42, 5  ;;  %v2966_v42 = vshll.u32 %v5846_v25, 16  ;;  %v2973_v60 = vrot.slane %v2971_v2, 4 }
  0xd1   : > { %4587 = vmatprep.subr.bf16.mxu0 %v4853_v41  ;;  %v2953_v22 = vor.u32 %v2952_v15, %v2949_v37  ;;  %v2963_v7 = vor.u32 %v2962_v52, %v5848_v47  ;;  %v5871_v17 = vrot.slane %v2980_v16, 5  ;;  %v6253_v2 = vcombine.low %v5690_v54, %v5699_v9  ;;  %v4852_v54 = vld [vmem:[#allocation2 + $0x6c] sm:$0xff]  }
  0xd2   : > { %v2911_v37 = vsel %vm5368_vm12, %v2906_v59, %v5800_v50  ;;  %v2921_v15 = vsel %vm5368_vm12, %v2916_v35, %v2920_v51  ;;  %v2930_v52 = vrot.slane %v2929_v10, 4  ;;  %v2940_v9 = vrot.slane %v2939_v45, 4  ;;  %v4854_v50 = vld [vmem:[%s6234_s3 + $0x70] sm:$0xff]  }
  0xd3   : > { %v2977_v16 = vor.u32 %v2976_v58, %v2973_v60  ;;  %v2954_v35 = vrot.slane %v2953_v22, 4  ;;  %v2987_v59 = vor.u32 %v2986_v27, %v5871_v17  ;;  %v5898_v10 = vrot.slane %v3004_v39, 5  ;;  %v5900_v45 = vld [vmem:[#allocation2 + $0x50] sm:$0x1]  ;;  %v4856_v22 = vld [vmem:[%s6234_s3 + $0x78] sm:$0xff]  }
  0xd4   : > { %4588 = vmatpush3.bf16.msra.mxu0 %v4853_v41  ;;  %v2998_v41 = vshll.u32 %v2886_v43, 16  ;;  %v6254_v43 = vcombine.low %v5708_v12, %v5722_v19  ;;  %v5896_v12 = vld [vmem:[#allocation2 + $0x58] sm:$0xf]  ;;  %v2997_v19 = vrot.slane %v2995_v0, 4  ;;  %v3010_v58 = vrot.slane %v3008_v62, 4 }
  0xd5   : > { %4605 = vmatprep.subr.bf16.mxu0 %v5839_v20  ;;  %v4146_v30 = vcombine.low %v2911_v37, %v2921_v15  ;;  %v5907_v27 = vrot.slane %v2990_v14, 5  ;;  %v3028_v0 = vshll.u32 %v5896_v12, 16  ;;  %v2935_v62 = vsel %vm5368_vm12, %v2930_v52, %v5827_v48  ;;  %v5916_v39 = vld [vmem:[#allocation2 + $0x64] sm:$0xf]  ;;  %v5923_v14 = vld [vmem:[#allocation2 + $0x5c] sm:$0x1] }
  0xd6   : > { %4574 = vmatmul.mubr.msk.bf16.gmra.mrb[8].mxu0 %vm1144_vm11, %v4848_v46  ;;  %v2889_v46 = vld [vmem:[#allocation2 + $0x54] sm:$0xf]  ;;  %v3000_v51 = vrot.slane %v2998_v41, 5  ;;  %v2892_v41 = vld [vmem:[#allocation2 + $0x60] sm:$0xf]  ;;  %v5919_v37 = vrot.slane %v2987_v59, 4  ;;  %v6255_v48 = vcombine.low %v5715_v61, %v5733_v44  ;;  %v2959_v52 = vsel %vm5368_vm12, %v2954_v35, %v5848_v47 }
  0xd7   : > { %4470 = vmatmul.mubr.msk.bf16.vlgmr.msra.gmra.mrb[0].mxu1 %vm1144_vm11, %v6253_v2  ;;  %4577 = vmatprep.mubr.msk.bf16.mxu0 %vm1144_vm11, %v4850_v32  ;;  %v2964_v32 = vrot.slane %v2963_v7, 4  ;;  %v3019_v60 = vshrl.u32 %v2889_v46, 16  ;;  %v3022_v2 = vshll.u32 %v2889_v46, 16  ;;  %v3032_v7 = vshrl.u32 %v5896_v12, 16 }
  0xd8   : > { %4486 = vmatpush3.bf16.msra.mxu1 %v5755_v49  ;;  %4473 = vmatprep.mubr.msk.bf16.mxu1 %vm1144_vm11, %v6254_v43  ;;  %v2968_v49 = vrot.slane %v2966_v42, 5  ;;  %v5905_v42 = vrot.slane %v2977_v16, 4  ;;  %v3001_v15 = vor.u32 %v3000_v51, %v2997_v19  ;;  %v3011_v43 = vor.u32 %v3010_v58, %v5898_v10 }
  0xd9   : > { %4487 = vmatprep.subr.bf16.mxu1 %v4851_v63  ;;  %v3014_v16 = vshll.u32 %v5900_v45, 16  ;;  %v6256_v46 = vcombine.low %v5743_v31, %v5747_v13  ;;  %v3043_v61 = vshrl.u32 %v2892_v41, 16  ;;  %v3046_v44 = vshll.u32 %v2892_v41, 16  ;;  %v2895_v31 = vld [vmem:[#allocation2 + $0x6c] sm:$0xf]  ;;  %v5956_v41 = vld [vmem:[%s6234_s3 + $0x80] sm:$0xff]  }
  0xda   : > { %v3052_v59 = vshll.u32 %v5916_v39, 16  ;;  %v3056_v19 = vshrl.u32 %v5916_v39, 16  ;;  %v5941_v47 = vrot.slane %v3028_v0, 5  ;;  %v3034_v35 = vrot.slane %v3032_v7, 4 }
  0xdb   : > { %v3016_v58 = vrot.slane %v3014_v16, 5  ;;  %v3048_v0 = vrot.slane %v3046_v44, 5  ;;  %v3067_v16 = vshrl.u32 %v2895_v31, 16 }
  0xdc   : > { %4488 = vmatpush3.bf16.msra.mxu1 %v4851_v63  ;;  %v2945_v63 = vsel %vm5368_vm12, %v2940_v9, %v2944_v34  ;;  %v3021_v9 = vrot.slane %v3019_v60, 4  ;;  %v3024_v34 = vrot.slane %v3022_v2, 5  ;;  %v5947_v60 = vld [vmem:[#allocation2 + $0x70] sm:$0xf]  ;;  %v5949_v2 = vld [vmem:[#allocation2 + $0x68] sm:$0x1] }
  0xdd   : > { %4489 = vmatprep.subr.bf16.mxu1 %v4854_v50  ;;  %v4147_v51 = vcombine.low %v2935_v62, %v2945_v63  ;;  %v3045_v62 = vrot.slane %v3043_v61, 4  ;;  %v5951_v63 = vrot.slane %v3052_v59, 5  ;;  %v3058_v7 = vrot.slane %v3056_v19, 4 }
  0xde   : > { %4578 = vmatmul.mubr.msk.bf16.gmra.mrb[12].mxu0 %vm1144_vm11, %v4852_v54  ;;  %v2969_v54 = vsel %vm5368_vm12, %v2964_v32, %v2968_v49  ;;  %v3002_v32 = vrot.slane %v3001_v15, 4  ;;  %v3012_v49 = vrot.slane %v3011_v43, 4  ;;  %v3025_v15 = vor.u32 %v3024_v34, %v3021_v9 }
  0xdf   : > { %4474 = vmatmul.mubr.msk.bf16.gmra.mrb[4].mxu1 %vm1144_vm11, %v6255_v48  ;;  %4589 = vmatprep.mubr.msk.bf16.mxu0 %vm1144_vm11, %v4146_v30  ;;  %v3038_v30 = vshll.u32 %v5923_v14, 16  ;;  %v4148_v13 = vcombine.low %v2959_v52, %v2969_v54  ;;  %v3035_v43 = vor.u32 %v3034_v35, %v5941_v47  ;;  %v3070_v48 = vshll.u32 %v2895_v31, 16  ;;  %v5993_v35 = vld [vmem:[#allocation2 + $0x74] sm:$0x1] }
  0xe0   : > { %4477 = vmatprep.mubr.msk.bf16.mxu1 %vm1144_vm11, %v6256_v46  ;;  %4490 = vmatpush3.bf16.msra.mxu1 %v4854_v50  ;;  %v4857_v50 = vld [vmem:[%s6234_s3 + $0x108] sm:$0xff]   ;;  %v3080_v52 = vshrl.u32 %v5947_v60, 16  ;;  %v6257_v54 = vcombine.low %v5764_v29, %v5770_v26  ;;  %v2983_v9 = vsel %vm5368_vm12, %v5905_v42, %v5871_v17  ;;  %v2993_v34 = vsel %vm5368_vm12, %v5919_v37, %v5907_v27 }
  0xe1   : > { %4491 = vmatprep.subr.bf16.mxu1 %v4856_v22  ;;  %v3007_v46 = vsel %vm5368_vm12, %v3002_v32, %v5898_v10  ;;  %v3040_v61 = vrot.slane %v3038_v30, 5  ;;  %v6258_v29 = vcombine.low %v5804_v28, %v5818_v5  ;;  %v3017_v26 = vsel %vm5368_vm12, %v3012_v49, %v3016_v58  ;;  %v4858_v32 = vld [vmem:[#allocation2 + $0xc] sm:$0xff]  }
  0xe2   : > { %v3049_v17 = vor.u32 %v3048_v0, %v3045_v62  ;;  %v3059_v42 = vor.u32 %v3058_v7, %v5951_v63  ;;  %v3062_v10 = vshll.u32 %v5949_v2, 16  ;;  %v3026_v27 = vrot.slane %v3025_v15, 4  ;;  %v3284_v15 = vld [vmem:[#allocation2 + $0x18] sm:$0xe] }
  0xe3   : > { %v3036_v37 = vrot.slane %v3035_v43, 4  ;;  %v3069_v28 = vrot.slane %v3067_v16, 4  ;;  %v3072_v5 = vrot.slane %v3070_v48, 5  ;;  %v4149_v44 = vcombine.low %v2983_v9, %v2993_v34  ;;  %v1970_v16 = vld [vmem:[#allocation2 + $0x48] sm:$0xf] }
  0xe4   : > { %4492 = vmatpush3.bf16.msra.mxu1 %v4856_v22  ;;  %v3076_v22 = vshll.u32 %v5947_v60, 16  ;;  %v3082_v19 = vrot.slane %v3080_v52, 4  ;;  %v3050_v49 = vrot.slane %v3049_v17, 4  ;;  %v3060_v58 = vrot.slane %v3059_v42, 4 }
  0xe5   : > { %4629 = vmatprep.subr.bf16.mxu1 %v5956_v41  ;;  %v3064_v30 = vrot.slane %v3062_v10, 5  ;;  %v3031_v31 = vsel %vm5368_vm12, %v3026_v27, %v5941_v47  ;;  %v3073_v62 = vor.u32 %v3072_v5, %v3069_v28  ;;  %v3086_v7 = vshll.u32 %v5993_v35, 16  ;;  %v4861_v10 = vld [vmem:[#allocation2 + $0x24] sm:$0xff]  }
  0xe6   : > { %4590 = vmatmul.mubr.msk.bf16.vlgmr.msra.gmra.mrb[0].mxu0 %vm1144_vm11, %v4147_v51  ;;  %v5991_v59 = vrot.slane %v3076_v22, 5  ;;  %v4150_v51 = vcombine.low %v3007_v46, %v3017_v26  ;;  %v3318_v43 = vrot.slane %v5757_v4, 5  ;;  %v6259_v47 = vcombine.low %v5843_v56, %v5852_v11 }
  0xe7   : > { %4478 = vmatmul.mubr.msk.bf16.gmra.mrb[8].mxu1 %vm1144_vm11, %v6257_v54  ;;  %4606 = vmatpush3.bf16.msra.mxu0 %v5839_v20  ;;  %v4860_v20 = vld [vmem:[%s6234_s3 + $0x110] sm:$0xff]   ;;  %v3055_v22 = vsel %vm5368_vm12, %v3050_v49, %v5951_v63  ;;  %v3065_v52 = vsel %vm5368_vm12, %v3060_v58, %v3064_v30  ;;  %v3074_v4 = vrot.slane %v3073_v62, 4  ;;  %v4166_v54 = vrot.slane %v3284_v15, 9 }
  0xe8   : > { %4481 = vmatprep.mubr.msk.bf16.mxu1 %vm1144_vm11, %v6258_v29  ;;  %4593 = vmatprep.mubr.msk.bf16.mxu0 %vm1144_vm11, %v4148_v13  ;;  %v3041_v13 = vsel %vm5368_vm12, %v3036_v37, %v3040_v61  ;;  %v3083_v0 = vor.u32 %v3082_v19, %v5991_v59  ;;  %v2100_v9 = vshrl.u32 %v1970_v16, 16  ;;  %v2103_v56 = vshll.u32 %v1970_v16, 16  ;;  %v4859_v29 = vld [vmem:[#allocation2 + $0x18] sm:$0xff]   ;;  %v3285_v37 = vld [vmem:[#allocation2 + $0x24] sm:$0xe] }
  0xe9   : > { %4607 = vmatprep.subr.bf16.mxu0 %v4857_v50  ;;  %v4151_v48 = vcombine.low %v3031_v31, %v3041_v13  ;;  %v3088_v34 = vrot.slane %v3086_v7, 5  ;;  %v3320_v46 = vrot.slane %v3318_v43, 4  ;;  %v3321_v61 = vrot.slane %v5781_v8, 5  ;;  %v3286_v19 = vld [vmem:[#allocation2 + $0x30] sm:$0xe] }
  0xea   : > { %v3084_v11 = vrot.slane %v3083_v0, 4  ;;  %v4152_v26 = vcombine.low %v3055_v22, %v3065_v52  ;;  %v2102_v17 = vrot.slane %v2100_v9, 4  ;;  %v2105_v42 = vrot.slane %v2103_v56, 5  ;;  %v4864_v52 = vld [vmem:[#allocation2 + $0x3c] sm:$0xff]   ;;  %v1973_v56 = vld [vmem:[#allocation2 + $0x54] sm:$0xf] }
  0xeb   : > { %4608 = vmatpush3.bf16.msra.mxu0 %v4857_v50  ;;  %v4863_v50 = vld [vmem:[%s6234_s3 + $0x118] sm:$0xff]   ;;  %v3079_v63 = vsel %vm5368_vm12, %v3074_v4, %v5991_v59  ;;  %v3319_v27 = vsel %vm5519_vm15, %v4166_v54, %v3318_v43  ;;  %v3325_v28 = vrot.slane %v5783_v21, 5  ;;  %v2085_v21 = vshll.u32 %v5608_v57, 16  ;;  %v4862_v43 = vld [vmem:[#allocation2 + $0x30] sm:$0xff]  }
  0xec   : > { %4609 = vmatprep.subr.bf16.mxu0 %v4860_v20  ;;  %v2106_v5 = vor.u32 %v2105_v42, %v2102_v17  ;;  %v3089_v8 = vsel %vm5368_vm12, %v3084_v11, %v3088_v34  ;;  %v2089_v49 = vshrl.u32 %v5608_v57, 16  ;;  %v4167_v30 = vrot.slane %v3285_v37, 9 }
  0xed   : > { %v3328_v31 = vrot.slane %v5834_v36, 5  ;;  %v3327_v62 = vrot.slane %v3325_v28, 4  ;;  %v4153_v0 = vcombine.low %v3079_v63, %v3089_v8  ;;  %v6260_v36 = vsel %vm5368_vm12, %v5657_v33, %v5659_v18  ;;  %v3287_v18 = vld [vmem:[#allocation2 + $0x3c] sm:$0xe] }
  0xee   : > { %4594 = vmatmul.mubr.msk.bf16.gmra.mrb[4].mxu0 %vm1144_vm11, %v4149_v44  ;;  %v3322_v44 = vsel %vm5519_vm15, %v3320_v46, %v3321_v61  ;;  %v2107_v58 = vrot.slane %v2106_v5, 4  ;;  %v2091_v22 = vrot.slane %v2089_v49, 4  ;;  %v3339_v54 = vrot.slane %v5830_v53, 5  ;;  %v3288_v61 = vld [vmem:[#allocation2 + $0x48] sm:$0xe] }
  0xef   : > { %4482 = vmatmul.mubr.msk.bf16.gmra.mrb[12].mxu1 %vm1144_vm11, %v6259_v47  ;;  %4597 = vmatprep.mubr.msk.bf16.mxu0 %vm1144_vm11, %v4150_v51  ;;  %v3332_v51 = vrot.slane %v5806_v24, 5  ;;  %v4870_v24 = vld [vmem:[%s6234_s3 + $0x88] sm:$0xff]   ;;  %v4182_v13 = vcombine.low %v3319_v27, %v3322_v44  ;;  %v3329_v33 = vsel %vm5519_vm15, %v3327_v62, %v3328_v31  ;;  %v2095_v9 = vshll.u32 %v5612_v55, 16 }
  0xf0   : > { %4493 = vmatprep.mubr.msk.bf16.mxu1 %vm1144_vm11, %v4858_v32  ;;  %4610 = vmatpush3.bf16.msra.mxu0 %v4860_v20  ;;  %v1967_v20 = vld [vmem:[#allocation2 + $0x3c] sm:$0xf]  ;;  %v2112_v57 = vsel %vm5368_vm12, %v2107_v58, %v5644_v6  ;;  %v4871_v6 = vld [vmem:[%s6234_s3 + $0x90] sm:$0xff]   ;;  %v4169_v53 = vrot.slane %v3287_v18, 9  ;;  %v3342_v55 = vrot.slane %v5869_v1, 5  ;;  %v2124_v17 = vshrl.u32 %v1973_v56, 16 }
  0xf1   : > { %4611 = vmatprep.subr.bf16.mxu0 %v4863_v50  ;;  %v2076_v32 = vshrl.u32 %v1967_v20, 16  ;;  %v2079_v59 = vshll.u32 %v1967_v20, 16  ;;  %v3334_v7 = vrot.slane %v3332_v51, 4  ;;  %v6050_v15 = vcombine.low %v2112_v57, %v6260_v36  ;;  %v4872_v20 = vld [vmem:[%s6234_s3 + $0x98] sm:$0xff]   ;;  %v4865_v5 = vld [vmem:[#allocation2 + $0x48] sm:$0xff]   ;;  %v4867_v18 = vld [vmem:[#allocation2 + $0x60] sm:$0xff]  }
  0xf2   : > { %v2127_v42 = vshll.u32 %v1973_v56, 16  ;;  %v2137_v63 = vshrl.u32 %v5629_v23, 16  ;;  %v2097_v37 = vrot.slane %v2095_v9, 5  ;;  %v3349_v1 = vrot.slane %v5900_v45, 5  ;;  %v1976_v58 = vld [vmem:[#allocation2 + $0x60] sm:$0xf] }
  0xf3   : > { %v2078_v16 = vrot.slane %v2076_v32, 4  ;;  %v2081_v47 = vrot.slane %v2079_v59, 5  ;;  %v2126_v32 = vrot.slane %v2124_v17, 4  ;;  %v3353_v45 = vrot.slane %v5896_v12, 5  ;;  %v3290_v12 = vld [vmem:[#allocation2 + $0x60] sm:$0xe] }
  0xf4   : > { %4612 = vmatpush3.bf16.msra.mxu0 %v4863_v50  ;;  %v4168_v50 = vrot.slane %v3286_v19, 9  ;;  %v2129_v59 = vrot.slane %v2127_v42, 5  ;;  %v2139_v49 = vrot.slane %v2137_v63, 4  ;;  %v3360_v57 = vrot.slane %v5916_v39, 5  ;;  %v4874_v63 = vld [vmem:[#allocation2 + $0x68] sm:$0x1] }
  0xf5   : > { %v2082_v34 = vor.u32 %v2081_v47, %v2078_v16  ;;  %v3356_v39 = vrot.slane %v5923_v14, 5  ;;  %v3363_v56 = vrot.slane %v5949_v2, 5 }
  0xf6   : > { %4598 = vmatmul.mubr.msk.bf16.gmra.mrb[8].mxu0 %vm1144_vm11, %v4151_v48  ;;  %v6052_v48 = vrot.slane %v2085_v21, 5  ;;  %v3333_v4 = vsel %vm5519_vm15, %v4168_v50, %v3332_v51  ;;  %v4866_v51 = vld [vmem:[#allocation2 + $0x54] sm:$0xff]   ;;  %v2130_v47 = vor.u32 %v2129_v59, %v2126_v32  ;;  %v3362_v9 = vrot.slane %v3360_v57, 4 }
  0xf7   : > { %4494 = vmatmul.mubr.msk.bf16.vlgmr.msra.gmra.mrb[0].mxu1 %vm1144_vm11, %v4859_v29  ;;  %4601 = vmatprep.mubr.msk.bf16.mxu0 %vm1144_vm11, %v4152_v26  ;;  %v3346_v29 = vrot.slane %v5860_v38, 5  ;;  %v3341_v38 = vrot.slane %v3339_v54, 4  ;;  %v2083_v8 = vrot.slane %v2082_v34, 4  ;;  %v3289_v50 = vld [vmem:[#allocation2 + $0x54] sm:$0xe] }
  0xf8   : > { %4633 = vmatpush3.bf16.msra.mxu1 %v5956_v41  ;;  %4497 = vmatprep.mubr.msk.bf16.mxu1 %vm1144_vm11, %v4861_v10  ;;  %v3335_v41 = vrot.slane %v5846_v25, 5  ;;  %v3326_v25 = vsel %vm5519_vm15, %v4167_v30, %v3325_v28  ;;  %v2092_v46 = vor.u32 %v2091_v22, %v6052_v48  ;;  %v2133_v10 = vshll.u32 %v5629_v23, 16  ;;  %v4873_v22 = vld [vmem:[#allocation2 + $0x5c] sm:$0x1] }
  0xf9   : > { %4630 = vmatprep.subr.bf16.mxu1 %v4870_v24  ;;  %v4183_v26 = vcombine.low %v3326_v25, %v3329_v33  ;;  %v4170_v28 = vrot.slane %v3288_v61, 9  ;;  %v3348_v19 = vrot.slane %v3346_v29, 4  ;;  %v3340_v23 = vsel %vm5519_vm15, %v4169_v53, %v3339_v54 }
  0xfa   : > { %v3336_v11 = vsel %vm5519_vm15, %v3334_v7, %v3335_v41  ;;  %v2093_v44 = vrot.slane %v2092_v46, 4  ;;  %v6080_v21 = vrot.slane %v2133_v10, 5  ;;  %v3343_v30 = vsel %vm5519_vm15, %v3341_v38, %v3342_v55  ;;  %v6261_v41 = vld [vmem:[#allocation3_spill] sm:$0xff]  ;;  %v3291_v38 = vld [vmem:[#allocation2 + $0x6c] sm:$0xe] }
  0xfb   : > { %v4184_v27 = vcombine.low %v3333_v4, %v3336_v11  ;;  %v3347_v31 = vsel %vm5519_vm15, %v4170_v28, %v3346_v29  ;;  %v3350_v62 = vsel %vm5519_vm15, %v3348_v19, %v3349_v1  ;;  %v2151_v7 = vshll.u32 %v1976_v58, 16 }
  0xfc   : > { %4634 = vmatpush3.bf16.msra.mxu1 %v4870_v24  ;;  %v2088_v24 = vsel %vm5368_vm12, %v2083_v8, %v6052_v48  ;;  %v2157_v36 = vshll.u32 %v6261_v41, 16  ;;  %v4185_v16 = vcombine.low %v3340_v23, %v3343_v30  ;;  %v2140_v48 = vor.u32 %v2139_v49, %v6080_v21 }
  0xfd   : > { %4631 = vmatprep.subr.bf16.mxu1 %v4871_v6  ;;  %v4171_v25 = vrot.slane %v3289_v50, 9  ;;  %v3355_v33 = vrot.slane %v3353_v45, 4  ;;  %v4172_v54 = vrot.slane %v3290_v12, 9  ;;  %v2153_v34 = vrot.slane %v2151_v7, 5 }
  0xfe   : > { %4602 = vmatmul.mubr.msk.bf16.gmra.mrb[12].mxu0 %vm1144_vm11, %v4153_v0  ;;  %v2148_v0 = vshrl.u32 %v1976_v58, 16  ;;  %v2159_v46 = vrot.slane %v2157_v36, 5  ;;  %v2131_v29 = vrot.slane %v2130_v47, 4  ;;  %v3364_v17 = vsel %vm5519_vm15, %v3362_v9, %v3363_v56 }
  0xff   : > { %4498 = vmatmul.mubr.msk.bf16.gmra.mrb[4].mxu1 %vm1144_vm11, %v4862_v43  ;;  %4613 = vmatprep.mubr.msk.bf16.mxu0 %vm1144_vm11, %v4182_v13  ;;  %v2098_v13 = vsel %vm5368_vm12, %v2093_v44, %v2097_v37  ;;  %v2161_v43 = vshrl.u32 %v6261_v41, 16  ;;  %v3354_v14 = vsel %vm5519_vm15, %v4171_v25, %v3353_v45  ;;  %v3357_v55 = vsel %vm5519_vm15, %v3355_v33, %v3356_v39 }
 0x100   : > { %4501 = vmatprep.mubr.msk.bf16.mxu1 %vm1144_vm11, %v4864_v52  ;;  %4635 = vmatpush3.bf16.msra.mxu1 %v4871_v6  ;;  %v2143_v52 = vshll.u32 %v4873_v22, 16  ;;  %v4186_v6 = vcombine.low %v3347_v31, %v3350_v62  ;;  %v4058_v4 = vcombine.low %v2088_v24, %v2098_v13  ;;  %v2150_v11 = vrot.slane %v2148_v0, 4 }
 0x101   : > { %4632 = vmatprep.subr.bf16.mxu1 %v4872_v20  ;;  %v2163_v61 = vrot.slane %v2161_v43, 4  ;;  %v3361_v2 = vsel %vm5519_vm15, %v4172_v54, %v3360_v57  ;;  %v2136_v37 = vsel %vm5368_vm12, %v2131_v29, %v6080_v21  ;;  %v3370_v19 = vrot.slane %v5993_v35, 5 }
 0x102   : > { %v2145_v53 = vrot.slane %v2143_v52, 5  ;;  %v2154_v42 = vor.u32 %v2153_v34, %v2150_v11  ;;  %v4188_v8 = vcombine.low %v3361_v2, %v3364_v17 }
 0x103   : > { %v2164_v10 = vor.u32 %v2163_v61, %v2159_v46 }
 0x104   : > { %4636 = vmatpush3.bf16.msra.mxu1 %v4872_v20  ;;  %v3367_v20 = vrot.slane %v5947_v60, 5  ;;  %v4173_v60 = vrot.slane %v3291_v38, 9 }
 0x105   : > { %v2165_v32 = vrot.slane %v2164_v10, 4 }
 0x106   : > { %4614 = vmatmul.mubr.msk.bf16.vlgmr.msra.gmra.mrb[0].mxu0 %vm1144_vm11, %v4183_v26  ;;  %v2141_v26 = vrot.slane %v2140_v48, 4  ;;  %v3369_v44 = vrot.slane %v3367_v20, 4  ;;  %v3368_v21 = vsel %vm5519_vm15, %v4173_v60, %v3367_v20 }
 0x107   : > { %4502 = vmatmul.mubr.msk.bf16.gmra.mrb[8].mxu1 %vm1144_vm11, %v4865_v5  ;;  %4617 = vmatprep.mubr.msk.bf16.mxu0 %vm1144_vm11, %v4184_v27  ;;  %v2167_v27 = vshll.u32 %v4874_v63, 16  ;;  %v4187_v5 = vcombine.low %v3354_v14, %v3357_v55 }
 0x108   : > { %4505 = vmatprep.mubr.msk.bf16.mxu1 %vm1144_vm11, %v4866_v51  ;;  %v2146_v28 = vsel %vm5368_vm12, %v2141_v26, %v2145_v53  ;;  %v2155_v51 = vrot.slane %v2154_v42, 4  ;;  %v3371_v49 = vsel %vm5519_vm15, %v3369_v44, %v3370_v19 }
 0x109   : > { %v4060_v1 = vcombine.low %v2136_v37, %v2146_v28  ;;  %v2169_v59 = vrot.slane %v2167_v27, 5  ;;  %v4189_v23 = vcombine.low %v3368_v21, %v3371_v49 }
 0x10a   : > { %v2160_v35 = vsel %vm5368_vm12, %v2155_v51, %v2159_v46 }
 0x10b   : > { %v2170_v58 = vsel %vm5368_vm12, %v2165_v32, %v2169_v59 }
 0x10c   : > { %v4061_v30 = vcombine.low %v2160_v35, %v2170_v58 }
 0x10e   : > { %4618 = vmatmul.mubr.msk.bf16.gmra.mrb[4].mxu0 %vm1144_vm11, %v4185_v16 }
 0x10f   : > { %4506 = vmatmul.mubr.msk.bf16.gmra.mrb[12].mxu1 %vm1144_vm11, %v4867_v18  ;;  %4621 = vmatprep.mubr.msk.bf16.mxu0 %vm1144_vm11, %v4186_v6 }
 0x110   : > { %4525 = vmatprep.mubr.msk.bf16.mxu1 %vm1144_vm11, %v4058_v4 }
 0x116   : > { %4622 = vmatmul.mubr.msk.bf16.gmra.mrb[8].mxu0 %vm1144_vm11, %v4187_v5 }
 0x117   : > { %4526 = vmatmul.mubr.msk.bf16.vlgmr.msra.gmra.mrb[8].mxu1 %vm1144_vm11, %v6050_v15  ;;  %4625 = vmatprep.mubr.msk.bf16.mxu0 %vm1144_vm11, %v4188_v8 }
 0x118   : > { %4529 = vmatprep.mubr.msk.bf16.mxu1 %vm1144_vm11, %v4060_v1 }
 0x11e   : > { %4626 = vmatmul.mubr.msk.bf16.gmra.mrb[12].mxu0 %vm1144_vm11, %v4189_v23 }
 0x11f   : > { %4530 = vmatmul.mubr.msk.bf16.gmra.mrb[12].mxu1 %vm1144_vm11, %v4061_v30 }
 0x1ca   : > { %v4495_v15 = vpop.f32.mrb[0].mxu1 }
 0x1cb   : > { %v1876_v31 = vpop.f32.mrb[1].mxu1 }
 0x1cc   : > { %v4496_v45 = vpop.f32.mrb[2].mxu1 }
 0x1cd   : > { %v1879_v24 = vpop.f32.mrb[3].mxu1 }
 0x1d2   : > { %v4499_v40 = vpop.f32.mrb[4].mxu1 }
 0x1d3   : > { %v1892_v13 = vpop.f32.mrb[5].mxu1 }
 0x1d4   : > { %v4500_v62 = vpop.f32.mrb[6].mxu1 }
 0x1d5   : > { %v1895_v50 = vpop.f32.mrb[7].mxu1 }
 0x1d9   : > { %v4615_v57 = vpop.f32.mrb[0].mxu0 }
 0x1da   : > { %v4637_v12 = vadd.f32 %v4615_v57, %v4495_v15  ;;  %v3487_v3 = vpop.f32.mrb[1].mxu0 }
 0x1db   : > { %v4638_v0 = vadd.f32 %v3487_v3, %v1876_v31  ;;  %v4616_v7 = vpop.f32.mrb[2].mxu0 }
 0x1dc   : > { %v4242_v41 = vpack.c.bf16 %v4637_v12, %v4637_v12  ;;  %v4639_v36 = vadd.f32 %v4616_v7, %v4496_v45  ;;  %v3490_v43 = vpop.f32.mrb[3].mxu0  ;;  %v3607_v22 = vmul.f32 %v4637_v12, %v4637_v12  ;;  %v3569_v54 = vsel %vm1144_vm11, %v4637_v12, 0.0 }
 0x1dd   : > { %v3605_v16 = vmul.f32 %v4638_v0, %v4638_v0  ;;  %v4240_v47 = vpack.c.bf16 %v4638_v0, %v4638_v0  ;;  %v4640_v48 = vadd.f32 %v3490_v43, %v1879_v24  ;;  %v3566_v6 = vsel %vm1144_vm11, %v4638_v0, 0.0 }
 0x1de   : > { %3725 = vst.msk [vmem:[%s5013_s10 + $0x8] sm:$0xf] %vm706_vm0, %v4242_v41  ;;  %v4243_v52 = vpack.c.bf16 %v4639_v36, %v4639_v36  ;;  %v3608_v18 = vmul.f32 %v4639_v36, %v4639_v36  ;;  %v3624_v26 = vsel %vm1144_vm11, %v3607_v22, 0.0  ;;  %v3571_v55 = vsel %vm1144_vm11, %v4639_v36, 0.0 }
 0x1df   : > { %3723 = vst.msk [vmem:[%s5013_s10] sm:$0xf] %vm706_vm0, %v4240_v47  ;;  %v3567_v25 = vsel %vm1144_vm11, %v4640_v48, 0.0  ;;  %v3606_v33 = vmul.f32 %v4640_v48, %v4640_v48  ;;  %v4241_v39 = vpack.c.bf16 %v4640_v48, %v4640_v48  ;;  %v3621_v9 = vsel %vm1144_vm11, %v3605_v16, 0.0 }
 0x1e0   : > { %3726 = vst.msk [vmem:[%s5013_s10 + $0xc] sm:$0xf] %vm706_vm0, %v4243_v52  ;;  %v3568_v4 = vadd.f32 %v3567_v25, %v3566_v6  ;;  %v3626_v2 = vsel %vm1144_vm11, %v3608_v18, 0.0 }
 0x1e1   : > { %v3622_v56 = vsel %vm1144_vm11, %v3606_v33, 0.0  ;;  %3724 = vst.msk [vmem:[%s5013_s10 + $0x4] sm:$0xf] %vm706_vm0, %v4241_v39  ;;  %v4619_v11 = vpop.f32.mrb[4].mxu0 }
 0x1e2   : > { %v3570_v34 = vadd.f32 %v3569_v54, %v3568_v4  ;;  %v3623_v46 = vadd.f32 %v3622_v56, %v3621_v9  ;;  %v4641_v61 = vadd.f32 %v4619_v11, %v4499_v40  ;;  %v3503_v29 = vpop.f32.mrb[5].mxu0 }
 0x1e3   : > { %v4642_v53 = vadd.f32 %v3503_v29, %v1892_v13  ;;  %v4620_v14 = vpop.f32.mrb[6].mxu0 }
 0x1e4   : > { %v3625_v20 = vadd.f32 %v3624_v26, %v3623_v46  ;;  %v4246_v17 = vpack.c.bf16 %v4641_v61, %v4641_v61  ;;  %v3506_v42 = vpop.f32.mrb[7].mxu0  ;;  %v3572_v10 = vadd.f32 %v3571_v55, %v3570_v34  ;;  %v4643_v28 = vadd.f32 %v4620_v14, %v4500_v62 }
 0x1e5   : > { %v3573_v63 = vsel %vm1144_vm11, %v4642_v53, 0.0  ;;  %v3609_v27 = vmul.f32 %v4642_v53, %v4642_v53  ;;  %v4244_v38 = vpack.c.bf16 %v4642_v53, %v4642_v53  ;;  %v4644_v5 = vadd.f32 %v3506_v42, %v1895_v50 }
 0x1e6   : > { %3729 = vst.msk [vmem:[%s5013_s10 + $0x18] sm:$0xf] %vm706_vm0, %v4246_v17  ;;  %v3627_v37 = vadd.f32 %v3626_v2, %v3625_v20  ;;  %v3574_v8 = vadd.f32 %v3573_v63, %v3572_v10  ;;  %v4247_v19 = vpack.c.bf16 %v4643_v28, %v4643_v28  ;;  %v3611_v1 = vmul.f32 %v4641_v61, %v4641_v61 }
 0x1e7   : > { %v3628_v60 = vsel %vm1144_vm11, %v3609_v27, 0.0  ;;  %3727 = vst.msk [vmem:[%s5013_s10 + $0x10] sm:$0xf] %vm706_vm0, %v4244_v38  ;;  %v3575_v51 = vsel %vm1144_vm11, %v4644_v5, 0.0  ;;  %v3610_v32 = vmul.f32 %v4644_v5, %v4644_v5  ;;  %v4245_v59 = vpack.c.bf16 %v4644_v5, %v4644_v5 }
 0x1e8   : > { %v3629_v44 = vadd.f32 %v3628_v60, %v3627_v37  ;;  %3730 = vst.msk [vmem:[%s5013_s10 + $0x1c] sm:$0xf] %vm706_vm0, %v4247_v19  ;;  %v3576_v49 = vadd.f32 %v3575_v51, %v3574_v8  ;;  %v3577_v23 = vsel %vm1144_vm11, %v4641_v61, 0.0  ;;  %v3612_v30 = vmul.f32 %v4643_v28, %v4643_v28 }
 0x1e9   : > { %v4623_v21 = vpop.f32.mrb[8].mxu0  ;;  %v3630_v15 = vsel %vm1144_vm11, %v3610_v32, 0.0  ;;  %3728 = vst.msk [vmem:[%s5013_s10 + $0x14] sm:$0xf] %vm706_vm0, %v4245_v59  ;;  %v3632_v12 = vsel %vm1144_vm11, %v3611_v1, 0.0  ;;  %v3579_v3 = vsel %vm1144_vm11, %v4643_v28, 0.0 }
 0x1ea   : > { %v4527_v35 = vpop.f32.mrb[8].mxu1  ;;  %v3519_v58 = vpop.f32.mrb[9].mxu0  ;;  %v3578_v40 = vadd.f32 %v3577_v23, %v3576_v49  ;;  %v3631_v13 = vadd.f32 %v3630_v15, %v3629_v44  ;;  %v3634_v48 = vsel %vm1144_vm11, %v3612_v30, 0.0 }
 0x1eb   : > { %v4645_v31 = vadd.f32 %v4623_v21, %v4527_v35  ;;  %v2318_v45 = vpop.f32.mrb[9].mxu1  ;;  %v4624_v24 = vpop.f32.mrb[10].mxu0 }
 0x1ec   : > { %v4646_v62 = vadd.f32 %v3519_v58, %v2318_v45  ;;  %v4528_v50 = vpop.f32.mrb[10].mxu1  ;;  %v3522_v57 = vpop.f32.mrb[11].mxu0  ;;  %v3633_v36 = vadd.f32 %v3632_v12, %v3631_v13  ;;  %v3580_v43 = vadd.f32 %v3579_v3, %v3578_v40 }
 0x1ed   : > { %v4250_v0 = vpack.c.bf16 %v4645_v31, %v4645_v31  ;;  %v4647_v7 = vadd.f32 %v4624_v24, %v4528_v50  ;;  %v2321_v41 = vpop.f32.mrb[11].mxu1  ;;  %v3615_v39 = vmul.f32 %v4645_v31, %v4645_v31  ;;  %v3585_v53 = vsel %vm1144_vm11, %v4645_v31, 0.0 }
 0x1ee   : > { %v3581_v16 = vsel %vm1144_vm11, %v4646_v62, 0.0  ;;  %v3613_v47 = vmul.f32 %v4646_v62, %v4646_v62  ;;  %v4248_v22 = vpack.c.bf16 %v4646_v62, %v4646_v62  ;;  %v3635_v6 = vadd.f32 %v3634_v48, %v3633_v36 }
 0x1ef   : > { %3733 = vst.msk [vmem:[%s5013_s10 + $0x28] sm:$0xf] %vm706_vm0, %v4250_v0  ;;  %v3582_v52 = vadd.f32 %v3581_v16, %v3580_v43  ;;  %v4251_v33 = vpack.c.bf16 %v4647_v7, %v4647_v7  ;;  %v4648_v18 = vadd.f32 %v3522_v57, %v2321_v41  ;;  %v3640_v17 = vsel %vm1144_vm11, %v3615_v39, 0.0 }
 0x1f0   : > { %v3636_v25 = vsel %vm1144_vm11, %v3613_v47, 0.0  ;;  %3731 = vst.msk [vmem:[%s5013_s10 + $0x20] sm:$0xf] %vm706_vm0, %v4248_v22  ;;  %v3616_v42 = vmul.f32 %v4647_v7, %v4647_v7  ;;  %v3587_v38 = vsel %vm1144_vm11, %v4647_v7, 0.0 }
 0x1f1   : > { %v4627_v4 = vpop.f32.mrb[12].mxu0  ;;  %v3637_v54 = vadd.f32 %v3636_v25, %v3635_v6  ;;  %3734 = vst.msk [vmem:[%s5013_s10 + $0x2c] sm:$0xf] %vm706_vm0, %v4251_v33  ;;  %v3583_v11 = vsel %vm1144_vm11, %v4648_v18, 0.0  ;;  %v3614_v34 = vmul.f32 %v4648_v18, %v4648_v18  ;;  %v4249_v46 = vpack.c.bf16 %v4648_v18, %v4648_v18 }
 0x1f2   : > { %v4531_v9 = vpop.f32.mrb[12].mxu1  ;;  %v3535_v56 = vpop.f32.mrb[13].mxu0  ;;  %v3584_v14 = vadd.f32 %v3583_v11, %v3582_v52  ;;  %v3642_v32 = vsel %vm1144_vm11, %v3616_v42, 0.0 }
 0x1f3   : > { %v4649_v61 = vadd.f32 %v4627_v4, %v4531_v9  ;;  %v2334_v29 = vpop.f32.mrb[13].mxu1  ;;  %v4628_v26 = vpop.f32.mrb[14].mxu0  ;;  %v3638_v10 = vsel %vm1144_vm11, %v3614_v34, 0.0  ;;  %3732 = vst.msk [vmem:[%s5013_s10 + $0x24] sm:$0xf] %vm706_vm0, %v4249_v46 }
 0x1f4   : > { %v4650_v55 = vadd.f32 %v3535_v56, %v2334_v29  ;;  %v4532_v2 = vpop.f32.mrb[14].mxu1  ;;  %v3538_v20 = vpop.f32.mrb[15].mxu0  ;;  %v3586_v37 = vadd.f32 %v3585_v53, %v3584_v14  ;;  %v3639_v28 = vadd.f32 %v3638_v10, %v3637_v54 }
 0x1f5   : > { %v4254_v63 = vpack.c.bf16 %v4649_v61, %v4649_v61  ;;  %v2337_v27 = vpop.f32.mrb[15].mxu1  ;;  %v4651_v44 = vadd.f32 %v4628_v26, %v4532_v2  ;;  %v3619_v15 = vmul.f32 %v4649_v61, %v4649_v61  ;;  %v3593_v40 = vsel %vm1144_vm11, %v4649_v61, 0.0 }
 0x1f6   : > { %v3617_v5 = vmul.f32 %v4650_v55, %v4650_v55  ;;  %v3589_v8 = vsel %vm1144_vm11, %v4650_v55, 0.0  ;;  %v4252_v60 = vpack.c.bf16 %v4650_v55, %v4650_v55  ;;  %v4652_v19 = vadd.f32 %v3538_v20, %v2337_v27 }
 0x1f7   : > { %3737 = vst.msk [vmem:[%s5013_s10 + $0x38] sm:$0xf] %vm706_vm0, %v4254_v63  ;;  %v3641_v1 = vadd.f32 %v3640_v17, %v3639_v28  ;;  %v3588_v51 = vadd.f32 %v3587_v38, %v3586_v37  ;;  %v4255_v21 = vpack.c.bf16 %v4651_v44, %v4651_v44  ;;  %v3620_v13 = vmul.f32 %v4651_v44, %v4651_v44 }
 0x1f8   : > { %v3644_v59 = vsel %vm1144_vm11, %v3617_v5, 0.0  ;;  %3735 = vst.msk [vmem:[%s5013_s10 + $0x30] sm:$0xf] %vm706_vm0, %v4252_v60  ;;  %v3591_v49 = vsel %vm1144_vm11, %v4652_v19, 0.0  ;;  %v3618_v23 = vmul.f32 %v4652_v19, %v4652_v19  ;;  %v4253_v30 = vpack.c.bf16 %v4652_v19, %v4652_v19 }
 0x1f9   : > { %v3590_v35 = vadd.f32 %v3589_v8, %v3588_v51  ;;  %v3643_v58 = vadd.f32 %v3642_v32, %v3641_v1  ;;  %3738 = vst.msk [vmem:[%s5013_s10 + $0x3c] sm:$0xf] %vm706_vm0, %v4255_v21  ;;  %v3648_v57 = vsel %vm1144_vm11, %v3619_v15, 0.0  ;;  %v3595_v12 = vsel %vm1144_vm11, %v4651_v44, 0.0 }
 0x1fa   : > { %v3646_v24 = vsel %vm1144_vm11, %v3618_v23, 0.0  ;;  %3736 = vst.msk [vmem:[%s5013_s10 + $0x34] sm:$0xf] %vm706_vm0, %v4253_v30  ;;  %v3650_v7 = vsel %vm1144_vm11, %v3620_v13, 0.0 }
 0x1fb   : > { %v3645_v31 = vadd.f32 %v3644_v59, %v3643_v58  ;;  %v3592_v45 = vadd.f32 %v3591_v49, %v3590_v35 }
 0x1fd   : > { %v3594_v62 = vadd.f32 %v3593_v40, %v3592_v45  ;;  %v3647_v50 = vadd.f32 %v3646_v24, %v3645_v31 }
 0x1ff   : > { %v3596_v3 = vadd.f32 %v3595_v12, %v3594_v62  ;;  %v3649_v0 = vadd.f32 %v3648_v57, %v3647_v50 }
 0x201   : > { %v3597_v41 = vrot.slane %v3596_v3, 4  ;;  %v3651_v36 = vadd.f32 %v3650_v7, %v3649_v0 }
 0x203   : > { %v3598_v43 = vadd.f32 %v3597_v41, %v3596_v3  ;;  %v3652_v16 = vrot.slane %v3651_v36, 4 }
 0x205   : > { %v3599_v47 = vrot.slane %v3598_v43, 2  ;;  %v3653_v48 = vadd.f32 %v3652_v16, %v3651_v36 }
 0x207   : > { %v3600_v22 = vadd.f32 %v3599_v47, %v3598_v43  ;;  %v3654_v52 = vrot.slane %v3653_v48, 2 }
 0x209   : > { %v3601_v6 = vrot.slane %v3600_v22, 1  ;;  %v3655_v25 = vadd.f32 %v3654_v52, %v3653_v48 }
 0x20b   : > { %v3602_v33 = vadd.f32 %v3601_v6, %v3600_v22  ;;  %v3656_v39 = vrot.slane %v3655_v25, 1 }
 0x20d   : > { %3604 = vst.msk [vmem:[%s318_s12] sm:$0x1] %vm714_vm3, %v3602_v33  ;;  %v3657_v18 = vadd.f32 %v3656_v39, %v3655_v25 }
 0x20f   : > { %3658 = vst.msk [vmem:[%s325_s28] sm:$0x1] %vm714_vm3, %v3657_v18 }
 0x210 PF: > { %s17_s25 = sadd.s32 1, %s4913_s25   ;;  %s6262_s21 = smov %s4905_s23 }
 0x211   : > { %p14_p10 = scmp.ge.s32.totalorder %s17_s25, 6   ;;  %s6263_s22 = smov %s4909_s24 }
 0x212   : > { %s6264_s23 = smov %s6267_s26  ;;  %s6265_s24 = smov %s6271_s27 }
 0x213   :  { %16 = sbr.rel (!%p14_p10) target bundleno = 3 (0x3), region = 109 }

// kernel: _nr_block_forward.3
= control target key start
LH: loop header
LB: loop body
LE: loop exit
PB: predicated region body
PF: predicated region fallthrough
CT: control target
= control target key end

     0   :  { %s5568_s21 = smov 0   ;;  %s5570_s22 = smov 0   ;;  %s6914_s0 = inlined_call_operand.vmem [shape: bf16[2,8,16,64], index: 0, kind: input, shape index: {}, may-alias: {0,1,2}]   ;;  %s6915_s1 = inlined_call_operand.vmem [shape: bf16[2,8,16,64], index: 1, kind: input, shape index: {}, may-alias: {0,1,2}]   ;;  %s6916_s2 = inlined_call_operand.vmem [shape: bf16[2,8,16,64], index: 2, kind: input, shape index: {}, may-alias: {0,1,2}]   ;;  %s6917_s3 = inlined_call_operand.vmem [shape: bf16[9,64,64], index: 3, kind: input, shape index: {}]   ;;  %s6918_s4 = inlined_call_operand.vmem [shape: bf16[4,10,16,64], index: 4, kind: output, shape index: {0}]   ;;  %s6919_s5 = inlined_call_operand.vmem [shape: f32[4,1,64], index: 5, kind: output, shape index: {1}]   ;;  %s6920_s6 = inlined_call_operand.vmem [shape: f32[4,1,64], index: 6, kind: output, shape index: {2}]  }
   0x1   :  { %s5572_s23 = smov 0   ;;  %s5574_s24 = smov 0  }
   0x2   :  { %s5576_s25 = smov 0  }
   0x3 LB: > { %s26_s26 = sadd.s32 1, %s5521_s23  ;;  %s29_s27 = sadd.s32 1, %s5525_s24  ;;  %s5529_s25 = sphi %s5576_s25, %s17_s25   ;;  %s5525_s24 = sphi %s5574_s24, %s6949_s24   ;;  %s5521_s23 = sphi %s5572_s23, %s6948_s23   ;;  %s5517_s22 = sphi %s5570_s22, %s6947_s22   ;;  %s5513_s21 = sphi %s5568_s21, %s6946_s21  }
   0x4   : > { %p27_p0 = scmp.ge.s32.totalorder %s26_s26, 2  ;;  %p4426_p1 = scmp.ge.s32.totalorder %s5529_s25, 1 }
   0x5   : > { %p313_p2 = scmp.lt.s32.totalorder %s5529_s25, 5 }
   0x6   : > { %s6951_s26 = smov (%p27_p0, %s26_s26), 0  ;;  %s6953_s27 = smov (!%p27_p0, %s29_s27), %s5525_s24 }
   0x7   : > { %p314_p3 = pnand %p4426_p1, %p313_p2  ;;  %p31_p4 = scmp.ge.s32.totalorder %s6953_s27, 2 }
   0x9   : > { %s6955_s27 = smov (%p31_p4, %s6953_s27), 0  ;;  %317 = sbr.rel (%p314_p3) target bundleno = 560 (0x230), region = 36 }
  0x10   : > { %vm455_vm0 = vcmask 516096   ;;  %vm456_vm1 = vsmask.f32 256  ;;  %v464_v0 = vld [vmem:[#allocation2 + $0x18] sm:$0x1]  ;;  %s4448_s28 = sshll.u32 %s5517_s22, 1 }
  0x11   : > { %vm5605_vm2 = vmand %vm455_vm0, %vm456_vm1  ;;  %v467_v2 = vld [vmem:[#allocation2 + $0x24] sm:$0x1]  ;;  %v470_v3 = vld [vmem:[#allocation2 + $0x30] sm:$0x1]  ;;  %vm494_vm3 = vsmask.f32 7938  ;;  %s5610_s29 = sadd.s32 %s5513_s21, %s4448_s28 }
  0x12   : > { %v465_v4 = vsel %vm5605_vm2, 0, %v464_v0  ;;  %v468_v5 = vsel %vm5605_vm2, 0, %v467_v2  ;;  %v471_v6 = vsel %vm5605_vm2, 0, %v470_v3  ;;  %v473_v7 = vld [vmem:[#allocation2 + $0x3c] sm:$0x1]  ;;  %p433_p5 = scmp.lt.s32.totalorder %s5610_s29, 3  ;;  %vm5623_vm4 = vmand %vm455_vm0, %vm494_vm3 }
  0x13   : > { %466 = vst [vmem:[#allocation2 + $0x18] sm:$0x1] %v465_v4  ;;  %469 = vst [vmem:[#allocation2 + $0x24] sm:$0x1] %v468_v5  ;;  %v474_v8 = vsel %vm5605_vm2, 0, %v473_v7  ;;  %s5628_s30 = sshll.u32 %s5513_s21, 2 }
  0x14   : > { %472 = vst [vmem:[#allocation2 + $0x30] sm:$0x1] %v471_v6  ;;  %v476_v9 = vld [vmem:[#allocation2 + $0x48] sm:$0x1]  ;;  %v479_v10 = vld [vmem:[#allocation2 + $0x54] sm:$0x1] }
  0x15   : > { %475 = vst [vmem:[#allocation2 + $0x3c] sm:$0x1] %v474_v8  ;;  %v477_v12 = vsel %vm5605_vm2, 0, %v476_v9  ;;  %v480_v13 = vsel %vm5605_vm2, 0, %v479_v10  ;;  %v482_v14 = vld [vmem:[#allocation2 + $0x60] sm:$0x1] }
  0x16   : > { %v485_v15 = vld [vmem:[#allocation2 + $0x6c] sm:$0x1]  ;;  %478 = vst [vmem:[#allocation2 + $0x48] sm:$0x1] %v477_v12  ;;  %481 = vst [vmem:[#allocation2 + $0x54] sm:$0x1] %v480_v13 }
  0x17   : > { %v483_v16 = vsel %vm5605_vm2, 0, %v482_v14  ;;  %v486_v17 = vsel %vm5605_vm2, 0, %v485_v15  ;;  %v502_v18 = vld [vmem:[#allocation2 + $0x20] sm:$0x1]  ;;  %v505_v19 = vld [vmem:[#allocation2 + $0x2c] sm:$0x1] }
  0x18   : > { %484 = vst [vmem:[#allocation2 + $0x60] sm:$0x1] %v483_v16  ;;  %487 = vst [vmem:[#allocation2 + $0x6c] sm:$0x1] %v486_v17  ;;  %v503_v20 = vsel %vm5623_vm4, 0, %v502_v18  ;;  %v506_v21 = vsel %vm5623_vm4, 0, %v505_v19 }
  0x19   : > { %v508_v22 = vld [vmem:[#allocation2 + $0x38] sm:$0x1]  ;;  %v511_v23 = vld [vmem:[#allocation2 + $0x44] sm:$0x1]  ;;  %504 = vst [vmem:[#allocation2 + $0x20] sm:$0x1] %v503_v20 }
  0x1a   : > { %507 = vst [vmem:[#allocation2 + $0x2c] sm:$0x1] %v506_v21  ;;  %v509_v24 = vsel %vm5623_vm4, 0, %v508_v22  ;;  %v512_v25 = vsel %vm5623_vm4, 0, %v511_v23  ;;  %v514_v26 = vld [vmem:[#allocation2 + $0x50] sm:$0x1] }
  0x1b   : > { %v517_v27 = vld [vmem:[#allocation2 + $0x5c] sm:$0x1]  ;;  %510 = vst [vmem:[#allocation2 + $0x38] sm:$0x1] %v509_v24  ;;  %513 = vst [vmem:[#allocation2 + $0x44] sm:$0x1] %v512_v25 }
  0x1c   : > { %v515_v28 = vsel %vm5623_vm4, 0, %v514_v26  ;;  %v518_v29 = vsel %vm5623_vm4, 0, %v517_v27  ;;  %v520_v30 = vld [vmem:[#allocation2 + $0x68] sm:$0x1]  ;;  %v523_v31 = vld [vmem:[#allocation2 + $0x74] sm:$0x1] }
  0x1d   : > { %516 = vst [vmem:[#allocation2 + $0x50] sm:$0x1] %v515_v28  ;;  %519 = vst [vmem:[#allocation2 + $0x5c] sm:$0x1] %v518_v29  ;;  %v521_v32 = vsel %vm5623_vm4, 0, %v520_v30  ;;  %v524_v33 = vsel %vm5623_vm4, 0, %v523_v31 }
  0x1e   : > { %s6957_s29 = smov (!%p433_p5, %s5610_s29), 3  ;;  %v458_v34 = vld [vmem:[#allocation2] sm:$0x1]  ;;  %522 = vst [vmem:[#allocation2 + $0x68] sm:$0x1] %v521_v32  ;;  %s5662_s7 = sadd.s32 4294967295, %s5628_s30 }
  0x1f   : > { %525 = vst [vmem:[#allocation2 + $0x74] sm:$0x1] %v524_v33  ;;  %v459_v35 = vsel %vm5605_vm2, 0, %v458_v34  ;;  %v461_v36 = vld [vmem:[#allocation2 + $0xc] sm:$0x1]  ;;  %s5362_s8 = smul.u32 80, %s6957_s29  ;;  %s444_s11 = scalar_lea.vmem %s6919_s5, %s6957_s29 }
  0x20   : > { %v488_v37 = vld [vmem:[#allocation2 + $0x78] sm:$0x1]  ;;  %460 = vst [vmem:[#allocation2] sm:$0x1] %v459_v35  ;;  %v462_v38 = vsel %vm5605_vm2, 0, %v461_v36  ;;  %p388_p6 = scmp.gt.s32.totalorder %s5662_s7, 0 }
  0x21   : > { %v489_v39 = vsel %vm5605_vm2, 0, %v488_v37  ;;  %v491_v40 = vld [vmem:[#allocation2 + $0x84] sm:$0x1]  ;;  %463 = vst [vmem:[#allocation2 + $0xc] sm:$0x1] %v462_v38  ;;  %s5683_s17 = scalar_lea.vmem %s6918_s4, %s5362_s8  ;;  %p390_p7 = scmp.lt.s32.totalorder %s5517_s22, 1 }
  0x22   : > { %490 = vst [vmem:[#allocation2 + $0x78] sm:$0x1] %v489_v39  ;;  %v492_v41 = vsel %vm5605_vm2, 0, %v491_v40  ;;  %v496_v42 = vld [vmem:[#allocation2 + $0x8] sm:$0x1]  ;;  %s389_s18 = scalar_select %p388_p6, %s5662_s7, 0 }
  0x23   : > { %v499_v43 = vld [vmem:[#allocation2 + $0x14] sm:$0x1]  ;;  %493 = vst [vmem:[#allocation2 + $0x84] sm:$0x1] %v492_v41  ;;  %v497_v44 = vsel %vm5623_vm4, 0, %v496_v42  ;;  %p4429_p8 = scmp.lt.s32.totalorder %s5662_s7, 7 }
  0x24   : > { %v500_v45 = vsel %vm5623_vm4, 0, %v499_v43  ;;  %v526_v46 = vld [vmem:[#allocation2 + $0x80] sm:$0x1]  ;;  %v529_v47 = vld [vmem:[#allocation2 + $0x8c] sm:$0x1]  ;;  %s4795_s19 = sadd.s32 4, %s5628_s30 }
  0x25   : > { %498 = vst [vmem:[#allocation2 + $0x8] sm:$0x1] %v497_v44  ;;  %501 = vst [vmem:[#allocation2 + $0x14] sm:$0x1] %v500_v45  ;;  %v527_v48 = vsel %vm5623_vm4, 0, %v526_v46  ;;  %v530_v49 = vsel %vm5623_vm4, 0, %v529_v47 }
  0x26   : > { %528 = vst [vmem:[#allocation2 + $0x80] sm:$0x1] %v527_v48  ;;  %531 = vst [vmem:[#allocation2 + $0x8c] sm:$0x1] %v530_v49  ;;  %s6959_s22 = smov (!%p390_p7, %s5517_s22), 1  ;;  %s6961_s18 = smov (!%p4429_p8, %s389_s18), 7 }
  0x27   : > { %p406_p9 = scmp.lt.s32.totalorder %s5628_s30, 7  ;;  %s4434_s20 = sshll.u32 %s6961_s18, 1  ;;  %vm540_vm5 = vsmask.f32 4368  ;;  %vm623_vm6 = vcmask 519168  }
  0x28   : > { %s5699_s28 = sshll.u32 %s6959_s22, 4  ;;  %p5702_p10 = scmp.lt.s32.totalorder %s4795_s19, 7  ;;  %v625_v59 = vld [vmem:[#allocation2 + $0x18] sm:$0xf]  ;;  %v630_v60 = vld [vmem:[#allocation2 + $0x20] sm:$0x1]  ;;  %vm5731_vm7 = vmand %vm623_vm6, %vm494_vm3 }
  0x29   : > { %s396_s8 = sadd.s32 %s5699_s28, %s4434_s20  ;;  %s6963_s30 = smov (!%p406_p9, %s5628_s30), 7  ;;  %v633_v61 = vld [vmem:[#allocation2 + $0x24] sm:$0xf]  ;;  %v637_v5 = vld [vmem:[#allocation2 + $0x2c] sm:$0x1]  ;;  %vm5738_vm8 = vmor %vm456_vm1, %vm540_vm5 }
  0x2a   : > { %s4436_s10 = sshll.u32 %s396_s8, 2  ;;  %s6965_s19 = smov (!%p5702_p10, %s4795_s19), 7  ;;  %v640_v6 = vld [vmem:[#allocation2 + $0x30] sm:$0xf]  ;;  %v647_v18 = vld [vmem:[#allocation2 + $0x3c] sm:$0xf] }
  0x2b   : > { %s398_s7 = scalar_lea.vmem %s6914_s0, %s4436_s10  ;;  %s4438_s22 = sshll.u32 %s6963_s30, 1  ;;  %v644_v29 = vld [vmem:[#allocation2 + $0x38] sm:$0x1]  ;;  %v651_v30 = vld [vmem:[#allocation2 + $0x44] sm:$0x1] }
  0x2c   : > { %v5710_v50 = vld [vmem:[%s398_s7] sm:$0xf]  ;;  %v5712_v51 = vld [vmem:[%s398_s7 + $0x4] sm:$0xf]  ;;  %s410_s15 = sadd.s32 %s4438_s22, %s5699_s28  ;;  %s6967_s19 = smov (!%p5702_p10, %s6965_s19), 7 }
  0x2d   : > { %s4440_s16 = sshll.u32 %s410_s15, 2  ;;  %s4445_s30 = sshll.u32 %s6967_s19, 1  ;;  %v654_v44 = vld [vmem:[#allocation2 + $0x48] sm:$0xf]  ;;  %v661_v45 = vld [vmem:[#allocation2 + $0x54] sm:$0xf] }
  0x2e   : > { %s5720_s14 = scalar_lea.vmem %s6915_s1, %s4440_s16  ;;  %s424_s8 = sadd.s32 %s4445_s30, %s5699_s28 }
  0x2f   : > { %v532_v52 = vld [vmem:[%s5720_s14] sm:$0xf]  ;;  %v533_v53 = vld [vmem:[%s5720_s14 + $0x4] sm:$0xf]  ;;  %v534_v58 = vld [vmem:[%s5720_s14 + $0x8] sm:$0xf] }
  0x30   : > { %v543_v54 = vshrl.u32 %v532_v52, 16  ;;  %v546_v55 = vshll.u32 %v532_v52, 16  ;;  %v551_v56 = vshrl.u32 %v533_v53, 16  ;;  %v554_v57 = vshll.u32 %v533_v53, 16  ;;  %v535_v0 = vld [vmem:[%s5720_s14 + $0xc] sm:$0xf] }
  0x31   : > { %v560_v62 = vshrl.u32 %v534_v58, 16  ;;  %v563_v63 = vshll.u32 %v534_v58, 16  ;;  %v568_v7 = vshrl.u32 %v535_v0, 16  ;;  %v536_v8 = vld [vmem:[%s5720_s14 + $0x10] sm:$0xf]  ;;  %s4447_s19 = sshll.u32 %s424_s8, 2 }
  0x32   : > { %v545_v2 = vrot.slane %v543_v54, 7  ;;  %v553_v4 = vrot.slane %v551_v56, 7  ;;  %v571_v11 = vshll.u32 %v535_v0, 16  ;;  %v577_v12 = vshrl.u32 %v536_v8, 16  ;;  %s426_s10 = scalar_lea.vmem %s6916_s2, %s4447_s19  ;;  %v537_v19 = vld [vmem:[%s5720_s14 + $0x14] sm:$0xf] }
  0x33   : > { %v562_v10 = vrot.slane %v560_v62, 7  ;;  %v580_v13 = vshll.u32 %v536_v8, 16  ;;  %v5746_v20 = vld [vmem:[%s426_s10] sm:$0xf]  ;;  %v5748_v21 = vld [vmem:[%s426_s10 + $0x4] sm:$0xf] }
  0x34   : > { %v548_v14 = vor.u32 %v546_v55, %v545_v2  ;;  %v549_v15 = vrot.slane %v545_v2, 4  ;;  %v556_v16 = vor.u32 %v554_v57, %v553_v4  ;;  %v558_v17 = vrot.slane %v553_v4, 4  ;;  %v538_v31 = vld [vmem:[%s5720_s14 + $0x18] sm:$0xf]  ;;  %v539_v40 = vld [vmem:[%s5720_s14 + $0x1c] sm:$0xf] }
  0x35   : > { %v565_v22 = vor.u32 %v563_v63, %v562_v10  ;;  %v566_v23 = vrot.slane %v562_v10, 4  ;;  %v570_v24 = vrot.slane %v568_v7, 7  ;;  %v579_v37 = vrot.slane %v577_v12, 7  ;;  %v658_v52 = vld [vmem:[#allocation2 + $0x50] sm:$0x1]  ;;  %p4452_p11 = scmp.ne.s32.totalorder %s5513_s21, 0 }
  0x36   : > { %v626_v25 = vsel %vm5731_vm7, %v548_v14, %v625_v59  ;;  %v557_v26 = vsel %vm5738_vm8, %v549_v15, %v556_v16  ;;  %v631_v27 = vsel %vm5605_vm2, %v558_v17, %v630_v60  ;;  %v634_v28 = vsel %vm5731_vm7, %v548_v14, %v633_v61  ;;  %v665_v54 = vld [vmem:[#allocation2 + $0x5c] sm:$0x1]  ;;  %v668_v62 = vld [vmem:[#allocation2 + $0x60] sm:$0xf]  ;;  %v675_v63 = vld [vmem:[#allocation2 + $0x6c] sm:$0xf] }
  0x37   : > { %627 = vst [vmem:[#allocation2 + $0x18] sm:$0xf] %v626_v25  ;;  %629 = vst.msk [vmem:[#allocation2 + $0x1c] sm:$0xf] %vm623_vm6, %v557_v26  ;;  %v638_v32 = vsel %vm5605_vm2, %v558_v17, %v637_v5  ;;  %v641_v33 = vsel %vm5731_vm7, %v565_v22, %v640_v6  ;;  %v573_v34 = vor.u32 %v571_v11, %v570_v24  ;;  %v575_v35 = vrot.slane %v570_v24, 4 }
  0x38   : > { %636 = vst.msk [vmem:[#allocation2 + $0x28] sm:$0xf] %vm623_vm6, %v557_v26  ;;  %632 = vst [vmem:[#allocation2 + $0x20] sm:$0x1] %v631_v27  ;;  %v648_v36 = vsel %vm5731_vm7, %v565_v22, %v647_v18  ;;  %v585_v38 = vshrl.u32 %v537_v19, 16  ;;  %v588_v39 = vshll.u32 %v537_v19, 16  ;;  %v582_v47 = vor.u32 %v580_v13, %v579_v37 }
  0x39   : > { %635 = vst [vmem:[#allocation2 + $0x24] sm:$0xf] %v634_v28  ;;  %639 = vst [vmem:[#allocation2 + $0x2c] sm:$0x1] %v638_v32  ;;  %v574_v41 = vsel %vm5738_vm8, %v566_v23, %v573_v34  ;;  %v645_v42 = vsel %vm5605_vm2, %v575_v35, %v644_v29  ;;  %v652_v43 = vsel %vm5605_vm2, %v575_v35, %v651_v30  ;;  %v594_v46 = vshrl.u32 %v538_v31, 16 }
  0x3a   : > { %642 = vst [vmem:[#allocation2 + $0x30] sm:$0xf] %v641_v33  ;;  %649 = vst [vmem:[#allocation2 + $0x3c] sm:$0xf] %v648_v36  ;;  %v583_v48 = vrot.slane %v579_v37, 4  ;;  %v587_v49 = vrot.slane %v585_v38, 7  ;;  %v655_v58 = vsel %vm5731_vm7, %v582_v47, %v654_v44  ;;  %v662_v61 = vsel %vm5731_vm7, %v582_v47, %v661_v45 }
  0x3b   : > { %643 = vst.msk [vmem:[#allocation2 + $0x34] sm:$0xf] %vm623_vm6, %v574_v41  ;;  %650 = vst.msk [vmem:[#allocation2 + $0x40] sm:$0xf] %vm623_vm6, %v574_v41  ;;  %v597_v53 = vshll.u32 %v538_v31, 16  ;;  %v596_v55 = vrot.slane %v594_v46, 7 }
  0x3c   : > { %646 = vst [vmem:[#allocation2 + $0x38] sm:$0x1] %v645_v42  ;;  %653 = vst [vmem:[#allocation2 + $0x44] sm:$0x1] %v652_v43  ;;  %v602_v56 = vshrl.u32 %v539_v40, 16  ;;  %v605_v57 = vshll.u32 %v539_v40, 16  ;;  %v590_v59 = vor.u32 %v588_v39, %v587_v49 }
  0x3d   : > { %v592_v60 = vrot.slane %v587_v49, 4  ;;  %656 = vst [vmem:[#allocation2 + $0x48] sm:$0xf] %v655_v58  ;;  %663 = vst [vmem:[#allocation2 + $0x54] sm:$0xf] %v662_v61  ;;  %v599_v0 = vor.u32 %v597_v53, %v596_v55  ;;  %v600_v2 = vrot.slane %v596_v55, 4 }
  0x3e   : > { %v604_v4 = vrot.slane %v602_v56, 7  ;;  %v591_v5 = vsel %vm5738_vm8, %v583_v48, %v590_v59  ;;  %v672_v8 = vld [vmem:[#allocation2 + $0x68] sm:$0x1]  ;;  %v679_v10 = vld [vmem:[#allocation2 + $0x74] sm:$0x1]  ;;  %689 = sbr.rel (%p4452_p11) target bundleno = 72 (0x48), region = 40 }
  0x3f   : > { %v659_v6 = vsel %vm5605_vm2, %v592_v60, %v658_v52  ;;  %v666_v7 = vsel %vm5605_vm2, %v592_v60, %v665_v54  ;;  %657 = vst.msk [vmem:[#allocation2 + $0x4c] sm:$0xf] %vm623_vm6, %v591_v5  ;;  %664 = vst.msk [vmem:[#allocation2 + $0x58] sm:$0xf] %vm623_vm6, %v591_v5  ;;  %v669_v11 = vsel %vm5731_vm7, %v599_v0, %v668_v62  ;;  %v690_v18 = vld [vmem:[#allocation2] sm:$0xf] (!%p4452_p11) }
  0x40   : > { %660 = vst [vmem:[#allocation2 + $0x50] sm:$0x1] %v659_v6  ;;  %667 = vst [vmem:[#allocation2 + $0x5c] sm:$0x1] %v666_v7  ;;  %v607_v12 = vor.u32 %v605_v57, %v604_v4  ;;  %v609_v13 = vrot.slane %v604_v4, 4  ;;  %v676_v14 = vsel %vm5731_vm7, %v599_v0, %v675_v63  ;;  %v691_v22 = vsel (!%p4452_p11), %vm5731_vm7, 0, %v690_v18 }
  0x41   : > { %670 = vst [vmem:[#allocation2 + $0x60] sm:$0xf] %v669_v11  ;;  %677 = vst [vmem:[#allocation2 + $0x6c] sm:$0xf] %v676_v14  ;;  %v694_v19 = vld [vmem:[#allocation2 + $0x8] sm:$0x1] (!%p4452_p11) }
  0x42   : > { %v608_v15 = vsel %vm5738_vm8, %v600_v2, %v607_v12  ;;  %v673_v16 = vsel %vm5605_vm2, %v609_v13, %v672_v8  ;;  %v680_v17 = vsel %vm5605_vm2, %v609_v13, %v679_v10  ;;  %v5531_v23 = vmov (!%p4452_p11), 0   ;;  %v697_v25 = vld [vmem:[#allocation2 + $0xc] sm:$0xf] (!%p4452_p11)  ;;  %v701_v26 = vld [vmem:[#allocation2 + $0x14] sm:$0x1] (!%p4452_p11) }
  0x43   : > { %671 = vst.msk [vmem:[#allocation2 + $0x64] sm:$0xf] %vm623_vm6, %v608_v15  ;;  %678 = vst.msk [vmem:[#allocation2 + $0x70] sm:$0xf] %vm623_vm6, %v608_v15  ;;  %v695_v24 = vsel (!%p4452_p11), %vm5605_vm2, 0, %v694_v19  ;;  %v698_v27 = vsel (!%p4452_p11), %vm5731_vm7, 0, %v697_v25 }
  0x44   : > { %674 = vst [vmem:[#allocation2 + $0x68] sm:$0x1] %v673_v16  ;;  %681 = vst [vmem:[#allocation2 + $0x74] sm:$0x1] %v680_v17  ;;  %v702_v28 = vsel (!%p4452_p11), %vm5605_vm2, 0, %v701_v26 }
  0x45   : > { %693 = vst.msk [vmem:[#allocation2 + $0x4] sm:$0xf] %vm623_vm6, %v5531_v23  ;;  %700 = vst.msk [vmem:[#allocation2 + $0x10] sm:$0xf] %vm623_vm6, %v5531_v23 }
  0x46   : > { %692 = vst [vmem:[#allocation2] sm:$0xf] %v691_v22  ;;  %696 = vst [vmem:[#allocation2 + $0x8] sm:$0x1] %v695_v24 }
  0x47   : > { %699 = vst [vmem:[#allocation2 + $0xc] sm:$0xf] %v698_v27  ;;  %703 = vst [vmem:[#allocation2 + $0x14] sm:$0x1] %v702_v28 }
  0x48 PF: > { %p4453_p12 = scmp.le.s32.totalorder %s5513_s21, 0 }
  0x49   : > { %v709_v29 = vshrl.u32 (!%p4453_p12), %v5710_v50, 16  ;;  %v712_v30 = vshll.u32 (!%p4453_p12), %v5710_v50, 16  ;;  %v717_v31 = vshrl.u32 (!%p4453_p12), %v5712_v51, 16  ;;  %v720_v32 = vshll.u32 (!%p4453_p12), %v5712_v51, 16 }
  0x4a   : > { %707 = sbr.rel (%p4453_p12) target bundleno = 83 (0x53), region = 44 }
  0x4b   : > { %v711_v33 = vrot.slane (!%p4453_p12), %v709_v29, 7  ;;  %v719_v34 = vrot.slane (!%p4453_p12), %v717_v31, 7 }
  0x4d   : > { %v728_v35 = vld [vmem:[#allocation2] sm:$0xf] (!%p4453_p12)  ;;  %v732_v36 = vld [vmem:[#allocation2 + $0x8] sm:$0x1] (!%p4453_p12)  ;;  %v714_v38 = vor.u32 (!%p4453_p12), %v712_v30, %v711_v33  ;;  %v715_v39 = vrot.slane (!%p4453_p12), %v711_v33, 4  ;;  %v722_v40 = vor.u32 (!%p4453_p12), %v720_v32, %v719_v34  ;;  %v724_v41 = vrot.slane (!%p4453_p12), %v719_v34, 4 }
  0x4e   : > { %v735_v37 = vld [vmem:[#allocation2 + $0xc] sm:$0xf] (!%p4453_p12)  ;;  %v739_v42 = vld [vmem:[#allocation2 + $0x14] sm:$0x1] (!%p4453_p12) }
  0x4f   : > { %v729_v43 = vsel (!%p4453_p12), %vm5731_vm7, %v714_v38, %v728_v35  ;;  %v723_v50 = vsel (!%p4453_p12), %vm5738_vm8, %v715_v39, %v722_v40  ;;  %v733_v44 = vsel (!%p4453_p12), %vm5605_vm2, %v724_v41, %v732_v36  ;;  %v736_v51 = vsel (!%p4453_p12), %vm5731_vm7, %v714_v38, %v735_v37 }
  0x50   : > { %730 = vst [vmem:[#allocation2] sm:$0xf] (!%p4453_p12), %v729_v43  ;;  %731 = vst.msk [vmem:[#allocation2 + $0x4] sm:$0xf] (!%p4453_p12), %vm623_vm6, %v723_v50  ;;  %v740_v45 = vsel (!%p4453_p12), %vm5605_vm2, %v724_v41, %v739_v42 }
  0x51   : > { %738 = vst.msk [vmem:[#allocation2 + $0x10] sm:$0xf] %vm623_vm6, %v723_v50  ;;  %734 = vst [vmem:[#allocation2 + $0x8] sm:$0x1] %v733_v44 }
  0x52   : > { %737 = vst [vmem:[#allocation2 + $0xc] sm:$0xf] %v736_v51  ;;  %741 = vst [vmem:[#allocation2 + $0x14] sm:$0x1] %v740_v45 }
  0x53 PF: > { %p4454_p13 = scmp.ne.s32.totalorder %s5513_s21, 1 }
  0x54   : > { %v747_v46 = vld [vmem:[#allocation2 + $0x78] sm:$0xf] (!%p4454_p13)  ;;  %v751_v47 = vld [vmem:[#allocation2 + $0x80] sm:$0x1] (!%p4454_p13)  ;;  %v5532_v49 = vmov (!%p4454_p13), 0  }
  0x55   : > { %745 = sbr.rel (%p4454_p13) target bundleno = 92 (0x5c), region = 48  ;;  %v748_v48 = vsel (!%p4454_p13), %vm5731_vm7, 0, %v747_v46  ;;  %750 = vst.msk [vmem:[#allocation2 + $0x7c] sm:$0xf] (!%p4454_p13), %vm623_vm6, %v5532_v49  ;;  %757 = vst.msk [vmem:[#allocation2 + $0x88] sm:$0xf] (!%p4454_p13), %vm623_vm6, %v5532_v49 }
  0x56   : > { %v752_v52 = vsel (!%p4454_p13), %vm5605_vm2, 0, %v751_v47  ;;  %v754_v53 = vld [vmem:[#allocation2 + $0x84] sm:$0xf] (!%p4454_p13)  ;;  %v758_v54 = vld [vmem:[#allocation2 + $0x8c] sm:$0x1] (!%p4454_p13) }
  0x57   : > { %749 = vst [vmem:[#allocation2 + $0x78] sm:$0xf] (!%p4454_p13), %v748_v48  ;;  %753 = vst [vmem:[#allocation2 + $0x80] sm:$0x1] (!%p4454_p13), %v752_v52  ;;  %v755_v55 = vsel (!%p4454_p13), %vm5731_vm7, 0, %v754_v53  ;;  %v759_v56 = vsel (!%p4454_p13), %vm5605_vm2, 0, %v758_v54 }
  0x58   : > { %756 = vst [vmem:[#allocation2 + $0x84] sm:$0xf] (!%p4454_p13), %v755_v55  ;;  %760 = vst [vmem:[#allocation2 + $0x8c] sm:$0x1] (!%p4454_p13), %v759_v56 }
  0x5c PF: > { %p4455_p0 = scmp.ge.s32.totalorder %s5513_s21, 1 }
  0x5d   : > { %v766_v57 = vshrl.u32 (!%p4455_p0), %v5746_v20, 16  ;;  %v769_v58 = vshll.u32 (!%p4455_p0), %v5746_v20, 16  ;;  %v774_v59 = vshrl.u32 (!%p4455_p0), %v5748_v21, 16  ;;  %v777_v60 = vshll.u32 (!%p4455_p0), %v5748_v21, 16 }
  0x5e   : > { %764 = sbr.rel (%p4455_p0) target bundleno = 103 (0x67), region = 52  ;;  %v786_v63 = vld [vmem:[#allocation2 + $0x78] sm:$0xf] (!%p4455_p0)  ;;  %v790_v0 = vld [vmem:[#allocation2 + $0x80] sm:$0x1] (!%p4455_p0) }
  0x5f   : > { %v768_v61 = vrot.slane (!%p4455_p0), %v766_v57, 7  ;;  %v776_v62 = vrot.slane (!%p4455_p0), %v774_v59, 7  ;;  %v793_v2 = vld [vmem:[#allocation2 + $0x84] sm:$0xf] (!%p4455_p0)  ;;  %v797_v8 = vld [vmem:[#allocation2 + $0x8c] sm:$0x1] (!%p4455_p0) }
  0x61   : > { %v771_v4 = vor.u32 (!%p4455_p0), %v769_v58, %v768_v61  ;;  %v772_v5 = vrot.slane (!%p4455_p0), %v768_v61, 4  ;;  %v779_v6 = vor.u32 (!%p4455_p0), %v777_v60, %v776_v62  ;;  %v781_v7 = vrot.slane (!%p4455_p0), %v776_v62, 4 }
  0x63   : > { %v787_v10 = vsel (!%p4455_p0), %vm5731_vm7, %v771_v4, %v786_v63  ;;  %v780_v20 = vsel (!%p4455_p0), %vm5738_vm8, %v772_v5, %v779_v6  ;;  %v791_v11 = vsel (!%p4455_p0), %vm5605_vm2, %v781_v7, %v790_v0  ;;  %v794_v21 = vsel (!%p4455_p0), %vm5731_vm7, %v771_v4, %v793_v2 }
  0x64   : > { %788 = vst [vmem:[#allocation2 + $0x78] sm:$0xf] (!%p4455_p0), %v787_v10  ;;  %789 = vst.msk [vmem:[#allocation2 + $0x7c] sm:$0xf] (!%p4455_p0), %vm623_vm6, %v780_v20  ;;  %v798_v12 = vsel (!%p4455_p0), %vm5605_vm2, %v781_v7, %v797_v8 }
  0x65   : > { %796 = vst.msk [vmem:[#allocation2 + $0x88] sm:$0xf] %vm623_vm6, %v780_v20  ;;  %792 = vst [vmem:[#allocation2 + $0x80] sm:$0x1] %v791_v11 }
  0x66   : > { %795 = vst [vmem:[#allocation2 + $0x84] sm:$0xf] %v794_v21  ;;  %799 = vst [vmem:[#allocation2 + $0x8c] sm:$0x1] %v798_v12 }
  0x67 PF: > { %v5405_v9 = vld [vmem:[%s6917_s3 + $0x20] sm:$0xff]   ;;  %v5407_v13 = vld [vmem:[%s6917_s3 + $0x28] sm:$0xff]   ;;  %v5409_v14 = vld [vmem:[%s6917_s3 + $0x30] sm:$0xff]   ;;  %vm838_vm9 = vsmask.f32 3328  ;;  %vm1144_vm11 = vcmask 523264   ;;  %s6945_s13 = scalar_lea.vmem %s6920_s6, %s6957_s29 }
  0x68   : > { %v5406_v3 = vld [vmem:[%s6917_s3 + $0x80] sm:$0xff]   ;;  %4942 = vmatprep.subr.bf16.mxu1 %v5405_v9  ;;  %v5408_v1 = vld [vmem:[%s6917_s3 + $0x88] sm:$0xff]   ;;  %v5410_v15 = vld [vmem:[%s6917_s3 + $0x90] sm:$0xff]   ;;  %vm839_vm10 = vsmask.f32 7440  ;;  %vm1535_vm13 = vcmask 1042432  }
  0x69   : > { %5054 = vmatprep.subr.bf16.mxu0 %v5406_v3  ;;  %4943 = vmatpush3.bf16.msra.mxu1 %v5405_v9  ;;  %v5411_v16 = vld [vmem:[%s6917_s3 + $0x38] sm:$0xff]   ;;  %v5880_v18 = vld [vmem:[#allocation2] sm:$0xf]  ;;  %v5882_v19 = vld [vmem:[#allocation2 + $0x4] sm:$0xf]  ;;  %vm1536_vm14 = vcmask 1046532  }
  0x6a   : > { %5055 = vmatpush3.bf16.msra.mxu0 %v5406_v3  ;;  %4944 = vmatprep.subr.bf16.mxu1 %v5407_v13  ;;  %v5412_v17 = vld [vmem:[%s6917_s3 + $0x98] sm:$0xff]   ;;  %v828_v22 = vld [vmem:[#allocation2 + $0x8] sm:$0x1]  ;;  %v842_v23 = vshrl.u32 %v5880_v18, 16  ;;  %v845_v24 = vshll.u32 %v5880_v18, 16  ;;  %v851_v25 = vshll.u32 %v5882_v19, 16  ;;  %vm5903_vm12 = vmor %vm838_vm9, %vm839_vm10 }
  0x6b   : > { %5056 = vmatprep.subr.bf16.mxu0 %v5408_v1  ;;  %v855_v26 = vshrl.u32 %v5882_v19, 16  ;;  %v861_v27 = vshll.u32 %v828_v22, 16  ;;  %v2101_v28 = vld [vmem:[#allocation2 + $0xc] sm:$0xf]  ;;  %v5888_v31 = vld [vmem:[#allocation2 + $0x10] sm:$0xf]  ;;  %vm6048_vm15 = vmor %vm1535_vm13, %vm1536_vm14 }
  0x6c   : > { %v844_v29 = vrot.slane %v842_v23, 4  ;;  %v847_v30 = vrot.slane %v845_v24, 5  ;;  %v5890_v32 = vld [vmem:[#allocation2 + $0x14] sm:$0x1]  ;;  %v853_v33 = vrot.slane %v851_v25, 5  ;;  %v2132_v35 = vshrl.u32 %v2101_v28, 16 }
  0x6d   : > { %4945 = vmatpush3.bf16.msra.mxu1 %v5407_v13  ;;  %v857_v34 = vrot.slane %v855_v26, 4  ;;  %v2135_v37 = vshll.u32 %v2101_v28, 16  ;;  %v2141_v38 = vshll.u32 %v5888_v31, 16  ;;  %v2145_v39 = vshrl.u32 %v5888_v31, 16  ;;  %v5894_v40 = vld [vmem:[#allocation2 + $0xc] sm:$0xf] }
  0x6e   : > { %5057 = vmatpush3.bf16.msra.mxu0 %v5408_v1  ;;  %4946 = vmatprep.subr.bf16.mxu1 %v5409_v14  ;;  %v848_v36 = vor.u32 %v847_v30, %v844_v29  ;;  %v5899_v41 = vld [vmem:[%s6917_s3] sm:$0xff]   ;;  %v863_v50 = vrot.slane %v861_v27, 5  ;;  %v2134_v44 = vrot.slane %v2132_v35, 4  ;;  %v2151_v51 = vshll.u32 %v5890_v32, 16  ;;  %v5908_v45 = vld [vmem:[#allocation2 + $0x10] sm:$0xf] }
  0x6f   : > { %5058 = vmatprep.subr.bf16.mxu0 %v5410_v15  ;;  %v858_v43 = vor.u32 %v857_v34, %v853_v33  ;;  %v5913_v46 = vld [vmem:[%s6917_s3 + $0xa0] sm:$0xff]   ;;  %v2137_v48 = vrot.slane %v2135_v37, 5  ;;  %v2143_v49 = vrot.slane %v2141_v38, 5  ;;  %v2147_v52 = vrot.slane %v2145_v39, 4  ;;  %v829_v60 = vld [vmem:[#allocation2 + $0x14] sm:$0x1] }
  0x70   : > { %v849_v47 = vrot.slane %v848_v36, 4  ;;  %v2153_v54 = vrot.slane %v2151_v51, 5  ;;  %v2639_v55 = vrot.slane %v5888_v31, 5  ;;  %v866_v56 = vshrl.u32 %v5894_v40, 16  ;;  %v2104_v62 = vld [vmem:[#allocation2 + $0x18] sm:$0xf] }
  0x71   : > { %4947 = vmatpush3.bf16.msra.mxu1 %v5409_v14  ;;  %v859_v53 = vrot.slane %v858_v43, 4  ;;  %v2138_v58 = vor.u32 %v2137_v48, %v2134_v44  ;;  %v2148_v59 = vor.u32 %v2147_v52, %v2143_v49  ;;  %v869_v61 = vshll.u32 %v5894_v40, 16  ;;  %v5926_v5 = vld [vmem:[#allocation2 + $0x1c] sm:$0xf]  ;;  %v5934_v1 = vld [vmem:[#allocation2 + $0x20] sm:$0x1] }
  0x72   : > { %5059 = vmatpush3.bf16.msra.mxu0 %v5410_v15  ;;  %4948 = vmatprep.subr.bf16.mxu1 %v5411_v16  ;;  %v854_v57 = vsel %vm5903_vm12, %v849_v47, %v853_v33  ;;  %v868_v0 = vrot.slane %v866_v56, 4  ;;  %v875_v2 = vshll.u32 %v5908_v45, 16  ;;  %v879_v4 = vshrl.u32 %v5908_v45, 16  ;;  %v5938_v26 = vld [vmem:[#allocation2 + $0x18] sm:$0xf] }
  0x73   : > { %5060 = vmatprep.subr.bf16.mxu0 %v5412_v17  ;;  %v864_v63 = vsel %vm5903_vm12, %v859_v53, %v863_v50  ;;  %v2139_v7 = vrot.slane %v2138_v58, 4  ;;  %v2149_v8 = vrot.slane %v2148_v59, 4  ;;  %v871_v10 = vrot.slane %v869_v61, 5  ;;  %v5943_v33 = vld [vmem:[#allocation2 + $0x1c] sm:$0xf]  ;;  %v5417_v53 = vld [vmem:[%s6917_s3 + $0x8] sm:$0xff]  }
  0x74   : > { %v4464_v6 = vcombine.low %v854_v57, %v864_v63  ;;  %v2642_v20 = vrot.slane %v5890_v32, 5  ;;  %v877_v11 = vrot.slane %v875_v2, 5  ;;  %v881_v21 = vrot.slane %v879_v4, 4  ;;  %v830_v38 = vld [vmem:[#allocation2 + $0x20] sm:$0x1]  ;;  %v5419_v2 = vld [vmem:[%s6917_s3 + $0x10] sm:$0xff]  }
  0x75   : > { %4949 = vmatpush3.bf16.msra.mxu1 %v5411_v16  ;;  %v885_v12 = vshll.u32 %v829_v60, 16  ;;  %v2144_v9 = vsel %vm5903_vm12, %v2139_v7, %v2143_v49  ;;  %v2154_v3 = vsel %vm5903_vm12, %v2149_v8, %v2153_v54  ;;  %v872_v13 = vor.u32 %v871_v10, %v868_v0  ;;  %v2107_v51 = vld [vmem:[#allocation2 + $0x24] sm:$0xf]  ;;  %v5961_v59 = vld [vmem:[#allocation2 + $0x28] sm:$0xf] }
  0x76   : > { %5061 = vmatpush3.bf16.msra.mxu0 %v5412_v17  ;;  %4970 = vmatprep.subr.bf16.mxu1 %v5899_v41  ;;  %v4594_v14 = vcombine.low %v2144_v9, %v2154_v3  ;;  %v882_v15 = vor.u32 %v881_v21, %v877_v11  ;;  %v2156_v17 = vshrl.u32 %v2104_v62, 16  ;;  %v2159_v23 = vshll.u32 %v2104_v62, 16  ;;  %v5964_v63 = vld [vmem:[#allocation2 + $0x2c] sm:$0x1]  ;;  %v5970_v10 = vld [vmem:[#allocation2 + $0x24] sm:$0xf] }
  0x77   : > { %5082 = vmatprep.subr.bf16.mxu0 %v5913_v46  ;;  %4950 = vmatprep.mubr.msk.bf16.mxu1 %vm1144_vm11, %v4464_v6  ;;  %v887_v16 = vrot.slane %v885_v12, 5  ;;  %v873_v22 = vrot.slane %v872_v13, 4  ;;  %v2165_v24 = vshll.u32 %v5926_v5, 16  ;;  %v2169_v25 = vshrl.u32 %v5926_v5, 16  ;;  %v5976_v3 = vld [vmem:[#allocation2 + $0x28] sm:$0xf] }
  0x78   : > { %5062 = vmatprep.mubr.msk.bf16.mxu0 %vm1144_vm11, %v4594_v14  ;;  %v883_v27 = vrot.slane %v882_v15, 4  ;;  %v2158_v28 = vrot.slane %v2156_v17, 4  ;;  %v2175_v29 = vshll.u32 %v5934_v1, 16  ;;  %v2646_v30 = vrot.slane %v5926_v5, 5  ;;  %v6076_v31 = vld [vmem:[#allocation2 + $0x48] sm:$0xf] }
  0x79   : > { %v878_v34 = vsel %vm5903_vm12, %v873_v22, %v877_v11  ;;  %v2161_v35 = vrot.slane %v2159_v23, 5  ;;  %v2167_v36 = vrot.slane %v2165_v24, 5  ;;  %v2171_v37 = vrot.slane %v2169_v25, 4  ;;  %v5984_v24 = vld [vmem:[#allocation2 + $0x2c] sm:$0x1] }
  0x7a   : > { %v888_v39 = vsel %vm5903_vm12, %v883_v27, %v887_v16  ;;  %v2177_v43 = vrot.slane %v2175_v29, 5  ;;  %v5951_v50 = vrot.slane %v2646_v30, 4  ;;  %v2649_v44 = vrot.slane %v5934_v1, 5  ;;  %v2110_v27 = vld [vmem:[#allocation2 + $0x30] sm:$0xf] }
  0x7b   : > { %v4465_v47 = vcombine.low %v878_v34, %v888_v39  ;;  %v2162_v48 = vor.u32 %v2161_v35, %v2158_v28  ;;  %v2172_v49 = vor.u32 %v2171_v37, %v2167_v36  ;;  %v890_v52 = vshrl.u32 %v5938_v26, 16 }
  0x7c   : > { %v893_v54 = vshll.u32 %v5938_v26, 16  ;;  %v899_v56 = vshll.u32 %v5943_v33, 16  ;;  %v903_v57 = vshrl.u32 %v5943_v33, 16  ;;  %v909_v58 = vshll.u32 %v830_v38, 16 }
  0x7d   : > { %4951 = vmatmul.mubr.msk.bf16.vlgmr.msra.gmra.mrb[0].mxu1 %vm1144_vm11, %v4465_v47  ;;  %v2163_v60 = vrot.slane %v2162_v48, 4  ;;  %v2173_v61 = vrot.slane %v2172_v49, 4  ;;  %v892_v62 = vrot.slane %v890_v52, 4  ;;  %v2180_v0 = vshrl.u32 %v2107_v51, 16  ;;  %v5421_v49 = vld [vmem:[%s6917_s3 + $0x18] sm:$0xff]  }
  0x7e   : > { %4971 = vmatpush3.bf16.msra.mxu1 %v5899_v41  ;;  %v895_v4 = vrot.slane %v893_v54, 5  ;;  %v901_v6 = vrot.slane %v899_v56, 5  ;;  %v905_v7 = vrot.slane %v903_v57, 4  ;;  %v911_v8 = vrot.slane %v909_v58, 5  ;;  %v5415_v41 = vld [vmem:[%s6917_s3 + $0xa8] sm:$0xff]  }
  0x7f   : > { %v2168_v11 = vsel %vm5903_vm12, %v2163_v60, %v2167_v36  ;;  %v2178_v21 = vsel %vm5903_vm12, %v2173_v61, %v2177_v43  ;;  %v2182_v12 = vrot.slane %v2180_v0, 4  ;;  %v2183_v9 = vshll.u32 %v2107_v51, 16  ;;  %4972 = vmatprep.subr.bf16.mxu1 %v5417_v53  ;;  %v6002_v57 = vld [vmem:[#allocation2 + $0x34] sm:$0xf]  ;;  %v5418_v0 = vld [vmem:[%s6917_s3 + $0xb8] sm:$0xff]  }
  0x80   : > { %v4595_v13 = vcombine.low %v2168_v11, %v2178_v21  ;;  %v896_v14 = vor.u32 %v895_v4, %v892_v62  ;;  %v906_v15 = vor.u32 %v905_v7, %v901_v6  ;;  %v2189_v16 = vshll.u32 %v5961_v59, 16  ;;  %v6016_v21 = vld [vmem:[%s6917_s3 + $0x40] sm:$0xff]  }
  0x81   : > { %v2185_v17 = vrot.slane %v2183_v9, 5  ;;  %v2193_v22 = vshrl.u32 %v5961_v59, 16  ;;  %v2199_v23 = vshll.u32 %v5964_v63, 16  ;;  %v914_v25 = vshrl.u32 %v5970_v10, 16 }
  0x82   : > { %5063 = vmatmul.mubr.msk.bf16.vlgmr.msra.gmra.mrb[0].mxu0 %vm1144_vm11, %v4595_v13  ;;  %v897_v28 = vrot.slane %v896_v14, 4  ;;  %v907_v29 = vrot.slane %v906_v15, 4  ;;  %v2191_v34 = vrot.slane %v2189_v16, 5  ;;  %v917_v35 = vshll.u32 %v5970_v10, 16  ;;  %4973 = vmatpush3.bf16.msra.mxu1 %v5417_v53 }
  0x83   : > { %5083 = vmatpush3.bf16.msra.mxu0 %v5913_v46  ;;  %v2186_v36 = vor.u32 %v2185_v17, %v2182_v12  ;;  %v2195_v37 = vrot.slane %v2193_v22, 4  ;;  %v2201_v38 = vrot.slane %v2199_v23, 5  ;;  %v916_v39 = vrot.slane %v914_v25, 4  ;;  %4974 = vmatprep.subr.bf16.mxu1 %v5419_v2  ;;  %v5416_v46 = vld [vmem:[%s6917_s3 + $0xb0] sm:$0xff]  }
  0x84   : > { %5084 = vmatprep.subr.bf16.mxu0 %v5415_v41  ;;  %v902_v43 = vsel %vm5903_vm12, %v897_v28, %v901_v6  ;;  %v912_v51 = vsel %vm5903_vm12, %v907_v29, %v911_v8  ;;  %v919_v47 = vrot.slane %v917_v35, 5  ;;  %v923_v48 = vshll.u32 %v5976_v3, 16  ;;  %v6011_v8 = vld [vmem:[#allocation2 + $0x38] sm:$0x1]  ;;  %v6024_v22 = vld [vmem:[#allocation2 + $0x34] sm:$0xf] }
  0x85   : > { %v4466_v52 = vcombine.low %v902_v43, %v912_v51  ;;  %v2187_v53 = vrot.slane %v2186_v36, 4  ;;  %v2196_v54 = vor.u32 %v2195_v37, %v2191_v34  ;;  %v927_v56 = vshrl.u32 %v5976_v3, 16  ;;  %v6029_v36 = vld [vmem:[#allocation2 + $0x38] sm:$0x1] }
  0x86   : > { %v920_v58 = vor.u32 %v919_v47, %v916_v39  ;;  %v925_v60 = vrot.slane %v923_v48, 5  ;;  %v933_v61 = vshll.u32 %v5984_v24, 16  ;;  %v2204_v62 = vshrl.u32 %v2110_v27, 16  ;;  %4975 = vmatpush3.bf16.msra.mxu1 %v5419_v2  ;;  %v2597_v48 = vld [vmem:[#allocation2 + $0xc] sm:$0xe] }
  0x87   : > { %5085 = vmatpush3.bf16.msra.mxu0 %v5415_v41  ;;  %4954 = vmatprep.mubr.msk.bf16.mxu1 %vm1144_vm11, %v4466_v52  ;;  %v2192_v4 = vsel %vm5903_vm12, %v2187_v53, %v2191_v34  ;;  %v2197_v6 = vrot.slane %v2196_v54, 4  ;;  %v929_v7 = vrot.slane %v927_v56, 4  ;;  %v2207_v11 = vshll.u32 %v2110_v27, 16  ;;  %v6019_v41 = vld [vmem:[#allocation2 + $0x30] sm:$0xf] }
  0x88   : > { %v921_v12 = vrot.slane %v920_v58, 4  ;;  %v935_v9 = vrot.slane %v933_v61, 5  ;;  %v2206_v13 = vrot.slane %v2204_v62, 4  ;;  %v2213_v2 = vshll.u32 %v6002_v57, 16  ;;  %5086 = vmatprep.subr.bf16.mxu0 %v5416_v46  ;;  %4976 = vmatprep.subr.bf16.mxu1 %v5421_v49  ;;  %v6044_v54 = vld [vmem:[#allocation2 + $0x3c] sm:$0xf] }
  0x89   : > { %v2202_v14 = vsel %vm5903_vm12, %v2197_v6, %v2201_v38  ;;  %v930_v15 = vor.u32 %v929_v7, %v925_v60  ;;  %v2209_v16 = vrot.slane %v2207_v11, 5  ;;  %v2217_v17 = vshrl.u32 %v6002_v57, 16  ;;  %v6035_v38 = vld [vmem:[%s6917_s3 + $0xc0] sm:$0xff]  }
  0x8a   : > { %v4596_v23 = vcombine.low %v2192_v4, %v2202_v14  ;;  %v926_v25 = vsel %vm5903_vm12, %v921_v12, %v925_v60  ;;  %v2215_v27 = vrot.slane %v2213_v2, 5  ;;  %v2223_v28 = vshll.u32 %v6011_v8, 16  ;;  %4977 = vmatpush3.bf16.msra.mxu1 %v5421_v49  ;;  %v6055_v12 = vld [vmem:[#allocation2 + $0x40] sm:$0xf]  ;;  %v6060_v14 = vld [vmem:[#allocation2 + $0x44] sm:$0x1] }
  0x8b   : > { %v931_v29 = vrot.slane %v930_v15, 4  ;;  %v2210_v34 = vor.u32 %v2209_v16, %v2206_v13  ;;  %v2219_v35 = vrot.slane %v2217_v17, 4  ;;  %5087 = vmatpush3.bf16.msra.mxu0 %v5416_v46  ;;  %v938_v37 = vshrl.u32 %v6019_v41, 16  ;;  %4998 = vmatprep.subr.bf16.mxu1 %v6016_v21 }
  0x8c   : > { %5066 = vmatprep.mubr.msk.bf16.mxu0 %vm1144_vm11, %v4596_v23  ;;  %v2225_v39 = vrot.slane %v2223_v28, 5  ;;  %5088 = vmatprep.subr.bf16.mxu0 %v5418_v0  ;;  %v941_v43 = vshll.u32 %v6019_v41, 16  ;;  %v947_v51 = vshll.u32 %v6024_v22, 16  ;;  %v951_v47 = vshrl.u32 %v6024_v22, 16 }
  0x8d   : > { %v936_v46 = vsel %vm5903_vm12, %v931_v29, %v935_v9  ;;  %v2211_v49 = vrot.slane %v2210_v34, 4  ;;  %v2220_v52 = vor.u32 %v2219_v35, %v2215_v27  ;;  %v940_v53 = vrot.slane %v938_v37, 4  ;;  %v2598_v34 = vld [vmem:[#allocation2 + $0x18] sm:$0xe] }
  0x8e   : > { %v4467_v56 = vcombine.low %v926_v25, %v936_v46  ;;  %v943_v58 = vrot.slane %v941_v43, 5  ;;  %v949_v60 = vrot.slane %v947_v51, 5  ;;  %v953_v61 = vrot.slane %v951_v47, 4  ;;  %v6085_v47 = vld [vmem:[#allocation2 + $0x4c] sm:$0xf] }
  0x8f   : > { %v2216_v4 = vsel %vm5903_vm12, %v2211_v49, %v2215_v27  ;;  %v2221_v6 = vrot.slane %v2220_v52, 4  ;;  %5089 = vmatpush3.bf16.msra.mxu0 %v5418_v0  ;;  %v957_v7 = vshll.u32 %v6029_v36, 16  ;;  %v4618_v11 = vrot.slane %v2597_v48, 9 }
  0x90   : > { %4955 = vmatmul.mubr.msk.bf16.gmra.mrb[4].mxu1 %vm1144_vm11, %v4467_v56  ;;  %v944_v9 = vor.u32 %v943_v58, %v940_v53  ;;  %v954_v13 = vor.u32 %v953_v61, %v949_v60  ;;  %v2641_v2 = vrot.slane %v2639_v55, 4  ;;  %v962_v15 = vshrl.u32 %v6044_v54, 16  ;;  %5110 = vmatprep.subr.bf16.mxu0 %v6035_v38 }
  0x91   : > { %v2226_v0 = vsel %vm5903_vm12, %v2221_v6, %v2225_v39  ;;  %v959_v16 = vrot.slane %v957_v7, 5  ;;  %v2640_v17 = vsel %vm6048_vm15, %v4618_v11, %v2639_v55  ;;  %v965_v23 = vshll.u32 %v6044_v54, 16  ;;  %v2599_v11 = vld [vmem:[#allocation2 + $0x24] sm:$0xe] }
  0x92   : > { %v4597_v25 = vcombine.low %v2216_v4, %v2226_v0  ;;  %v945_v27 = vrot.slane %v944_v9, 4  ;;  %v955_v28 = vrot.slane %v954_v13, 4  ;;  %v2643_v29 = vsel %vm6048_vm15, %v2641_v2, %v2642_v20  ;;  %v6104_v2 = vld [vmem:[#allocation2 + $0x54] sm:$0xf] }
  0x93   : > { %v4636_v35 = vcombine.low %v2640_v17, %v2643_v29  ;;  %v964_v37 = vrot.slane %v962_v15, 4  ;;  %v967_v39 = vrot.slane %v965_v23, 5  ;;  %v971_v43 = vshll.u32 %v6055_v12, 16 }
  0x94   : > { %5067 = vmatmul.mubr.msk.bf16.gmra.mrb[4].mxu0 %vm1144_vm11, %v4597_v25  ;;  %v950_v55 = vsel %vm5903_vm12, %v945_v27, %v949_v60  ;;  %v960_v51 = vsel %vm5903_vm12, %v955_v28, %v959_v16  ;;  %v975_v32 = vshrl.u32 %v6055_v12, 16  ;;  %v981_v20 = vshll.u32 %v6060_v14, 16  ;;  %v6093_v60 = vld [vmem:[#allocation2 + $0x50] sm:$0x1]  ;;  %v6113_v28 = vld [vmem:[#allocation2 + $0x58] sm:$0xf] }
  0x95   : > { %v4468_v48 = vcombine.low %v950_v55, %v960_v51  ;;  %5090 = vmatprep.mubr.msk.bf16.mxu0 %vm1144_vm11, %v4636_v35  ;;  %v968_v46 = vor.u32 %v967_v39, %v964_v37  ;;  %v973_v49 = vrot.slane %v971_v43, 5  ;;  %v4619_v52 = vrot.slane %v2598_v34, 9 }
  0x96   : > { %v977_v53 = vrot.slane %v975_v32, 4  ;;  %v983_v56 = vrot.slane %v981_v20, 5  ;;  %v2650_v58 = vsel %vm6048_vm15, %v5951_v50, %v2649_v44  ;;  %v986_v61 = vshrl.u32 %v6076_v31, 16  ;;  %v6122_v32 = vld [vmem:[#allocation2 + $0x5c] sm:$0x1] }
  0x97   : > { %4958 = vmatprep.mubr.msk.bf16.mxu1 %vm1144_vm11, %v4468_v48  ;;  %v969_v4 = vrot.slane %v968_v46, 4  ;;  %v2647_v6 = vsel %vm6048_vm15, %v4619_v52, %v2646_v30  ;;  %v989_v7 = vshll.u32 %v6076_v31, 16  ;;  %v995_v1 = vshll.u32 %v6085_v47, 16  ;;  %v5422_v30 = vld [vmem:[%s6917_s3 + $0xc8] sm:$0xff]  }
  0x98   : > { %v978_v9 = vor.u32 %v977_v53, %v973_v49  ;;  %v4637_v13 = vcombine.low %v2647_v6, %v2650_v58  ;;  %v988_v50 = vrot.slane %v986_v61, 4  ;;  %v999_v44 = vshrl.u32 %v6085_v47, 16  ;;  %v6130_v58 = vld [vmem:[#allocation2 + $0x60] sm:$0xf]  ;;  %v5426_v61 = vld [vmem:[%s6917_s3 + $0xd0] sm:$0xff]  }
  0x99   : > { %v974_v15 = vsel %vm5903_vm12, %v969_v4, %v973_v49  ;;  %v991_v0 = vrot.slane %v989_v7, 5  ;;  %v997_v5 = vrot.slane %v995_v1, 5  ;;  %v1005_v16 = vshll.u32 %v6093_v60, 16 }
  0x9a   : > { %v979_v17 = vrot.slane %v978_v9, 4  ;;  %v1001_v23 = vrot.slane %v999_v44, 4  ;;  %v4620_v25 = vrot.slane %v2599_v11, 9  ;;  %v2653_v27 = vrot.slane %v5961_v59, 5 }
  0x9b   : > { %v992_v29 = vor.u32 %v991_v0, %v988_v50  ;;  %v1007_v34 = vrot.slane %v1005_v16, 5  ;;  %v2656_v35 = vrot.slane %v5964_v63, 5  ;;  %v1010_v37 = vshrl.u32 %v6104_v2, 16  ;;  %v2600_v63 = vld [vmem:[#allocation2 + $0x30] sm:$0xe] }
  0x9c   : > { %v984_v39 = vsel %vm5903_vm12, %v979_v17, %v983_v56  ;;  %5091 = vmatmul.mubr.msk.bf16.vlgmr.msra.gmra.mrb[0].mxu0 %vm1144_vm11, %v4637_v13  ;;  %v1002_v43 = vor.u32 %v1001_v23, %v997_v5  ;;  %v2654_v55 = vsel %vm6048_vm15, %v4620_v25, %v2653_v27  ;;  %v2655_v51 = vrot.slane %v2653_v27, 4  ;;  %v6141_v50 = vld [vmem:[#allocation2 + $0x64] sm:$0xf] }
  0x9d   : > { %v4469_v59 = vcombine.low %v974_v15, %v984_v39  ;;  %v993_v20 = vrot.slane %v992_v29, 4  ;;  %v1012_v48 = vrot.slane %v1010_v37, 4  ;;  %v1013_v46 = vshll.u32 %v6104_v2, 16  ;;  %5111 = vmatpush3.bf16.msra.mxu0 %v6035_v38  ;;  %v2114_v29 = vld [vmem:[#allocation2 + $0x40] sm:$0xf] }
  0x9e   : > { %v1003_v49 = vrot.slane %v1002_v43, 4  ;;  %v2657_v52 = vsel %vm6048_vm15, %v2655_v51, %v2656_v35  ;;  %v1019_v53 = vshll.u32 %v6113_v28, 16  ;;  %v1023_v56 = vshrl.u32 %v6113_v28, 16  ;;  %5112 = vmatprep.subr.bf16.mxu0 %v5422_v30  ;;  %v2601_v51 = vld [vmem:[#allocation2 + $0x3c] sm:$0xe] }
  0x9f   : > { %4959 = vmatmul.mubr.msk.bf16.gmra.mrb[8].mxu1 %vm1144_vm11, %v4469_v59  ;;  %v998_v38 = vsel %vm5903_vm12, %v993_v20, %v997_v5  ;;  %v4638_v4 = vcombine.low %v2654_v55, %v2657_v52  ;;  %v1015_v6 = vrot.slane %v1013_v46, 5  ;;  %v1029_v7 = vshll.u32 %v6122_v32, 16  ;;  %v6145_v5 = vld [vmem:[#allocation2 + $0x68] sm:$0x1] }
  0xa0   : > { %v1008_v1 = vsel %vm5903_vm12, %v1003_v49, %v1007_v34  ;;  %v1021_v11 = vrot.slane %v1019_v53, 5  ;;  %v1025_v9 = vrot.slane %v1023_v56, 4  ;;  %v4621_v13 = vrot.slane %v2600_v63, 9  ;;  %v5430_v34 = vld [vmem:[%s6917_s3 + $0xd8] sm:$0xff]   ;;  %v2115_v63 = vld [vmem:[#allocation2 + $0x44] sm:$0x1] }
  0xa1   : > { %v4470_v44 = vcombine.low %v998_v38, %v1008_v1  ;;  %5094 = vmatprep.mubr.msk.bf16.mxu0 %vm1144_vm11, %v4638_v4  ;;  %v1016_v15 = vor.u32 %v1015_v6, %v1012_v48  ;;  %v1031_v0 = vrot.slane %v1029_v7, 5  ;;  %v2660_v16 = vrot.slane %v6002_v57, 5  ;;  %5113 = vmatpush3.bf16.msra.mxu0 %v5422_v30  ;;  %v6163_v49 = vld [vmem:[#allocation2 + $0x6c] sm:$0xf]  ;;  %v6167_v4 = vld [vmem:[#allocation2 + $0x70] sm:$0xf] }
  0xa2   : > { %v1026_v17 = vor.u32 %v1025_v9, %v1021_v11  ;;  %v2663_v23 = vrot.slane %v6011_v8, 5  ;;  %v1034_v25 = vshrl.u32 %v6130_v58, 16  ;;  %v1037_v27 = vshll.u32 %v6130_v58, 16  ;;  %5114 = vmatprep.subr.bf16.mxu0 %v5426_v61  ;;  %v6172_v6 = vld [vmem:[%s6917_s3 + $0xe0] sm:$0xff]  }
  0xa3   : > { %4962 = vmatprep.mubr.msk.bf16.mxu1 %vm1144_vm11, %v4470_v44  ;;  %v1017_v35 = vrot.slane %v1016_v15, 4  ;;  %v2661_v57 = vsel %vm6048_vm15, %v4621_v13, %v2660_v16  ;;  %v2662_v30 = vrot.slane %v2660_v16, 4  ;;  %v1043_v37 = vshll.u32 %v6141_v50, 16  ;;  %v6174_v13 = vld [vmem:[#allocation2 + $0x74] sm:$0x1] }
  0xa4   : > { %v1027_v8 = vrot.slane %v1026_v17, 4  ;;  %v1036_v39 = vrot.slane %v1034_v25, 4  ;;  %v1039_v43 = vrot.slane %v1037_v27, 5  ;;  %v1047_v55 = vshrl.u32 %v6141_v50, 16  ;;  %v2117_v27 = vld [vmem:[#allocation2 + $0x4c] sm:$0xf] }
  0xa5   : > { %v1022_v59 = vsel %vm5903_vm12, %v1017_v35, %v1021_v11  ;;  %v2664_v20 = vsel %vm6048_vm15, %v2662_v30, %v2663_v23  ;;  %v1045_v48 = vrot.slane %v1043_v37, 5  ;;  %v1053_v46 = vshll.u32 %v6145_v5, 16  ;;  %5115 = vmatpush3.bf16.msra.mxu0 %v5426_v61 }
  0xa6   : > { %v1032_v52 = vsel %vm5903_vm12, %v1027_v8, %v1031_v0  ;;  %v4639_v53 = vcombine.low %v2661_v57, %v2664_v20  ;;  %v1040_v56 = vor.u32 %v1039_v43, %v1036_v39  ;;  %v1049_v38 = vrot.slane %v1047_v55, 4  ;;  %5116 = vmatprep.subr.bf16.mxu0 %v5430_v34  ;;  %v6186_v8 = vld [vmem:[#allocation2 + $0x50] sm:$0x1] }
  0xa7   : > { %v4471_v7 = vcombine.low %v1022_v59, %v1032_v52  ;;  %v1055_v1 = vrot.slane %v1053_v46, 5  ;;  %v4622_v11 = vrot.slane %v2601_v51, 9  ;;  %v2667_v9 = vrot.slane %v2114_v29, 5  ;;  %v2602_v29 = vld [vmem:[#allocation2 + $0x48] sm:$0xe] }
  0xa8   : > { %5095 = vmatmul.mubr.msk.bf16.gmra.mrb[4].mxu0 %vm1144_vm11, %v4639_v53  ;;  %v1041_v61 = vrot.slane %v1040_v56, 4  ;;  %v1050_v44 = vor.u32 %v1049_v38, %v1045_v48  ;;  %v2670_v15 = vrot.slane %v2115_v63, 5  ;;  %v1058_v0 = vshrl.u32 %v6163_v49, 16  ;;  %v2120_v59 = vld [vmem:[#allocation2 + $0x58] sm:$0xf] }
  0xa9   : > { %4963 = vmatmul.mubr.msk.bf16.gmra.mrb[12].mxu1 %vm1144_vm11, %v4471_v7  ;;  %v2668_v16 = vsel %vm6048_vm15, %v4622_v11, %v2667_v9  ;;  %v2669_v17 = vrot.slane %v2667_v9, 4  ;;  %v1061_v23 = vshll.u32 %v6163_v49, 16  ;;  %v1067_v25 = vshll.u32 %v6167_v4, 16  ;;  %5117 = vmatpush3.bf16.msra.mxu0 %v5430_v34  ;;  %v2603_v34 = vld [vmem:[#allocation2 + $0x54] sm:$0xe] }
  0xaa   : > { %v1046_v35 = vsel %vm5903_vm12, %v1041_v61, %v1045_v48  ;;  %v1051_v57 = vrot.slane %v1050_v44, 4  ;;  %v1060_v30 = vrot.slane %v1058_v0, 4  ;;  %v1071_v37 = vshrl.u32 %v6167_v4, 16  ;;  %5138 = vmatprep.subr.bf16.mxu0 %v6172_v6  ;;  %v2121_v9 = vld [vmem:[#allocation2 + $0x5c] sm:$0x1] }
  0xab   : > { %v2671_v39 = vsel %vm6048_vm15, %v2669_v17, %v2670_v15  ;;  %v1063_v43 = vrot.slane %v1061_v23, 5  ;;  %v1069_v55 = vrot.slane %v1067_v25, 5  ;;  %v1077_v51 = vshll.u32 %v6174_v13, 16  ;;  %v2123_v0 = vld [vmem:[#allocation2 + $0x64] sm:$0xf] }
  0xac   : > { %v1056_v20 = vsel %vm5903_vm12, %v1051_v57, %v1055_v1  ;;  %v4640_v48 = vcombine.low %v2668_v16, %v2671_v39  ;;  %v1073_v46 = vrot.slane %v1071_v37, 4  ;;  %v2261_v63 = vshll.u32 %v2117_v27, 16  ;;  %v2604_v16 = vld [vmem:[#allocation2 + $0x60] sm:$0xe]  ;;  %v2124_v57 = vld [vmem:[#allocation2 + $0x68] sm:$0x1] }
  0xad   : > { %v4472_v52 = vcombine.low %v1046_v35, %v1056_v20  ;;  %v1064_v53 = vor.u32 %v1063_v43, %v1060_v30  ;;  %v2265_v56 = vshrl.u32 %v2117_v27, 16  ;;  %v1079_v7 = vrot.slane %v1077_v51, 5  ;;  %v2605_v30 = vld [vmem:[#allocation2 + $0x6c] sm:$0xe]  ;;  %v2126_v43 = vld [vmem:[#allocation2 + $0x70] sm:$0xf] }
  0xae   : > { %5098 = vmatprep.mubr.msk.bf16.mxu0 %vm1144_vm11, %v4640_v48  ;;  %v1074_v38 = vor.u32 %v1073_v46, %v1069_v55  ;;  %v4623_v11 = vrot.slane %v2602_v29, 9  ;;  %v2674_v44 = vrot.slane %v2117_v27, 5  ;;  %v2677_v15 = vrot.slane %v6186_v8, 5  ;;  %v2127_v51 = vld [vmem:[#allocation2 + $0x74] sm:$0x1] }
  0xaf   : > { %4966 = vmatprep.mubr.msk.bf16.mxu1 %vm1144_vm11, %v4472_v52  ;;  %v1065_v61 = vrot.slane %v1064_v53, 4  ;;  %v4488_v1 = vcombine.low %v5880_v18, %v5882_v19  ;;  %v6199_v23 = vrot.slane %v2261_v63, 5  ;;  %v4624_v25 = vrot.slane %v2603_v34, 9  ;;  %v2129_v20 = vld [vmem:[#allocation2 + $0x7c] sm:$0xf] }
  0xb0   : > { %v1075_v17 = vrot.slane %v1074_v38, 4  ;;  %v2681_v35 = vrot.slane %v2120_v59, 5  ;;  %v2267_v37 = vrot.slane %v2265_v56, 4  ;;  %v2675_v27 = vsel %vm6048_vm15, %v4623_v11, %v2674_v44 }
  0xb1   : > { %v1070_v29 = vsel %vm5903_vm12, %v1065_v61, %v1069_v55  ;;  %v2676_v39 = vrot.slane %v2674_v44, 4  ;;  %v2684_v59 = vrot.slane %v2121_v9, 5  ;;  %v2271_v46 = vshll.u32 %v6186_v8, 16 }
  0xb2   : > { %v1080_v18 = vsel %vm5903_vm12, %v1075_v17, %v1079_v7  ;;  %v2682_v19 = vsel %vm6048_vm15, %v4624_v25, %v2681_v35  ;;  %v2683_v34 = vrot.slane %v2681_v35, 4  ;;  %v4625_v53 = vrot.slane %v2604_v16, 9 }
  0xb3   : > { %v4473_v48 = vcombine.low %v1070_v29, %v1080_v18  ;;  %v2678_v55 = vsel %vm6048_vm15, %v2676_v39, %v2677_v15  ;;  %v2688_v56 = vrot.slane %v2123_v0, 5  ;;  %v2268_v38 = vor.u32 %v2267_v37, %v6199_v23  ;;  %v2606_v0 = vld [vmem:[#allocation2 + $0x78] sm:$0xe] }
  0xb4   : > { %v4641_v63 = vcombine.low %v2675_v27, %v2678_v55  ;;  %v2685_v52 = vsel %vm6048_vm15, %v2683_v34, %v2684_v59  ;;  %v2691_v11 = vrot.slane %v2124_v57, 5  ;;  %v4626_v9 = vrot.slane %v2605_v30, 9  ;;  %v2130_v57 = vld [vmem:[#allocation2 + $0x80] sm:$0x1]  ;;  %v5429_v34 = vld [vmem:[%s6917_s3 + $0x48] sm:$0xff]  }
  0xb5   : > { %4967 = vmatmul.mubr.msk.bf16.gmra.mrb[16].mxu1 %vm1144_vm11, %v4473_v48  ;;  %v4642_v7 = vcombine.low %v2682_v19, %v2685_v52  ;;  %v2690_v8 = vrot.slane %v2688_v56, 4  ;;  %v2695_v61 = vrot.slane %v2126_v43, 5  ;;  %v2698_v44 = vrot.slane %v2127_v51, 5  ;;  %v1508_v59 = vld [vmem:[#allocation2 + $0x24] sm:$0xe] }
  0xb6   : > { %5099 = vmatmul.mubr.msk.bf16.gmra.mrb[8].mxu0 %vm1144_vm11, %v4641_v63  ;;  %4978 = vmatprep.mubr.msk.bf16.mxu1 %vm1144_vm11, %v4488_v1  ;;  %v2689_v15 = vsel %vm6048_vm15, %v4625_v53, %v2688_v56  ;;  %v2702_v16 = vrot.slane %v2129_v20, 5  ;;  %v6225_v30 = vrot.slane %v2268_v38, 4  ;;  %v6227_v1 = vrot.slane %v2271_v46, 5  ;;  %v1509_v56 = vld [vmem:[#allocation2 + $0x30] sm:$0xe]  ;;  %v5432_v38 = vld [vmem:[#allocation2 + $0x18] sm:$0xff]  }
  0xb7   : > { %5102 = vmatprep.mubr.msk.bf16.mxu0 %vm1144_vm11, %v4642_v7  ;;  %v2692_v17 = vsel %vm6048_vm15, %v2690_v8, %v2691_v11  ;;  %v2696_v25 = vsel %vm6048_vm15, %v4626_v9, %v2695_v61  ;;  %v2697_v35 = vrot.slane %v2695_v61, 4  ;;  %v4489_v29 = vcombine.low %v5894_v40, %v5908_v45  ;;  %v1510_v61 = vld [vmem:[#allocation2 + $0x3c] sm:$0xe]  ;;  %v3211_v40 = vld [vmem:[#allocation2 + $0x48] sm:$0xf] }
  0xb8   : > { %v4643_v37 = vcombine.low %v2689_v15, %v2692_v17  ;;  %v4627_v39 = vrot.slane %v2606_v0, 9  ;;  %v4490_v43 = vcombine.low %v5938_v26, %v5943_v33  ;;  %v2704_v18 = vrot.slane %v2702_v16, 4  ;;  %v5435_v33 = vld [vmem:[%s6917_s3 + $0x50] sm:$0xff]   ;;  %v6291_v15 = vld [vmem:[%s6917_s3 + $0x60] sm:$0xff]  }
  0xb9   : > { %v2699_v27 = vsel %vm6048_vm15, %v2697_v35, %v2698_v44  ;;  %v2705_v19 = vrot.slane %v2130_v57, 5  ;;  %v1561_v20 = vrot.slane %v5976_v3, 5  ;;  %v4515_v48 = vrot.slane %v1508_v59, 9  ;;  %v5434_v57 = vld [vmem:[#allocation2 + $0x24] sm:$0xff]  }
  0xba   : > { %v4644_v51 = vcombine.low %v2696_v25, %v2699_v27  ;;  %v2703_v45 = vsel %vm6048_vm15, %v4627_v39, %v2702_v16  ;;  %v4491_v46 = vcombine.low %v5970_v10, %v5976_v3  ;;  %v4492_v52 = vcombine.low %v6019_v41, %v6024_v22  ;;  %v5441_v41 = vld [vmem:[%s6917_s3 + $0x58] sm:$0xff]   ;;  %v5437_v27 = vld [vmem:[#allocation2 + $0x30] sm:$0xff]   ;;  %v1505_v39 = vld [vmem:[#allocation2] sm:$0xe] }
  0xbb   : > { %v2706_v26 = vsel %vm6048_vm15, %v2704_v18, %v2705_v19  ;;  %v1563_v55 = vrot.slane %v1561_v20, 4  ;;  %v6262_v53 = vsel %vm6048_vm15, %v4515_v48, %v1561_v20  ;;  %v1568_v10 = vrot.slane %v6024_v22, 5  ;;  %v5472_v19 = vld [vmem:[#allocation2 + $0x8] sm:$0x1] }
  0xbc   : > { %v4645_v63 = vcombine.low %v2703_v45, %v2706_v26  ;;  %v1571_v3 = vrot.slane %v6029_v36, 5  ;;  %v4517_v22 = vrot.slane %v1510_v61, 9  ;;  %v1575_v44 = vrot.slane %v6055_v12, 5  ;;  %v6319_v45 = vld [vmem:[#allocation2 + $0x14] sm:$0x1] }
  0xbd   : > { %4979 = vmatmul.mubr.msk.bf16.vlgmr.msra.gmra.mrb[0].mxu1 %vm1144_vm11, %v4489_v29  ;;  %v1570_v8 = vrot.slane %v1568_v10, 4  ;;  %v1578_v16 = vrot.slane %v6060_v14, 5  ;;  %v4493_v17 = vcombine.low %v6044_v54, %v6055_v12  ;;  %v4494_v29 = vcombine.low %v6076_v31, %v6085_v47  ;;  %v6310_v54 = vld [vmem:[#allocation2 + $0x10] sm:$0xf]  ;;  %v3199_v31 = vld [vmem:[#allocation2 + $0x18] sm:$0xf] }
  0xbe   : > { %5103 = vmatmul.mubr.msk.bf16.gmra.mrb[12].mxu0 %vm1144_vm11, %v4643_v37  ;;  %4999 = vmatpush3.bf16.msra.mxu1 %v6016_v21  ;;  %v1564_v21 = vrot.slane %v5984_v24, 5  ;;  %v4516_v24 = vrot.slane %v1509_v56, 9  ;;  %v6300_v25 = vsel %vm6048_vm15, %v4517_v22, %v1575_v44  ;;  %v1577_v35 = vrot.slane %v1575_v44, 4  ;;  %v1511_v37 = vld [vmem:[#allocation2 + $0x48] sm:$0xe] }
  0xbf   : > { %4982 = vmatprep.mubr.msk.bf16.mxu1 %vm1144_vm11, %v4490_v43  ;;  %5106 = vmatprep.mubr.msk.bf16.mxu0 %vm1144_vm11, %v4644_v51  ;;  %v6285_v36 = vsel %vm6048_vm15, %v1570_v8, %v1571_v3  ;;  %v6304_v43 = vld [vmem:[#allocation2 + $0xc] sm:$0xe]  ;;  %v1547_v12 = vrot.slane %v6310_v54, 5  ;;  %v1550_v26 = vrot.slane %v6319_v45, 5  ;;  %v4518_v20 = vrot.slane %v1511_v37, 9 }
  0xc0   : > { %5000 = vmatprep.subr.bf16.mxu1 %v5429_v34  ;;  %v6266_v7 = vsel %vm6048_vm15, %v1563_v55, %v1564_v21  ;;  %v6278_v9 = vsel %vm6048_vm15, %v4516_v24, %v1568_v10  ;;  %v6308_v14 = vsel %vm6048_vm15, %v1577_v35, %v1578_v16  ;;  %v5446_v51 = vld [vmem:[%s6917_s3 + $0xe8] sm:$0xff]   ;;  %v4512_v48 = vrot.slane %v1505_v39, 9  ;;  %v5439_v24 = vld [vmem:[#allocation2 + $0x3c] sm:$0xff]   ;;  %v1507_v61 = vld [vmem:[#allocation2 + $0x18] sm:$0xe] }
  0xc1   : > { %v4513_v21 = vrot.slane %v6304_v43, 9  ;;  %v1582_v55 = vrot.slane %v6085_v47, 5  ;;  %v3230_v56 = vshrl.u32 %v3199_v31, 16  ;;  %v1549_v10 = vrot.slane %v1547_v12, 4  ;;  %v5475_v22 = vld [vmem:[#allocation2 + $0x1c] sm:$0xf] }
  0xc2   : > { %5001 = vmatpush3.bf16.msra.mxu1 %v5429_v34  ;;  %v1543_v34 = vrot.slane %v5472_v19, 5  ;;  %v1554_v44 = vrot.slane %v5475_v22, 5  ;;  %v4497_v16 = vcombine.low %v6163_v49, %v6167_v4  ;;  %v5476_v19 = vld [vmem:[#allocation2 + $0x20] sm:$0x1]  ;;  %v1513_v22 = vld [vmem:[#allocation2 + $0x60] sm:$0xe] }
  0xc3   : > { %5002 = vmatprep.subr.bf16.mxu1 %v5435_v33  ;;  %v6339_v3 = vsel %vm6048_vm15, %v4518_v20, %v1582_v55  ;;  %v1584_v47 = vrot.slane %v1582_v55, 4  ;;  %v5454_v20 = vld [vmem:[%s6917_s3 + $0xf8] sm:$0xff]   ;;  %v3202_v55 = vld [vmem:[#allocation2 + $0x24] sm:$0xf] }
  0xc5   : > { %4983 = vmatmul.mubr.msk.bf16.gmra.mrb[4].mxu1 %vm1144_vm11, %v4491_v46  ;;  %v5450_v46 = vld [vmem:[%s6917_s3 + $0xf0] sm:$0xff]  }
  0xc6   : > { %5107 = vmatmul.mubr.msk.bf16.gmra.mrb[16].mxu0 %vm1144_vm11, %v4645_v63  ;;  %4986 = vmatprep.mubr.msk.bf16.mxu1 %vm1144_vm11, %v4492_v52  ;;  %v1585_v63 = vrot.slane %v6093_v60, 5  ;;  %v6333_v52 = vld [vmem:[#allocation2 + $0x1c] sm:$0xf]  ;;  %v4495_v60 = vcombine.low %v6104_v2, %v6113_v28  ;;  %v5443_v2 = vld [vmem:[#allocation2 + $0x48] sm:$0xff]  }
  0xc7   : > { %5118 = vmatprep.mubr.msk.bf16.mxu0 %vm1144_vm11, %v5432_v38  ;;  %5003 = vmatpush3.bf16.msra.mxu1 %v5435_v33  ;;  %v5474_v33 = vld [vmem:[#allocation2 + $0x4] sm:$0xf]  ;;  %v3233_v38 = vshll.u32 %v3199_v31, 16  ;;  %v3239_v35 = vshll.u32 %v6333_v52, 16  ;;  %v4514_v31 = vrot.slane %v1507_v61, 9 }
  0xc8   : > { %5004 = vmatprep.subr.bf16.mxu1 %v5441_v41  ;;  %v1540_v59 = vrot.slane %v5474_v33, 5  ;;  %v1557_v33 = vrot.slane %v5476_v19, 5  ;;  %v3205_v61 = vld [vmem:[#allocation2 + $0x30] sm:$0xf] }
  0xc9   : > { %v3235_v37 = vrot.slane %v3233_v38, 5  ;;  %v6372_v38 = vrot.slane %v3239_v35, 5  ;;  %v6403_v54 = vsel %vm6048_vm15, %v4514_v31, %v1554_v44 }
  0xca   : > { %v1542_v8 = vrot.slane %v1540_v59, 4  ;;  %v6359_v43 = vsel %vm6048_vm15, %v4512_v48, %v1540_v59  ;;  %v1592_v48 = vrot.slane %v6122_v32, 5  ;;  %v6392_v32 = vsel %vm6048_vm15, %v4513_v21, %v1547_v12  ;;  %v6405_v12 = vld [vmem:[#allocation2 + $0x34] sm:$0xf] }
  0xcb   : > { %5005 = vmatpush3.bf16.msra.mxu1 %v5441_v41  ;;  %v1512_v41 = vld [vmem:[#allocation2 + $0x54] sm:$0xe] }
  0xcc   : > { %5026 = vmatprep.subr.bf16.mxu1 %v6291_v15  ;;  %v4519_v39 = vrot.slane %v1512_v41, 9  ;;  %v6376_v41 = vld [vmem:[#allocation2 + $0x28] sm:$0xf] }
  0xcd   : > { %4987 = vmatmul.mubr.msk.bf16.gmra.mrb[8].mxu1 %vm1144_vm11, %v4493_v17  ;;  %v6347_v17 = vld [vmem:[#allocation2 + $0x20] sm:$0x1]  ;;  %v3263_v45 = vshll.u32 %v6376_v41, 16 }
  0xce   : > { %5119 = vmatmul.mubr.msk.bf16.vlgmr.msra.gmra.mrb[0].mxu0 %vm1144_vm11, %v5434_v57  ;;  %4990 = vmatprep.mubr.msk.bf16.mxu1 %vm1144_vm11, %v4494_v29  ;;  %v3243_v57 = vshrl.u32 %v6333_v52, 16  ;;  %v6353_v29 = vsel %vm6048_vm15, %v1584_v47, %v1585_v63  ;;  %v1544_v63 = vsel %vm6048_vm15, %v1542_v8, %v1543_v34  ;;  %v3249_v59 = vshll.u32 %v6347_v17, 16 }
  0xcf   : > { %5122 = vmatprep.mubr.msk.bf16.mxu0 %vm1144_vm11, %v5437_v27  ;;  %5139 = vmatpush3.bf16.msra.mxu0 %v6172_v6  ;;  %v4496_v6 = vcombine.low %v6130_v58, %v6141_v50  ;;  %v3232_v58 = vrot.slane %v3230_v56, 4  ;;  %v1556_v56 = vrot.slane %v1554_v44, 4  ;;  %v3257_v8 = vshll.u32 %v3202_v55, 16  ;;  %v5445_v44 = vld [vmem:[#allocation2 + $0x54] sm:$0xff]  }
  0xd0   : > { %5140 = vmatprep.subr.bf16.mxu0 %v5446_v51  ;;  %v6374_v47 = vrot.slane %v3243_v57, 4  ;;  %v4530_v35 = vcombine.low %v6359_v43, %v1544_v63  ;;  %v6399_v57 = vsel %vm6048_vm15, %v1549_v10, %v1550_v26  ;;  %v3267_v26 = vshrl.u32 %v6376_v41, 16  ;;  %v5447_v43 = vld [vmem:[#allocation2 + $0x60] sm:$0xff]   ;;  %v5453_v10 = vld [vmem:[%s6917_s3 + $0x68] sm:$0xff]  }
  0xd1   : > { %v6423_v19 = vrot.slane %v3249_v59, 5  ;;  %v3291_v63 = vshrl.u32 %v6405_v12, 16 }
  0xd2   : > { %v3246_v59 = vor.u32 %v6374_v47, %v6372_v38 }
  0xd3   : > { %5141 = vmatpush3.bf16.msra.mxu0 %v5446_v51  ;;  %v1589_v51 = vrot.slane %v6113_v28, 5 }
  0xd4   : > { %5142 = vmatprep.subr.bf16.mxu0 %v5450_v46 }
  0xd5   : > { %4991 = vmatmul.mubr.msk.bf16.gmra.mrb[12].mxu1 %vm1144_vm11, %v4495_v60  ;;  %v6380_v28 = vsel %vm6048_vm15, %v4519_v39, %v1589_v51  ;;  %v1591_v34 = vrot.slane %v1589_v51, 4  ;;  %v6385_v60 = vld [vmem:[%s6917_s3 + $0x100] sm:$0xff]   ;;  %v1599_v39 = vrot.slane %v6145_v5, 5 }
  0xd6   : > { %5123 = vmatmul.mubr.msk.bf16.gmra.mrb[4].mxu0 %vm1144_vm11, %v5439_v24  ;;  %4994 = vmatprep.mubr.msk.bf16.mxu1 %vm1144_vm11, %v4496_v6  ;;  %v3236_v24 = vor.u32 %v3235_v37, %v3232_v58  ;;  %v3254_v6 = vshrl.u32 %v3202_v55, 16  ;;  %v4520_v58 = vrot.slane %v1513_v22, 9  ;;  %v1596_v37 = vrot.slane %v6141_v50, 5  ;;  %v6450_v22 = vld [vmem:[#allocation2 + $0x40] sm:$0xf] }
  0xd7   : > { %5126 = vmatprep.mubr.msk.bf16.mxu0 %vm1144_vm11, %v5443_v2  ;;  %5143 = vmatpush3.bf16.msra.mxu0 %v5450_v46  ;;  %v6409_v21 = vsel %vm6048_vm15, %v1591_v34, %v1592_v48  ;;  %v6413_v46 = vsel %vm6048_vm15, %v1556_v56, %v1557_v33  ;;  %v3278_v2 = vshrl.u32 %v3205_v61, 16  ;;  %v3281_v33 = vshll.u32 %v3205_v61, 16  ;;  %v1514_v56 = vld [vmem:[#allocation2 + $0x6c] sm:$0xe]  ;;  %v6442_v48 = vld [vmem:[#allocation2 + $0x2c] sm:$0x1] }
  0xd8   : > { %5144 = vmatprep.subr.bf16.mxu0 %v5454_v20  ;;  %v6421_v31 = vrot.slane %v3236_v24, 4  ;;  %v3287_v55 = vshll.u32 %v6405_v12, 16  ;;  %v6426_v51 = vrot.slane %v3254_v6, 4  ;;  %v6432_v50 = vsel %vm6048_vm15, %v4520_v58, %v1596_v37  ;;  %v3208_v6 = vld [vmem:[#allocation2 + $0x3c] sm:$0xf] }
  0xd9   : > { %v1598_v5 = vrot.slane %v1596_v37, 4  ;;  %v3259_v34 = vrot.slane %v3257_v8, 5  ;;  %v6444_v24 = vrot.slane %v3263_v45, 5  ;;  %v4532_v49 = vcombine.low %v6403_v54, %v6413_v46  ;;  %v5449_v54 = vld [vmem:[#allocation2 + $0x6c] sm:$0xff]  }
  0xda   : > { %v3280_v61 = vrot.slane %v3278_v2, 4  ;;  %v3283_v8 = vrot.slane %v3281_v33, 5  ;;  %v4521_v45 = vrot.slane %v1514_v56, 9  ;;  %v3293_v46 = vrot.slane %v3291_v63, 4  ;;  %v5451_v33 = vld [vmem:[#allocation2 + $0x78] sm:$0xff]  }
  0xdb   : > { %5145 = vmatpush3.bf16.msra.mxu0 %v5454_v20  ;;  %v4531_v20 = vcombine.low %v6392_v32, %v6399_v57  ;;  %v6454_v47 = vsel %vm6048_vm15, %v1598_v5, %v1599_v39  ;;  %v6457_v32 = vld [vmem:[#allocation2 + $0x38] sm:$0x1]  ;;  %v6459_v57 = vrot.slane %v3287_v55, 5  ;;  %v1603_v2 = vrot.slane %v6167_v4, 5 }
  0xdc   : > { %5166 = vmatprep.subr.bf16.mxu0 %v6385_v60  ;;  %v3247_v58 = vrot.slane %v3246_v59, 4  ;;  %v3311_v37 = vshll.u32 %v6450_v22, 16  ;;  %v3315_v39 = vshrl.u32 %v6450_v22, 16  ;;  %v3273_v55 = vshll.u32 %v6442_v48, 16 }
  0xdd   : > { %4995 = vmatmul.mubr.msk.bf16.gmra.mrb[16].mxu1 %vm1144_vm11, %v4497_v16  ;;  %v3269_v16 = vrot.slane %v3267_v26, 4  ;;  %v3302_v26 = vshrl.u32 %v3208_v6, 16  ;;  %v3297_v5 = vshll.u32 %v6457_v32, 16  ;;  %v6471_v56 = vsel %vm6048_vm15, %v4521_v45, %v1603_v2 }
  0xde   : > { %5127 = vmatmul.mubr.msk.bf16.gmra.mrb[8].mxu0 %vm1144_vm11, %v5445_v44  ;;  %5006 = vmatprep.mubr.msk.bf16.mxu1 %vm1144_vm11, %v4530_v35  ;;  %v3305_v44 = vshll.u32 %v3208_v6, 16  ;;  %v1605_v63 = vrot.slane %v1603_v2, 4  ;;  %v3242_v4 = vsel %vm5903_vm12, %v6421_v31, %v6372_v38  ;;  %v3260_v59 = vor.u32 %v3259_v34, %v6426_v51  ;;  %v6479_v35 = vld [vmem:[#allocation2 + $0x4c] sm:$0xf]  ;;  %v6493_v31 = vld [vmem:[#allocation2 + $0x44] sm:$0x1] }
  0xdf   : > { %5130 = vmatprep.mubr.msk.bf16.mxu0 %vm1144_vm11, %v5447_v43  ;;  %v1606_v43 = vrot.slane %v6174_v13, 5  ;;  %v3270_v6 = vor.u32 %v3269_v16, %v6444_v24  ;;  %v3284_v13 = vor.u32 %v3283_v8, %v3280_v61  ;;  %v3294_v45 = vor.u32 %v3293_v46, %v6459_v57  ;;  %6935 = vst [vmem:[#allocation3_spill] sm:$0xff] %v6493_v31 }
  0xe0   : > { %v3304_v2 = vrot.slane %v3302_v26, 4  ;;  %v3307_v27 = vrot.slane %v3305_v44, 5  ;;  %v3252_v38 = vsel %vm5903_vm12, %v3247_v58, %v6423_v19  ;;  %v6495_v51 = vrot.slane %v3311_v37, 5  ;;  %v5455_v58 = vld [vmem:[%s6917_s3 + $0x70] sm:$0xff]   ;;  %v5452_v37 = vld [vmem:[#allocation2 + $0x84] sm:$0xff]  }
  0xe1   : > { %v6487_v18 = vsel %vm6048_vm15, %v1605_v63, %v1606_v43  ;;  %v3317_v34 = vrot.slane %v3315_v39, 4  ;;  %v3326_v61 = vshrl.u32 %v3211_v40, 16  ;;  %v3329_v8 = vshll.u32 %v3211_v40, 16  ;;  %v6509_v63 = vld [vmem:[#allocation2 + $0x50] sm:$0x1] }
  0xe2   : > { %v3339_v46 = vshrl.u32 %v6479_v35, 16  ;;  %v3261_v19 = vrot.slane %v3260_v59, 4  ;;  %v3271_v26 = vrot.slane %v3270_v6, 4  ;;  %v3275_v44 = vrot.slane %v3273_v55, 5  ;;  %v6512_v59 = vld [vmem:[#allocation2 + $0x58] sm:$0xf] }
  0xe3   : > { %v3295_v40 = vrot.slane %v3294_v45, 4  ;;  %v3308_v39 = vor.u32 %v3307_v27, %v3304_v2  ;;  %v3321_v43 = vshll.u32 %v6493_v31, 16  ;;  %v4700_v16 = vcombine.low %v3242_v4, %v3252_v38  ;;  %v3217_v55 = vld [vmem:[#allocation2 + $0x60] sm:$0xf]  ;;  %v6514_v6 = vld [vmem:[#allocation2 + $0x64] sm:$0xf] }
  0xe4   : > { %v3331_v27 = vrot.slane %v3329_v8, 5  ;;  %v3341_v2 = vrot.slane %v3339_v46, 4  ;;  %v3266_v4 = vsel %vm5903_vm12, %v3261_v19, %v6444_v24  ;;  %v3276_v38 = vsel %vm5903_vm12, %v3271_v26, %v3275_v44 }
  0xe5   : > { %5007 = vmatmul.mubr.msk.bf16.vlgmr.msra.gmra.mrb[0].mxu1 %vm1144_vm11, %v4531_v20  ;;  %v3335_v20 = vshll.u32 %v6479_v35, 16  ;;  %v3323_v11 = vrot.slane %v3321_v43, 5  ;;  %v3359_v31 = vshll.u32 %v6512_v59, 16  ;;  %v6936_v8 = vcombine.low %v6262_v53, %v6266_v7 }
  0xe6   : > { %5131 = vmatmul.mubr.msk.bf16.gmra.mrb[12].mxu0 %vm1144_vm11, %v5449_v54  ;;  %5027 = vmatpush3.bf16.msra.mxu1 %v6291_v15  ;;  %v3299_v54 = vrot.slane %v3297_v5, 5  ;;  %v3285_v15 = vrot.slane %v3284_v13, 4  ;;  %v5457_v5 = vld [vmem:[%s6917_s3 + $0x78] sm:$0xff]   ;;  %v3328_v13 = vrot.slane %v3326_v61, 4  ;;  %v3363_v61 = vshrl.u32 %v6512_v59, 16 }
  0xe7   : > { %5010 = vmatprep.mubr.msk.bf16.mxu1 %vm1144_vm11, %v4532_v49  ;;  %5134 = vmatprep.mubr.msk.bf16.mxu0 %vm1144_vm11, %v5451_v33  ;;  %v3214_v49 = vld [vmem:[#allocation2 + $0x54] sm:$0xf]  ;;  %v3318_v33 = vor.u32 %v3317_v34, %v6495_v51  ;;  %v6519_v45 = vrot.slane %v3335_v20, 5  ;;  %v3345_v24 = vshll.u32 %v6509_v63, 16  ;;  %v3374_v46 = vshrl.u32 %v3217_v55, 16 }
  0xe8   : > { %5028 = vmatprep.subr.bf16.mxu1 %v5453_v10  ;;  %v3350_v34 = vshrl.u32 %v3214_v49, 16  ;;  %v3353_v0 = vshll.u32 %v3214_v49, 16  ;;  %v3377_v19 = vshll.u32 %v3217_v55, 16  ;;  %v6937_v26 = vcombine.low %v6278_v9, %v6285_v36  ;;  %v6547_v9 = vld [vmem:[#allocation2 + $0x5c] sm:$0x1] }
  0xe9   : > { %v3319_v20 = vrot.slane %v3318_v33, 4  ;;  %v3290_v44 = vsel %vm5903_vm12, %v3285_v15, %v6459_v57  ;;  %v3300_v53 = vsel %vm5903_vm12, %v3295_v40, %v3299_v54  ;;  %v3383_v7 = vshll.u32 %v6514_v6, 16  ;;  %v6551_v54 = vld [vmem:[#allocation2 + $0x68] sm:$0x1]  ;;  %v3220_v40 = vld [vmem:[#allocation2 + $0x6c] sm:$0xf] }
  0xea   : > { %5029 = vmatpush3.bf16.msra.mxu1 %v5453_v10  ;;  %v3309_v10 = vrot.slane %v3308_v39, 4  ;;  %v3387_v39 = vshrl.u32 %v6514_v6, 16  ;;  %v3342_v43 = vor.u32 %v3341_v2, %v6519_v45  ;;  %v3352_v36 = vrot.slane %v3350_v34, 4 }
  0xeb   : > { %5030 = vmatprep.subr.bf16.mxu1 %v5455_v58  ;;  %v3355_v49 = vrot.slane %v3353_v0, 5  ;;  %v4701_v33 = vcombine.low %v3266_v4, %v3276_v38  ;;  %v6549_v57 = vrot.slane %v3359_v31, 5  ;;  %v3365_v15 = vrot.slane %v3363_v61, 4 }
  0xec   : > { %v4702_v55 = vcombine.low %v3290_v44, %v3300_v53  ;;  %v3324_v0 = vsel %vm5903_vm12, %v3319_v20, %v3323_v11  ;;  %v3389_v31 = vrot.slane %v3387_v39, 4  ;;  %v3343_v4 = vrot.slane %v3342_v43, 4  ;;  %v3223_v11 = vld [vmem:[#allocation2 + $0x78] sm:$0xf]  ;;  %v6578_v44 = vld [vmem:[#allocation2 + $0x7c] sm:$0xf] }
  0xed   : > { %5011 = vmatmul.mubr.msk.bf16.gmra.mrb[4].mxu1 %vm1144_vm11, %v6936_v8  ;;  %v3347_v8 = vrot.slane %v3345_v24, 5  ;;  %v3356_v38 = vor.u32 %v3355_v49, %v3352_v36  ;;  %v3369_v34 = vshll.u32 %v6547_v9, 16  ;;  %v3366_v61 = vor.u32 %v3365_v15, %v6549_v57  ;;  %v5458_v24 = vld [vmem:[%s6917_s3 + $0x108] sm:$0xff]   ;;  %v5461_v36 = vld [vmem:[%s6917_s3 + $0x110] sm:$0xff]  }
  0xee   : > { %5135 = vmatmul.mubr.msk.bf16.gmra.mrb[16].mxu0 %vm1144_vm11, %v5452_v37  ;;  %5014 = vmatprep.mubr.msk.bf16.mxu1 %vm1144_vm11, %v6937_v26  ;;  %v3332_v37 = vor.u32 %v3331_v27, %v3328_v13  ;;  %v3376_v26 = vrot.slane %v3374_v46, 4  ;;  %v3314_v13 = vsel %vm5903_vm12, %v3309_v10, %v6495_v51  ;;  %v6560_v27 = vrot.slane %v3383_v7, 5  ;;  %v6570_v51 = vld [vmem:[%s6917_s3 + $0x80] sm:$0xff]  }
  0xef   : > { %5146 = vmatprep.mubr.msk.bf16.mxu0 %vm1144_vm11, %v4700_v16  ;;  %5031 = vmatpush3.bf16.msra.mxu1 %v5455_v58  ;;  %v3379_v16 = vrot.slane %v3377_v19, 5  ;;  %v6553_v58 = vld [vmem:[#allocation2 + $0x70] sm:$0xf]  ;;  %v3393_v20 = vshll.u32 %v6551_v54, 16  ;;  %v3398_v46 = vshrl.u32 %v3220_v40, 16  ;;  %v3401_v19 = vshll.u32 %v3220_v40, 16 }
  0xf0   : > { %5032 = vmatprep.subr.bf16.mxu1 %v5457_v5  ;;  %v3333_v2 = vrot.slane %v3332_v37, 4  ;;  %v6939_v53 = vcombine.low %v6339_v3, %v6353_v29  ;;  %v4703_v7 = vcombine.low %v3314_v13, %v3324_v0  ;;  %v3390_v39 = vor.u32 %v3389_v31, %v6560_v27 }
  0xf1   : > { %v3380_v10 = vor.u32 %v3379_v16, %v3376_v26  ;;  %v3348_v3 = vsel %vm5903_vm12, %v3343_v4, %v3347_v8  ;;  %v3357_v29 = vrot.slane %v3356_v38, 4  ;;  %v3371_v43 = vrot.slane %v3369_v34, 5  ;;  %v3226_v4 = vld [vmem:[#allocation2 + $0x84] sm:$0xf]  ;;  %v5464_v38 = vld [vmem:[%s6917_s3 + $0x118] sm:$0xff]  }
  0xf2   : > { %v3338_v37 = vsel %vm5903_vm12, %v3333_v2, %v6519_v45  ;;  %v3422_v49 = vshrl.u32 %v3223_v11, 16  ;;  %v3431_v15 = vshll.u32 %v6578_v44, 16  ;;  %v3367_v40 = vrot.slane %v3366_v61, 4  ;;  %v6602_v2 = vld [vmem:[#allocation2 + $0x74] sm:$0x1] }
  0xf3   : > { %5033 = vmatpush3.bf16.msra.mxu1 %v5457_v5  ;;  %v6938_v5 = vcombine.low %v6300_v25, %v6308_v14  ;;  %v3407_v25 = vshll.u32 %v6553_v58, 16  ;;  %v3411_v14 = vshrl.u32 %v6553_v58, 16  ;;  %v3395_v26 = vrot.slane %v3393_v20, 5 }
  0xf4   : > { %5194 = vmatprep.subr.bf16.mxu1 %v6570_v51  ;;  %v3400_v45 = vrot.slane %v3398_v46, 4  ;;  %v3391_v16 = vrot.slane %v3390_v39, 4  ;;  %v3403_v13 = vrot.slane %v3401_v19, 5  ;;  %v4704_v31 = vcombine.low %v3338_v37, %v3348_v3 }
  0xf5   : > { %5015 = vmatmul.mubr.msk.bf16.gmra.mrb[8].mxu1 %vm1144_vm11, %v6938_v5  ;;  %v6600_v8 = vrot.slane %v3407_v25, 5  ;;  %v3413_v0 = vrot.slane %v3411_v14, 4  ;;  %v3424_v34 = vrot.slane %v3422_v49, 4  ;;  %v6940_v20 = vcombine.low %v6380_v28, %v6409_v21 }
  0xf6   : > { %5147 = vmatmul.mubr.msk.bf16.vlgmr.msra.gmra.mrb[0].mxu0 %vm1144_vm11, %v4701_v33  ;;  %5018 = vmatprep.mubr.msk.bf16.mxu1 %vm1144_vm11, %v6939_v53  ;;  %v3425_v33 = vshll.u32 %v3223_v11, 16  ;;  %v3433_v11 = vrot.slane %v3431_v15, 5  ;;  %v3372_v46 = vsel %vm5903_vm12, %v3367_v40, %v3371_v43  ;;  %v6621_v53 = vld [vmem:[#allocation2 + $0x80] sm:$0x1]  ;;  %v6941_v28 = vcombine.low %v6432_v50, %v6454_v47  ;;  %v5459_v43 = vld [vmem:[#allocation2 + $0xc] sm:$0xff]  }
  0xf7   : > { %5150 = vmatprep.mubr.msk.bf16.mxu0 %vm1144_vm11, %v4702_v55  ;;  %5167 = vmatpush3.bf16.msra.mxu0 %v6385_v60  ;;  %v3435_v60 = vshrl.u32 %v6578_v44, 16  ;;  %v3381_v55 = vrot.slane %v3380_v10, 4  ;;  %v6607_v10 = vld [vmem:[#allocation2 + $0x88] sm:$0xf]  ;;  %v3396_v21 = vsel %vm5903_vm12, %v3391_v16, %v3395_v26  ;;  %v3414_v39 = vor.u32 %v3413_v0, %v6600_v8  ;;  %v6636_v40 = vld [vmem:[#allocation2 + $0x8c] sm:$0x1] }
  0xf8   : > { %5168 = vmatprep.subr.bf16.mxu0 %v5458_v24  ;;  %v3427_v61 = vrot.slane %v3425_v33, 5  ;;  %v3417_v25 = vshll.u32 %v6602_v2, 16  ;;  %v3449_v14 = vshll.u32 %v3226_v4, 16  ;;  %v3459_v37 = vshrl.u32 %v6607_v10, 16  ;;  %v2116_v16 = vld [vmem:[#allocation2 + $0x48] sm:$0xf] }
  0xf9   : > { %v3437_v5 = vrot.slane %v3435_v60, 4  ;;  %v3386_v19 = vsel %vm5903_vm12, %v3381_v55, %v6560_v27  ;;  %v3446_v27 = vshrl.u32 %v3226_v4, 16  ;;  %v3441_v3 = vshll.u32 %v6621_v53, 16 }
  0xfa   : > { %v3428_v50 = vor.u32 %v3427_v61, %v3424_v34  ;;  %v4706_v49 = vcombine.low %v3386_v19, %v3396_v21  ;;  %v3415_v15 = vrot.slane %v3414_v39, 4  ;;  %v3419_v60 = vrot.slane %v3417_v25, 5  ;;  %v3695_v21 = vld [vmem:[#allocation2 + $0x18] sm:$0xe] }
  0xfb   : > { %5169 = vmatpush3.bf16.msra.mxu0 %v5458_v24  ;;  %v3362_v24 = vsel %vm5903_vm12, %v3357_v29, %v6549_v57  ;;  %v3404_v57 = vor.u32 %v3403_v13, %v3400_v45  ;;  %v3438_v47 = vor.u32 %v3437_v5, %v3433_v11  ;;  %v3451_v55 = vrot.slane %v3449_v14, 5 }
  0xfc   : > { %5170 = vmatprep.subr.bf16.mxu0 %v5461_v36  ;;  %v4705_v29 = vcombine.low %v3362_v24, %v3372_v46  ;;  %v3461_v45 = vrot.slane %v3459_v37, 4  ;;  %v3429_v13 = vrot.slane %v3428_v50, 4  ;;  %v6942_v4 = vcombine.low %v6471_v56, %v6487_v18 }
  0xfd   : > { %5019 = vmatmul.mubr.msk.bf16.gmra.mrb[12].mxu1 %vm1144_vm11, %v6940_v20  ;;  %v3405_v33 = vrot.slane %v3404_v57, 4  ;;  %v3439_v0 = vrot.slane %v3438_v47, 4  ;;  %v3465_v61 = vshll.u32 %v6636_v40, 16  ;;  %v3420_v5 = vsel %vm5903_vm12, %v3415_v15, %v3419_v60 }
  0xfe   : > { %5151 = vmatmul.mubr.msk.bf16.gmra.mrb[4].mxu0 %vm1144_vm11, %v4703_v7  ;;  %5022 = vmatprep.mubr.msk.bf16.mxu1 %vm1144_vm11, %v6941_v28  ;;  %v3455_v7 = vshll.u32 %v6607_v10, 16  ;;  %v2255_v56 = vshll.u32 %v2116_v16, 16  ;;  %v3434_v24 = vsel %vm5903_vm12, %v3429_v13, %v3433_v11  ;;  %v3737_v19 = vrot.slane %v6333_v52, 5  ;;  %v5460_v28 = vld [vmem:[#allocation2 + $0x18] sm:$0xff]  }
  0xff   : > { %5154 = vmatprep.mubr.msk.bf16.mxu0 %vm1144_vm11, %v4704_v31  ;;  %5171 = vmatpush3.bf16.msra.mxu0 %v5461_v36  ;;  %v3448_v36 = vrot.slane %v3446_v27, 4  ;;  %v3443_v31 = vrot.slane %v3441_v3, 5  ;;  %v3410_v34 = vsel %vm5903_vm12, %v3405_v33, %v6600_v8  ;;  %v3467_v25 = vrot.slane %v3465_v61, 5  ;;  %v5462_v27 = vld [vmem:[#allocation2 + $0x24] sm:$0xff]  }
 0x100   : > { %5172 = vmatprep.subr.bf16.mxu0 %v5464_v38  ;;  %v3457_v26 = vrot.slane %v3455_v7, 5  ;;  %v2257_v57 = vrot.slane %v2255_v56, 5  ;;  %v4707_v39 = vcombine.low %v3410_v34, %v3420_v5  ;;  %v4724_v47 = vrot.slane %v3695_v21, 9  ;;  %v5479_v5 = vld [vmem:[%s6917_s3 + $0x90] sm:$0xff]  }
 0x101   : > { %v3452_v20 = vor.u32 %v3451_v55, %v3448_v36  ;;  %v3444_v46 = vsel %vm5903_vm12, %v3439_v0, %v3443_v31  ;;  %v3739_v3 = vrot.slane %v3737_v19, 4  ;;  %v3740_v11 = vrot.slane %v6347_v17, 5  ;;  %v2113_v36 = vld [vmem:[#allocation2 + $0x3c] sm:$0xf] }
 0x102   : > { %v3462_v18 = vor.u32 %v3461_v45, %v3457_v26  ;;  %v4708_v14 = vcombine.low %v3434_v24, %v3444_v46  ;;  %v3751_v33 = vrot.slane %v6405_v12, 5  ;;  %v3738_v12 = vsel %vm6048_vm15, %v4724_v47, %v3737_v19  ;;  %v3699_v24 = vld [vmem:[#allocation2 + $0x48] sm:$0xe] }
 0x103   : > { %5173 = vmatpush3.bf16.msra.mxu0 %v5464_v38  ;;  %v2252_v38 = vshrl.u32 %v2116_v16, 16  ;;  %v3453_v7 = vrot.slane %v3452_v20, 4  ;;  %v3741_v60 = vsel %vm6048_vm15, %v3739_v3, %v3740_v11  ;;  %v6943_v55 = vsel %vm5903_vm12, %v6225_v30, %v6227_v1  ;;  %v3698_v20 = vld [vmem:[#allocation2 + $0x3c] sm:$0xe] }
 0x104   : > { %v3463_v37 = vrot.slane %v3462_v18, 4  ;;  %v3747_v13 = vrot.slane %v6442_v48, 5  ;;  %v3753_v34 = vrot.slane %v3751_v33, 4  ;;  %v3754_v61 = vrot.slane %v6457_v32, 5 }
 0x105   : > { %5023 = vmatmul.mubr.msk.bf16.gmra.mrb[16].mxu1 %vm1144_vm11, %v6942_v4  ;;  %v2254_v8 = vrot.slane %v2252_v38, 4  ;;  %v3458_v17 = vsel %vm5903_vm12, %v3453_v7, %v3457_v26  ;;  %v5465_v4 = vld [vmem:[#allocation2 + $0x3c] sm:$0xff]   ;;  %v4742_v38 = vcombine.low %v3738_v12, %v3741_v60  ;;  %v2228_v30 = vshrl.u32 %v2113_v36, 16 }
 0x106   : > { %5155 = vmatmul.mubr.msk.bf16.gmra.mrb[8].mxu0 %vm1144_vm11, %v4705_v29  ;;  %5034 = vmatprep.mubr.msk.bf16.mxu1 %vm1144_vm11, %v5459_v43  ;;  %v3744_v29 = vrot.slane %v6376_v41, 5  ;;  %v3696_v43 = vld [vmem:[#allocation2 + $0x24] sm:$0xe]  ;;  %v3468_v15 = vsel %vm5903_vm12, %v3463_v37, %v3467_v25  ;;  %v2231_v1 = vshll.u32 %v2113_v36, 16  ;;  %v3758_v56 = vrot.slane %v6450_v22, 5  ;;  %v5481_v37 = vld [vmem:[%s6917_s3 + $0x98] sm:$0xff]  }
 0x107   : > { %5158 = vmatprep.mubr.msk.bf16.mxu0 %vm1144_vm11, %v4706_v49  ;;  %v2258_v50 = vor.u32 %v2257_v57, %v2254_v8  ;;  %v3697_v49 = vld [vmem:[#allocation2 + $0x30] sm:$0xe]  ;;  %v4725_v45 = vrot.slane %v3696_v43, 9  ;;  %v4709_v31 = vcombine.low %v3458_v17, %v3468_v15  ;;  %v3755_v46 = vsel %vm6048_vm15, %v3753_v34, %v3754_v61  ;;  %v3700_v8 = vld [vmem:[#allocation2 + $0x54] sm:$0xe] }
 0x108   : > { %v3746_v16 = vrot.slane %v3744_v29, 4  ;;  %v4726_v0 = vrot.slane %v3697_v49, 9  ;;  %v3765_v19 = vrot.slane %v6479_v35, 5  ;;  %v3772_v22 = vrot.slane %v6512_v59, 5  ;;  %v5467_v43 = vld [vmem:[#allocation2 + $0x54] sm:$0xff]  }
 0x109   : > { %v2259_v52 = vrot.slane %v2258_v50, 4  ;;  %v3745_v48 = vsel %vm6048_vm15, %v4725_v45, %v3744_v29  ;;  %v2230_v25 = vrot.slane %v2228_v30, 4  ;;  %v4728_v35 = vrot.slane %v3699_v24, 9  ;;  %v5466_v50 = vld [vmem:[#allocation2 + $0x48] sm:$0xff]   ;;  %v3701_v60 = vld [vmem:[#allocation2 + $0x60] sm:$0xe] }
 0x10a   : > { %v3748_v18 = vsel %vm6048_vm15, %v3746_v16, %v3747_v13  ;;  %v3752_v32 = vsel %vm6048_vm15, %v4726_v0, %v3751_v33  ;;  %v3760_v11 = vrot.slane %v3758_v56, 4  ;;  %v4729_v29 = vrot.slane %v3700_v8, 9  ;;  %v3702_v36 = vld [vmem:[#allocation2 + $0x6c] sm:$0xe]  ;;  %v5482_v45 = vld [vmem:[#allocation2 + $0x58] sm:$0xf] }
 0x10b   : > { %v2264_v41 = vsel %vm5903_vm12, %v2259_v52, %v6199_v23  ;;  %v5463_v23 = vld [vmem:[#allocation2 + $0x30] sm:$0xff]   ;;  %v4743_v47 = vcombine.low %v3745_v48, %v3748_v18  ;;  %v4744_v3 = vcombine.low %v3752_v32, %v3755_v46  ;;  %v3767_v49 = vrot.slane %v3765_v19, 4  ;;  %v5468_v46 = vld [vmem:[#allocation2 + $0x60] sm:$0xff]  }
 0x10c   : > { %v6683_v26 = vcombine.low %v2264_v41, %v6943_v55  ;;  %v2119_v52 = vld [vmem:[#allocation2 + $0x54] sm:$0xf]  ;;  %v3768_v59 = vrot.slane %v6509_v63, 5  ;;  %v3774_v41 = vrot.slane %v3772_v22, 4  ;;  %v2285_v16 = vshll.u32 %v5482_v45, 16  ;;  %v5469_v8 = vld [vmem:[#allocation2 + $0x6c] sm:$0xff]  }
 0x10d   : > { %5035 = vmatmul.mubr.msk.bf16.vlgmr.msra.gmra.mrb[0].mxu1 %vm1144_vm11, %v5460_v28  ;;  %v5480_v28 = vld [vmem:[#allocation2 + $0x40] sm:$0xf]  ;;  %v2276_v55 = vshrl.u32 %v2119_v52, 16  ;;  %v2289_v13 = vshrl.u32 %v5482_v45, 16  ;;  %v3766_v0 = vsel %vm6048_vm15, %v4728_v35, %v3765_v19  ;;  %v4731_v48 = vrot.slane %v3702_v36, 9 }
 0x10e   : > { %5159 = vmatmul.mubr.msk.bf16.gmra.mrb[12].mxu0 %vm1144_vm11, %v4707_v39  ;;  %5198 = vmatpush3.bf16.msra.mxu1 %v6570_v51  ;;  %v5478_v51 = vld [vmem:[%s6917_s3 + $0x88] sm:$0xff]   ;;  %v2237_v21 = vshll.u32 %v5480_v28, 16  ;;  %v2241_v57 = vshrl.u32 %v5480_v28, 16  ;;  %v4727_v39 = vrot.slane %v3698_v20, 9  ;;  %v3769_v34 = vsel %vm6048_vm15, %v3767_v49, %v3768_v59  ;;  %v5484_v35 = vld [vmem:[#allocation2 + $0x5c] sm:$0x1] }
 0x10f   : > { %5038 = vmatprep.mubr.msk.bf16.mxu1 %vm1144_vm11, %v5462_v27  ;;  %5162 = vmatprep.mubr.msk.bf16.mxu0 %vm1144_vm11, %v4708_v14  ;;  %v2233_v27 = vrot.slane %v2231_v1, 5  ;;  %v6944_v14 = vld [vmem:[#allocation3_spill] sm:$0xff]  ;;  %v4730_v20 = vrot.slane %v3701_v60, 9  ;;  %v2278_v18 = vrot.slane %v2276_v55, 4  ;;  %v2291_v24 = vrot.slane %v2289_v13, 4 }
 0x110   : > { %5195 = vmatprep.subr.bf16.mxu1 %v5478_v51  ;;  %v3761_v7 = vrot.slane %v6944_v14, 5  ;;  %v6710_v33 = vrot.slane %v2237_v21, 5  ;;  %v2243_v17 = vrot.slane %v2241_v57, 4  ;;  %v3759_v15 = vsel %vm6048_vm15, %v4727_v39, %v3758_v56 }
 0x111   : > { %v2234_v12 = vor.u32 %v2233_v27, %v2230_v25  ;;  %v6736_v56 = vrot.slane %v2285_v16, 5  ;;  %v3789_v39 = vrot.slane %v6602_v2, 5  ;;  %v4746_v25 = vcombine.low %v3766_v0, %v3769_v34  ;;  %v5470_v16 = vld [vmem:[#allocation2 + $0x78] sm:$0xff]  }
 0x112   : > { %5199 = vmatpush3.bf16.msra.mxu1 %v5478_v51  ;;  %v3775_v51 = vrot.slane %v6547_v9, 5  ;;  %v3762_v63 = vsel %vm6048_vm15, %v3760_v11, %v3761_v7  ;;  %v5483_v9 = vld [vmem:[#allocation2 + $0x44] sm:$0x1]  ;;  %v2244_v61 = vor.u32 %v2243_v17, %v6710_v33  ;;  %v3703_v17 = vld [vmem:[#allocation2 + $0x78] sm:$0xe]  ;;  %v3793_v45 = vrot.slane %v6578_v44, 5 }
 0x113   : > { %5196 = vmatprep.subr.bf16.mxu1 %v5479_v5  ;;  %v2235_v1 = vrot.slane %v2234_v12, 4  ;;  %v4745_v19 = vcombine.low %v3759_v15, %v3762_v63  ;;  %v2292_v2 = vor.u32 %v2291_v24, %v6736_v56 }
 0x114   : > { %v6734_v30 = vsel %vm6048_vm15, %v3774_v41, %v3775_v51  ;;  %v2245_v28 = vrot.slane %v2244_v61, 4  ;;  %v5486_v51 = vld [vmem:[#allocation2 + $0x70] sm:$0xf]  ;;  %v4732_v61 = vrot.slane %v3703_v17, 9 }
 0x115   : > { %5039 = vmatmul.mubr.msk.bf16.gmra.mrb[4].mxu1 %vm1144_vm11, %v5463_v23  ;;  %v2279_v23 = vshll.u32 %v2119_v52, 16  ;;  %v2333_v12 = vshll.u32 %v5486_v51, 16  ;;  %v2337_v60 = vshrl.u32 %v5486_v51, 16  ;;  %v2293_v55 = vrot.slane %v2292_v2, 4 }
 0x116   : > { %5163 = vmatmul.mubr.msk.bf16.gmra.mrb[16].mxu0 %vm1144_vm11, %v4709_v31  ;;  %5042 = vmatprep.mubr.msk.bf16.mxu1 %vm1144_vm11, %v5465_v4  ;;  %v6722_v31 = vsel %vm6048_vm15, %v4729_v29, %v3772_v22  ;;  %v2247_v4 = vshll.u32 %v5483_v9, 16  ;;  %v2122_v22 = vld [vmem:[#allocation2 + $0x60] sm:$0xf]  ;;  %v5485_v29 = vld [vmem:[#allocation2 + $0x64] sm:$0xf] }
 0x117   : > { %5174 = vmatprep.mubr.msk.bf16.mxu0 %vm1144_vm11, %v4742_v38  ;;  %5200 = vmatpush3.bf16.msra.mxu1 %v5479_v5  ;;  %v3779_v38 = vrot.slane %v6514_v6, 5  ;;  %v3786_v5 = vrot.slane %v6553_v58, 5  ;;  %v2281_v32 = vrot.slane %v2279_v23, 5  ;;  %v3782_v58 = vrot.slane %v6551_v54, 5 }
 0x118   : > { %5197 = vmatprep.subr.bf16.mxu1 %v5481_v37  ;;  %v2249_v6 = vrot.slane %v2247_v4, 5  ;;  %v4747_v27 = vcombine.low %v6722_v31, %v6734_v30  ;;  %v2240_v54 = vsel %vm5903_vm12, %v2235_v1, %v6710_v33  ;;  %v2303_v11 = vshll.u32 %v2122_v22, 16 }
 0x119   : > { %v3781_v21 = vrot.slane %v3779_v38, 4  ;;  %v3788_v57 = vrot.slane %v3786_v5, 4  ;;  %v6744_v14 = vsel %vm6048_vm15, %v4730_v20, %v3779_v38  ;;  %v6748_v7 = vsel %vm6048_vm15, %v4731_v48, %v3786_v5  ;;  %v2128_v20 = vld [vmem:[#allocation2 + $0x78] sm:$0xf] }
 0x11a   : > { %v2309_v52 = vshll.u32 %v5485_v29, 16  ;;  %v2250_v49 = vsel %vm5903_vm12, %v2245_v28, %v2249_v6  ;;  %v2305_v63 = vrot.slane %v2303_v11, 5  ;;  %v2335_v30 = vrot.slane %v2333_v12, 5  ;;  %v3704_v6 = vld [vmem:[#allocation2 + $0x84] sm:$0xe] }
 0x11b   : > { %5201 = vmatpush3.bf16.msra.mxu1 %v5481_v37  ;;  %v2282_v37 = vor.u32 %v2281_v32, %v2278_v18  ;;  %v3783_v59 = vsel %vm6048_vm15, %v3781_v21, %v3782_v58  ;;  %v6763_v33 = vsel %vm6048_vm15, %v3788_v57, %v3789_v39  ;;  %v4598_v9 = vcombine.low %v2240_v54, %v2250_v49  ;;  %v5487_v32 = vld [vmem:[#allocation2 + $0x68] sm:$0x1] }
 0x11c   : > { %v6767_v0 = vrot.slane %v2309_v52, 5  ;;  %v4748_v4 = vcombine.low %v6744_v14, %v3783_v59  ;;  %v4749_v34 = vcombine.low %v6748_v7, %v6763_v33  ;;  %v2339_v1 = vrot.slane %v2337_v60, 4  ;;  %v5489_v14 = vld [vmem:[#allocation2 + $0x74] sm:$0x1] }
 0x11d   : > { %5043 = vmatmul.mubr.msk.bf16.gmra.mrb[8].mxu1 %vm1144_vm11, %v5466_v50  ;;  %v2295_v50 = vshll.u32 %v5484_v35, 16  ;;  %v2283_v36 = vrot.slane %v2282_v37, 4  ;;  %v3795_v48 = vrot.slane %v3793_v45, 4  ;;  %v3796_v18 = vrot.slane %v6621_v53, 5  ;;  %v5488_v53 = vld [vmem:[#allocation2 + $0x7c] sm:$0xf] }
 0x11e   : > { %5175 = vmatmul.mubr.msk.bf16.vlgmr.msra.gmra.mrb[0].mxu0 %vm1144_vm11, %v4743_v47  ;;  %5046 = vmatprep.mubr.msk.bf16.mxu1 %vm1144_vm11, %v5467_v43  ;;  %v2125_v47 = vld [vmem:[#allocation2 + $0x6c] sm:$0xf]  ;;  %v2313_v43 = vshrl.u32 %v5485_v29, 16  ;;  %v2319_v24 = vshll.u32 %v5487_v32, 16  ;;  %v3800_v58 = vrot.slane %v6607_v10, 5  ;;  %v2351_v28 = vshll.u32 %v2128_v20, 16 }
 0x11f   : > { %5178 = vmatprep.mubr.msk.bf16.mxu0 %vm1144_vm11, %v4744_v3  ;;  %v2300_v3 = vshrl.u32 %v2122_v22, 16  ;;  %v2324_v15 = vshrl.u32 %v2125_v47, 16  ;;  %v2327_v41 = vshll.u32 %v2125_v47, 16  ;;  %v2297_v23 = vrot.slane %v2295_v50, 5 }
 0x120   : > { %v2315_v31 = vrot.slane %v2313_v43, 4  ;;  %v2288_v44 = vsel %vm5903_vm12, %v2283_v36, %v6736_v56  ;;  %v2348_v56 = vshrl.u32 %v2128_v20, 16  ;;  %v2357_v21 = vshll.u32 %v5488_v53, 16 }
 0x121   : > { %v2302_v13 = vrot.slane %v2300_v3, 4  ;;  %v2326_v38 = vrot.slane %v2324_v15, 4  ;;  %v2329_v5 = vrot.slane %v2327_v41, 5  ;;  %v2361_v57 = vshrl.u32 %v5488_v53, 16 }
 0x122   : > { %v3794_v39 = vsel %vm6048_vm15, %v4732_v61, %v3793_v45  ;;  %v2343_v7 = vshll.u32 %v5489_v14, 16  ;;  %v3797_v10 = vsel %vm6048_vm15, %v3795_v48, %v3796_v18  ;;  %v4733_v54 = vrot.slane %v3704_v6, 9 }
 0x123   : > { %v2330_v22 = vor.u32 %v2329_v5, %v2326_v38  ;;  %v3803_v37 = vrot.slane %v6636_v40, 5  ;;  %v3802_v47 = vrot.slane %v3800_v58, 4  ;;  %v2350_v3 = vrot.slane %v2348_v56, 4 }
 0x124   : > { %v2353_v11 = vrot.slane %v2351_v28, 5  ;;  %v2359_v29 = vrot.slane %v2357_v21, 5  ;;  %v2363_v52 = vrot.slane %v2361_v57, 4  ;;  %v4750_v43 = vcombine.low %v3794_v39, %v3797_v10 }
 0x125   : > { %5047 = vmatmul.mubr.msk.bf16.gmra.mrb[12].mxu1 %vm1144_vm11, %v5468_v46  ;;  %v2298_v46 = vsel %vm5903_vm12, %v2293_v55, %v2297_v23  ;;  %v2331_v49 = vrot.slane %v2330_v22, 4  ;;  %v2345_v33 = vrot.slane %v2343_v7, 5  ;;  %v3801_v40 = vsel %vm6048_vm15, %v4733_v54, %v3800_v58 }
 0x126   : > { %5179 = vmatmul.mubr.msk.bf16.gmra.mrb[4].mxu0 %vm1144_vm11, %v4745_v19  ;;  %5050 = vmatprep.mubr.msk.bf16.mxu1 %vm1144_vm11, %v5469_v8  ;;  %v2306_v19 = vor.u32 %v2305_v63, %v2302_v13  ;;  %v2316_v8 = vor.u32 %v2315_v31, %v6767_v0  ;;  %v4600_v2 = vcombine.low %v2288_v44, %v2298_v46 }
 0x127   : > { %5182 = vmatprep.mubr.msk.bf16.mxu0 %vm1144_vm11, %v4746_v25  ;;  %v2340_v25 = vor.u32 %v2339_v1, %v2335_v30  ;;  %v3804_v15 = vsel %vm6048_vm15, %v3802_v47, %v3803_v37  ;;  %v2354_v51 = vor.u32 %v2353_v11, %v2350_v3  ;;  %v2364_v12 = vor.u32 %v2363_v52, %v2359_v29 }
 0x128   : > { %v2307_v35 = vrot.slane %v2306_v19, 4  ;;  %v2317_v50 = vrot.slane %v2316_v8, 4  ;;  %v2336_v36 = vsel %vm5903_vm12, %v2331_v49, %v2335_v30  ;;  %v4751_v23 = vcombine.low %v3801_v40, %v3804_v15 }
 0x129   : > { %v2341_v59 = vrot.slane %v2340_v25, 4  ;;  %v2365_v13 = vrot.slane %v2364_v12, 4 }
 0x12a   : > { %v2312_v17 = vsel %vm5903_vm12, %v2307_v35, %v6767_v0 }
 0x12b   : > { %v2346_v62 = vsel %vm5903_vm12, %v2341_v59, %v2345_v33 }
 0x12c   : > { %v4602_v45 = vcombine.low %v2336_v36, %v2346_v62 }
 0x12d   : > { %5051 = vmatmul.mubr.msk.bf16.gmra.mrb[16].mxu1 %vm1144_vm11, %v5470_v16  ;;  %v2355_v16 = vrot.slane %v2354_v51, 4 }
 0x12e   : > { %5183 = vmatmul.mubr.msk.bf16.gmra.mrb[8].mxu0 %vm1144_vm11, %v4747_v27  ;;  %5070 = vmatprep.mubr.msk.bf16.mxu1 %vm1144_vm11, %v4598_v9  ;;  %v2321_v27 = vrot.slane %v2319_v24, 5 }
 0x12f   : > { %5186 = vmatprep.mubr.msk.bf16.mxu0 %vm1144_vm11, %v4748_v4  ;;  %v2360_v0 = vsel %vm5903_vm12, %v2355_v16, %v2359_v29 }
 0x130   : > { %v2322_v41 = vsel %vm5903_vm12, %v2317_v50, %v2321_v27 }
 0x131   : > { %v4601_v55 = vcombine.low %v2312_v17, %v2322_v41 }
 0x135   : > { %5071 = vmatmul.mubr.msk.bf16.vlgmr.msra.gmra.mrb[8].mxu1 %vm1144_vm11, %v6683_v26  ;;  %v5490_v26 = vld [vmem:[#allocation2 + $0x80] sm:$0x1] }
 0x136   : > { %5187 = vmatmul.mubr.msk.bf16.gmra.mrb[12].mxu0 %vm1144_vm11, %v4749_v34  ;;  %5074 = vmatprep.mubr.msk.bf16.mxu1 %vm1144_vm11, %v4600_v2  ;;  %v2367_v60 = vshll.u32 %v5490_v26, 16 }
 0x137   : > { %5190 = vmatprep.mubr.msk.bf16.mxu0 %vm1144_vm11, %v4750_v43 }
 0x138   : > { %v2369_v63 = vrot.slane %v2367_v60, 5 }
 0x13a   : > { %v2370_v31 = vsel %vm5903_vm12, %v2365_v13, %v2369_v63 }
 0x13b   : > { %v4603_v9 = vcombine.low %v2360_v0, %v2370_v31 }
 0x13d   : > { %5075 = vmatmul.mubr.msk.bf16.gmra.mrb[12].mxu1 %vm1144_vm11, %v4601_v55 }
 0x13e   : > { %5191 = vmatmul.mubr.msk.bf16.gmra.mrb[16].mxu0 %vm1144_vm11, %v4751_v23  ;;  %5078 = vmatprep.mubr.msk.bf16.mxu1 %vm1144_vm11, %v4602_v45 }
 0x145   : > { %5079 = vmatmul.mubr.msk.bf16.gmra.mrb[16].mxu1 %vm1144_vm11, %v4603_v9 }
 0x1e0   : > { %v5036_v4 = vpop.f32.mrb[0].mxu1 }
 0x1e1   : > { %v2002_v34 = vpop.f32.mrb[1].mxu1 }
 0x1e2   : > { %v5037_v61 = vpop.f32.mrb[2].mxu1 }
 0x1e3   : > { %v2005_v38 = vpop.f32.mrb[3].mxu1 }
 0x1e8   : > { %v5040_v5 = vpop.f32.mrb[4].mxu1 }
 0x1e9   : > { %v2018_v30 = vpop.f32.mrb[5].mxu1 }
 0x1ea   : > { %v5041_v1 = vpop.f32.mrb[6].mxu1 }
 0x1eb   : > { %v2021_v20 = vpop.f32.mrb[7].mxu1 }
 0x1f1   : > { %v5176_v44 = vpop.f32.mrb[0].mxu0 }
 0x1f2   : > { %v5202_v48 = vadd.f32 %v5176_v44, %v5036_v4  ;;  %v3932_v18 = vpop.f32.mrb[1].mxu0 }
 0x1f3   : > { %v5203_v32 = vadd.f32 %v3932_v18, %v2002_v34  ;;  %v5177_v24 = vpop.f32.mrb[2].mxu0 }
 0x1f4   : > { %v4070_v42 = vmul.f32 %v5202_v48, %v5202_v48  ;;  %v4798_v46 = vpack.c.bf16 %v5202_v48, %v5202_v48  ;;  %v5204_v19 = vadd.f32 %v5177_v24, %v5037_v61  ;;  %v3935_v8 = vpop.f32.mrb[3].mxu0  ;;  %v4031_v56 = vsel %vm1144_vm11, %v5202_v48, 0.0 }
 0x1f5   : > { %v4796_v6 = vpack.c.bf16 %v5203_v32, %v5203_v32  ;;  %v5205_v58 = vadd.f32 %v3935_v8, %v2005_v38 }
 0x1f6   : > { %4206 = vst.msk [vmem:[%s5683_s17 + $0x8] sm:$0xf] %vm623_vm6, %v4798_v46  ;;  %v4032_v28 = vsel %vm1144_vm11, %v5204_v19, 0.0  ;;  %v4071_v53 = vmul.f32 %v5204_v19, %v5204_v19  ;;  %v4799_v21 = vpack.c.bf16 %v5204_v19, %v5204_v19  ;;  %v4086_v22 = vsel %vm1144_vm11, %v4070_v42, 0.0 }
 0x1f7   : > { %4204 = vst.msk [vmem:[%s5683_s17] sm:$0xf] %vm623_vm6, %v4796_v6  ;;  %v4033_v57 = vadd.f32 %v4032_v28, %v4031_v56  ;;  %v4797_v39 = vpack.c.bf16 %v5205_v58, %v5205_v58 }
 0x1f8   : > { %v4087_v25 = vsel %vm1144_vm11, %v4071_v53, 0.0  ;;  %4207 = vst.msk [vmem:[%s5683_s17 + $0xc] sm:$0xf] %vm623_vm6, %v4799_v21 }
 0x1f9   : > { %v4088_v14 = vadd.f32 %v4087_v25, %v4086_v22  ;;  %4205 = vst.msk [vmem:[%s5683_s17 + $0x4] sm:$0xf] %vm623_vm6, %v4797_v39  ;;  %v5180_v7 = vpop.f32.mrb[4].mxu0 }
 0x1fa   : > { %v5206_v10 = vadd.f32 %v5180_v7, %v5040_v5  ;;  %v3948_v27 = vpop.f32.mrb[5].mxu0 }
 0x1fb   : > { %v5207_v54 = vadd.f32 %v3948_v27, %v2018_v30  ;;  %v5181_v37 = vpop.f32.mrb[6].mxu0 }
 0x1fc   : > { %v4802_v2 = vpack.c.bf16 %v5206_v10, %v5206_v10  ;;  %v5208_v35 = vadd.f32 %v5181_v37, %v5041_v1  ;;  %v3951_v50 = vpop.f32.mrb[7].mxu0  ;;  %v4074_v52 = vmul.f32 %v5206_v10, %v5206_v10  ;;  %v4038_v51 = vsel %vm1144_vm11, %v5206_v10, 0.0 }
 0x1fd   : > { %v4034_v47 = vsel %vm1144_vm11, %v5207_v54, 0.0  ;;  %v4072_v3 = vmul.f32 %v5207_v54, %v5207_v54  ;;  %v4800_v11 = vpack.c.bf16 %v5207_v54, %v5207_v54  ;;  %v5209_v29 = vadd.f32 %v3951_v50, %v2021_v20 }
 0x1fe   : > { %4210 = vst.msk [vmem:[%s5683_s17 + $0x18] sm:$0xf] %vm623_vm6, %v4802_v2  ;;  %v4035_v43 = vadd.f32 %v4034_v47, %v4033_v57  ;;  %v4803_v59 = vpack.c.bf16 %v5208_v35, %v5208_v35  ;;  %v4075_v12 = vmul.f32 %v5208_v35, %v5208_v35  ;;  %v4093_v23 = vsel %vm1144_vm11, %v4074_v52, 0.0 }
 0x1ff   : > { %v4089_v49 = vsel %vm1144_vm11, %v4072_v3, 0.0  ;;  %4208 = vst.msk [vmem:[%s5683_s17 + $0x10] sm:$0xf] %vm623_vm6, %v4800_v11  ;;  %v4036_v33 = vsel %vm1144_vm11, %v5209_v29, 0.0  ;;  %v4073_v17 = vmul.f32 %v5209_v29, %v5209_v29  ;;  %v4801_v41 = vpack.c.bf16 %v5209_v29, %v5209_v29 }
 0x200   : > { %v4090_v40 = vadd.f32 %v4089_v49, %v4088_v14  ;;  %v4037_v15 = vadd.f32 %v4036_v33, %v4035_v43  ;;  %4211 = vst.msk [vmem:[%s5683_s17 + $0x1c] sm:$0xf] %vm623_vm6, %v4803_v59  ;;  %v4040_v45 = vsel %vm1144_vm11, %v5208_v35, 0.0  ;;  %v4095_v31 = vsel %vm1144_vm11, %v4075_v12, 0.0 }
 0x201   : > { %v4091_v26 = vsel %vm1144_vm11, %v4073_v17, 0.0  ;;  %v5184_v60 = vpop.f32.mrb[8].mxu0  ;;  %4209 = vst.msk [vmem:[%s5683_s17 + $0x14] sm:$0xf] %vm623_vm6, %v4801_v41 }
 0x202   : > { %v4039_v36 = vadd.f32 %v4038_v51, %v4037_v15  ;;  %v4092_v62 = vadd.f32 %v4091_v26, %v4090_v40  ;;  %v3964_v55 = vpop.f32.mrb[9].mxu0 }
 0x203   : > { %v5185_v16 = vpop.f32.mrb[10].mxu0 }
 0x204   : > { %v4094_v13 = vadd.f32 %v4093_v23, %v4092_v62  ;;  %v3967_v63 = vpop.f32.mrb[11].mxu0  ;;  %v4041_v0 = vadd.f32 %v4040_v45, %v4039_v36 }
 0x206   : > { %v4096_v9 = vadd.f32 %v4095_v31, %v4094_v13 }
 0x208   : > { %v5072_v4 = vpop.f32.mrb[8].mxu1 }
 0x209   : > { %v5210_v34 = vadd.f32 %v5184_v60, %v5072_v4  ;;  %v5188_v61 = vpop.f32.mrb[12].mxu0  ;;  %v2530_v38 = vpop.f32.mrb[9].mxu1 }
 0x20a   : > { %v5211_v5 = vadd.f32 %v3964_v55, %v2530_v38  ;;  %v3980_v30 = vpop.f32.mrb[13].mxu0  ;;  %v5073_v1 = vpop.f32.mrb[10].mxu1 }
 0x20b   : > { %v4806_v20 = vpack.c.bf16 %v5210_v34, %v5210_v34  ;;  %v5212_v44 = vadd.f32 %v5185_v16, %v5073_v1  ;;  %v5189_v48 = vpop.f32.mrb[14].mxu0  ;;  %v2533_v18 = vpop.f32.mrb[11].mxu1  ;;  %v4078_v8 = vmul.f32 %v5210_v34, %v5210_v34  ;;  %v4046_v25 = vsel %vm1144_vm11, %v5210_v34, 0.0 }
 0x20c   : > { %v4042_v32 = vsel %vm1144_vm11, %v5211_v5, 0.0  ;;  %v4076_v24 = vmul.f32 %v5211_v5, %v5211_v5  ;;  %v4804_v42 = vpack.c.bf16 %v5211_v5, %v5211_v5  ;;  %v5213_v46 = vadd.f32 %v3967_v63, %v2533_v18  ;;  %v3983_v19 = vpop.f32.mrb[15].mxu0 }
 0x20d   : > { %4214 = vst.msk [vmem:[%s5683_s17 + $0x28] sm:$0xf] %vm623_vm6, %v4806_v20  ;;  %v4043_v6 = vadd.f32 %v4042_v32, %v4041_v0  ;;  %v4807_v56 = vpack.c.bf16 %v5212_v44, %v5212_v44  ;;  %v4079_v57 = vmul.f32 %v5212_v44, %v5212_v44  ;;  %v4101_v35 = vsel %vm1144_vm11, %v4078_v8, 0.0 }
 0x20e   : > { %v4097_v58 = vsel %vm1144_vm11, %v4076_v24, 0.0  ;;  %4212 = vst.msk [vmem:[%s5683_s17 + $0x20] sm:$0xf] %vm623_vm6, %v4804_v42  ;;  %v4044_v28 = vsel %vm1144_vm11, %v5213_v46, 0.0  ;;  %v4077_v53 = vmul.f32 %v5213_v46, %v5213_v46  ;;  %v4805_v22 = vpack.c.bf16 %v5213_v46, %v5213_v46 }
 0x20f   : > { %v4098_v21 = vadd.f32 %v4097_v58, %v4096_v9  ;;  %v4045_v39 = vadd.f32 %v4044_v28, %v4043_v6  ;;  %4215 = vst.msk [vmem:[%s5683_s17 + $0x2c] sm:$0xf] %vm623_vm6, %v4807_v56  ;;  %v4048_v11 = vsel %vm1144_vm11, %v5212_v44, 0.0  ;;  %v4103_v29 = vsel %vm1144_vm11, %v4079_v57, 0.0 }
 0x210   : > { %v4099_v14 = vsel %vm1144_vm11, %v4077_v53, 0.0  ;;  %v5076_v7 = vpop.f32.mrb[12].mxu1  ;;  %4213 = vst.msk [vmem:[%s5683_s17 + $0x24] sm:$0xf] %vm623_vm6, %v4805_v22 }
 0x211   : > { %v4047_v10 = vadd.f32 %v4046_v25, %v4045_v39  ;;  %v4100_v27 = vadd.f32 %v4099_v14, %v4098_v21  ;;  %v5214_v54 = vadd.f32 %v5188_v61, %v5076_v7  ;;  %v5192_v37 = vpop.f32.mrb[16].mxu0  ;;  %v2546_v2 = vpop.f32.mrb[13].mxu1 }
 0x212   : > { %v5215_v50 = vadd.f32 %v3980_v30, %v2546_v2  ;;  %v3996_v47 = vpop.f32.mrb[17].mxu0  ;;  %v5077_v3 = vpop.f32.mrb[14].mxu1 }
 0x213   : > { %v4102_v52 = vadd.f32 %v4101_v35, %v4100_v27  ;;  %v4810_v43 = vpack.c.bf16 %v5214_v54, %v5214_v54  ;;  %v5193_v49 = vpop.f32.mrb[18].mxu0  ;;  %v2549_v59 = vpop.f32.mrb[15].mxu1  ;;  %v4049_v33 = vadd.f32 %v4048_v11, %v4047_v10  ;;  %v5216_v12 = vadd.f32 %v5189_v48, %v5077_v3 }
 0x214   : > { %v4050_v17 = vsel %vm1144_vm11, %v5215_v50, 0.0  ;;  %v4080_v40 = vmul.f32 %v5215_v50, %v5215_v50  ;;  %v4808_v15 = vpack.c.bf16 %v5215_v50, %v5215_v50  ;;  %v3999_v41 = vpop.f32.mrb[19].mxu0  ;;  %v5217_v26 = vadd.f32 %v3983_v19, %v2549_v59 }
 0x215   : > { %4218 = vst.msk [vmem:[%s5683_s17 + $0x38] sm:$0xf] %vm623_vm6, %v4810_v43  ;;  %v4104_v51 = vadd.f32 %v4103_v29, %v4102_v52  ;;  %v4082_v60 = vmul.f32 %v5214_v54, %v5214_v54  ;;  %v4051_v36 = vadd.f32 %v4050_v17, %v4049_v33  ;;  %v4811_v23 = vpack.c.bf16 %v5216_v12, %v5216_v12 }
 0x216   : > { %v4105_v62 = vsel %vm1144_vm11, %v4080_v40, 0.0  ;;  %4216 = vst.msk [vmem:[%s5683_s17 + $0x30] sm:$0xf] %vm623_vm6, %v4808_v15  ;;  %v4052_v45 = vsel %vm1144_vm11, %v5217_v26, 0.0  ;;  %v4081_v16 = vmul.f32 %v5217_v26, %v5217_v26  ;;  %v4809_v13 = vpack.c.bf16 %v5217_v26, %v5217_v26 }
 0x217   : > { %v4106_v55 = vadd.f32 %v4105_v62, %v4104_v51  ;;  %v4054_v0 = vsel %vm1144_vm11, %v5214_v54, 0.0  ;;  %v4083_v31 = vmul.f32 %v5216_v12, %v5216_v12  ;;  %4219 = vst.msk [vmem:[%s5683_s17 + $0x3c] sm:$0xf] %vm623_vm6, %v4811_v23  ;;  %v4053_v9 = vadd.f32 %v4052_v45, %v4051_v36 }
 0x218   : > { %v5080_v63 = vpop.f32.mrb[16].mxu1  ;;  %v4109_v61 = vsel %vm1144_vm11, %v4082_v60, 0.0  ;;  %v4056_v38 = vsel %vm1144_vm11, %v5216_v12, 0.0  ;;  %v4107_v5 = vsel %vm1144_vm11, %v4081_v16, 0.0  ;;  %4217 = vst.msk [vmem:[%s5683_s17 + $0x34] sm:$0xf] %vm623_vm6, %v4809_v13 }
 0x219   : > { %v5218_v4 = vadd.f32 %v5192_v37, %v5080_v63  ;;  %v2562_v34 = vpop.f32.mrb[17].mxu1  ;;  %v4055_v20 = vadd.f32 %v4054_v0, %v4053_v9  ;;  %v4108_v44 = vadd.f32 %v4107_v5, %v4106_v55  ;;  %v4111_v8 = vsel %vm1144_vm11, %v4083_v31, 0.0 }
 0x21a   : > { %v5219_v30 = vadd.f32 %v3996_v47, %v2562_v34  ;;  %v5081_v1 = vpop.f32.mrb[18].mxu1 }
 0x21b   : > { %v4814_v48 = vpack.c.bf16 %v5218_v4, %v5218_v4  ;;  %v5220_v18 = vadd.f32 %v5193_v49, %v5081_v1  ;;  %v2565_v32 = vpop.f32.mrb[19].mxu1  ;;  %v4110_v6 = vadd.f32 %v4109_v61, %v4108_v44  ;;  %v4057_v58 = vadd.f32 %v4056_v38, %v4055_v20 }
 0x21c   : > { %v4058_v24 = vsel %vm1144_vm11, %v5219_v30, 0.0  ;;  %v4084_v42 = vmul.f32 %v5219_v30, %v5219_v30  ;;  %v4812_v46 = vpack.c.bf16 %v5219_v30, %v5219_v30  ;;  %v5221_v19 = vadd.f32 %v3999_v41, %v2565_v32 }
 0x21d   : > { %4222 = vst.msk [vmem:[%s5683_s17 + $0x48] sm:$0xf] %vm623_vm6, %v4814_v48  ;;  %v4815_v56 = vpack.c.bf16 %v5220_v18, %v5220_v18  ;;  %v4059_v39 = vadd.f32 %v4058_v24, %v4057_v58  ;;  %v4112_v22 = vadd.f32 %v4111_v8, %v4110_v6 }
 0x21e   : > { %v4113_v28 = vsel %vm1144_vm11, %v4084_v42, 0.0  ;;  %4220 = vst.msk [vmem:[%s5683_s17 + $0x40] sm:$0xf] %vm623_vm6, %v4812_v46  ;;  %v4060_v53 = vsel %vm1144_vm11, %v5221_v19, 0.0  ;;  %v4085_v21 = vmul.f32 %v5221_v19, %v5221_v19  ;;  %v4813_v57 = vpack.c.bf16 %v5221_v19, %v5221_v19 }
 0x21f   : > { %4223 = vst.msk [vmem:[%s5683_s17 + $0x4c] sm:$0xf] %vm623_vm6, %v4815_v56  ;;  %v4114_v14 = vadd.f32 %v4113_v28, %v4112_v22  ;;  %v4061_v7 = vadd.f32 %v4060_v53, %v4059_v39 }
 0x220   : > { %v4115_v25 = vsel %vm1144_vm11, %v4085_v21, 0.0  ;;  %4221 = vst.msk [vmem:[%s5683_s17 + $0x44] sm:$0xf] %vm623_vm6, %v4813_v57 }
 0x221   : > { %v4062_v10 = vrot.slane %v4061_v7, 4  ;;  %v4116_v27 = vadd.f32 %v4115_v25, %v4114_v14 }
 0x223   : > { %v4063_v54 = vadd.f32 %v4062_v10, %v4061_v7  ;;  %v4117_v37 = vrot.slane %v4116_v27, 4 }
 0x225   : > { %v4064_v2 = vrot.slane %v4063_v54, 2  ;;  %v4118_v35 = vadd.f32 %v4117_v37, %v4116_v27 }
 0x227   : > { %v4065_v50 = vadd.f32 %v4064_v2, %v4063_v54  ;;  %v4119_v47 = vrot.slane %v4118_v35, 2 }
 0x229   : > { %v4066_v3 = vrot.slane %v4065_v50, 1  ;;  %v4120_v11 = vadd.f32 %v4119_v47, %v4118_v35 }
 0x22b   : > { %v4067_v29 = vadd.f32 %v4066_v3, %v4065_v50  ;;  %v4121_v52 = vrot.slane %v4120_v11, 1 }
 0x22d   : > { %4069 = vst.msk [vmem:[%s444_s11] sm:$0x1] %vm455_vm0, %v4067_v29  ;;  %v4122_v43 = vadd.f32 %v4121_v52, %v4120_v11 }
 0x22f   : > { %4123 = vst.msk [vmem:[%s6945_s13] sm:$0x1] %vm455_vm0, %v4122_v43 }
 0x230 PF: > { %s17_s25 = sadd.s32 1, %s5529_s25   ;;  %s6946_s21 = smov %s5521_s23 }
 0x231   : > { %p14_p1 = scmp.ge.s32.totalorder %s17_s25, 6   ;;  %s6947_s22 = smov %s5525_s24 }
 0x232   : > { %s6948_s23 = smov %s6951_s26  ;;  %s6949_s24 = smov %s6955_s27 }
 0x233   :  { %16 = sbr.rel (!%p14_p1) target bundleno = 3 (0x3), region = 124 }

</bundles_post_ra>
